<compile_context>
chip_gen: v6e
topology: v6e:2x2x1
jax: 0.10.0
libtpu: 0.0.40
codegen_flags: <defaults>
</compile_context>

<pallas_src>
import numpy as np
import jax
import jax.numpy as jnp
from jax.experimental import pallas as pl
from jax.experimental.pallas import tpu as pltpu

SAMPLE_RATE = 16000
N_FFT = 1024
WIN_LENGTH = 1024
HOP = 160
N_MELS = 128
N_FREQS = N_FFT // 2 + 1      # 513 onesided bins
N_F = N_FREQS - 1             # 512: Nyquist bin has zero slaney-mel weight -> dropped (exact)
CLAMP_MIN = 1e-5
MAX_TT = 512                  # frame rows (time steps) per grid step


def _round_up(x, m):
    return (x + m - 1) // m * m


def _cdiv(a, b):
    return -(-a // b)


# ----------------------------------------------------------------------------
# Parameter construction (deterministic, matches torchaudio defaults)
# ----------------------------------------------------------------------------
def _slaney_mel_filterbank(n_freqs=N_FREQS, n_mels=N_MELS, sr=SAMPLE_RATE,
                           f_min=0.0, f_max=SAMPLE_RATE / 2.0):
    """torchaudio.functional.melscale_fbanks(norm='slaney', mel_scale='slaney')."""
    min_log_hz = 1000.0
    min_log_mel = 15.0
    logstep = np.log(6.4) / 27.0

    def hz_to_mel(f):
        f = np.asarray(f, dtype=np.float64)
        lin = 3.0 * f / 200.0
        log = min_log_mel + np.log(np.maximum(f, min_log_hz) / min_log_hz) / logstep
        return np.where(f >= min_log_hz, log, lin)

    def mel_to_hz(m):
        m = np.asarray(m, dtype=np.float64)
        lin = 200.0 * m / 3.0
        log = min_log_hz * np.exp(logstep * (m - min_log_mel))
        return np.where(m >= min_log_mel, log, lin)

    all_freqs = np.linspace(0.0, sr // 2, n_freqs)
    m_pts = np.linspace(hz_to_mel(f_min), hz_to_mel(f_max), n_mels + 2)
    f_pts = mel_to_hz(m_pts)

    f_diff = f_pts[1:] - f_pts[:-1]                           # [n_mels+1]
    slopes = f_pts[None, :] - all_freqs[:, None]              # [n_freqs, n_mels+2]
    down = -slopes[:, :-2] / f_diff[:-1]
    up = slopes[:, 2:] / f_diff[1:]
    fb = np.maximum(0.0, np.minimum(down, up))                # [n_freqs, n_mels]

    enorm = 2.0 / (f_pts[2:n_mels + 2] - f_pts[:n_mels])      # slaney normalization
    fb = fb * enorm[None, :]
    return fb.astype(np.float32)                              # [513, 128]


def _fused_dft_basis():
    """Hann-windowed real-DFT basis, cos|sin fused into one [1024, 1024] RHS."""
    n = np.arange(N_FFT, dtype=np.float64)
    f = np.arange(N_F, dtype=np.float64)                      # bins 0..511 (Nyquist dropped)
    window = 0.5 - 0.5 * np.cos(2.0 * np.pi * n / N_FFT)      # torch.hann_window(periodic=True)
    ang = 2.0 * np.pi * np.outer(n, f) / N_FFT                # [1024, 512]
    cos_m = window[:, None] * np.cos(ang)
    sin_m = window[:, None] * np.sin(ang)
    return np.concatenate([cos_m, sin_m], axis=1).astype(np.float32)   # [1024, 1024]


# ----------------------------------------------------------------------------
# Pallas kernel: one (batch, time-tile) of frames -> transposed log-mel tile
# ----------------------------------------------------------------------------
def logmel_kernel(frames_ref, w_ref, mel_ref, out_ref):
    x = frames_ref[0]                                                   # [TT, 1024] bf16
    # Fused windowed rDFT: one bf16 MXU pass, f32 accumulation.
    y = jnp.dot(x, w_ref[...], preferred_element_type=jnp.float32)      # [TT, 1024] = re|im
    re = y[:, :N_F]                                                      # lane-aligned split
    im = y[:, N_F:]
    mag = jnp.sqrt(re * re + im * im)                                    # power=1.0 magnitude
    mel = jnp.dot(mag.astype(jnp.bfloat16), mel_ref[...],
                  preferred_element_type=jnp.float32)                    # [TT, 128]
    logmel = jnp.log(jnp.maximum(mel, CLAMP_MIN))
    # Store transposed -> output is already (n_mels, time); XLU transpose hides
    # under the MXU work, and the wrapper needs no separate transpose pass.
    out_ref[0] = logmel.T                                                # [128, TT]


def log_mel_spectrogram(wav, w_basis, mel_fb):
    """wav: [B, L] float -> logmel [B, 128, T], T = 1 + (L + 864 - 1024)//160."""
    B, L = wav.shape
    pad = (N_FFT - HOP) // 2                                   # 432, module's "same" padding
    # NOTE: reflect pad requires L > 432 (same constraint as torch.F.pad 'reflect').
    wav_p = jnp.pad(wav.astype(jnp.float32), ((0, 0), (pad, pad)), mode="reflect")
    wav_p = wav_p.astype(jnp.bfloat16)                         # bf16 framing stream
    L_p = L + 2 * pad
    T = 1 + (L_p - N_FFT) // HOP

    # Framing via 7 hop-aligned slabs (plain slices + concat, no integer gather):
    # frames[b, t, 160*q + r] = wav_p[b, (t+q)*160 + r]
    n_rows = T + 6
    tot = n_rows * HOP
    if tot > L_p:
        wav_p = jnp.pad(wav_p, ((0, 0), (0, tot - L_p)))
    else:
        wav_p = wav_p[:, :tot]
    wav3 = wav_p.reshape(B, n_rows, HOP)
    slabs = [wav3[:, q:q + T, :] for q in range(6)]
    slabs.append(wav3[:, 6:6 + T, :N_FFT - 6 * HOP])           # last 64 samples of each frame
    frames = jnp.concatenate(slabs, axis=-1)                   # [B, T, 1024] bf16

    # Time tiling: 128-aligned lane-dense tiles, <= MAX_TT rows per step; for
    # B == 1 split time into >= 2 tiles so both v7x TensorCores get work.
    min_tiles = 2 if B == 1 else 1
    n_t_tiles = max(min_tiles, _cdiv(T, MAX_TT))
    TT = _round_up(_cdiv(T, n_t_tiles), 128)
    if TT >= T:
        TT = _round_up(T, 16)                                  # single tile: bf16 sublane align
    T_pad = _round_up(T, TT)
    if T_pad != T:
        frames = jnp.pad(frames, ((0, 0), (0, T_pad - T), (0, 0)))

    grid = (B, T_pad // TT)

    flops = 2 * B * T_pad * N_FFT * (2 * N_F) + 2 * B * T_pad * N_F * N_MELS + 4 * B * T_pad * N_F
    transcendentals = B * T_pad * (N_F + N_MELS)               # sqrt + log
    bytes_accessed = (2 * B * T_pad * N_FFT + 2 * N_FFT * 2 * N_F + 2 * N_F * N_MELS
                      + 4 * B * T_pad * N_MELS)

    out = pl.pallas_call(
        logmel_kernel,
        out_shape=jax.ShapeDtypeStruct((B, N_MELS, T_pad), jnp.float32),
        grid_spec=pltpu.PrefetchScalarGridSpec(
            num_scalar_prefetch=0,
            grid=grid,
            in_specs=[
                pl.BlockSpec((1, TT, N_FFT), lambda b, t: (b, t, 0)),
                # Constant operands: constant block index -> DMA'd once per
                # launch; single-buffered to save VMEM.
                pl.BlockSpec((N_FFT, 2 * N_F), lambda b, t: (0, 0),
                             pipeline_mode=pl.Buffered(1)),
                pl.BlockSpec((N_F, N_MELS), lambda b, t: (0, 0),
                             pipeline_mode=pl.Buffered(1)),
            ],
            out_specs=pl.BlockSpec((1, N_MELS, TT), lambda b, t: (b, 0, t)),
        ),
        compiler_params=pltpu.CompilerParams(
            dimension_semantics=("parallel", "parallel"),
            vmem_limit_bytes=32 * 1024 * 1024,
        ),
        cost_estimate=pl.CostEstimate(flops=flops,
                                      transcendentals=transcendentals,
                                      bytes_accessed=bytes_accessed),
    )(frames, w_basis, mel_fb)

    # Output is already (B, n_mels, time); just drop the padded time columns.
    return out[:, :, :T]


if __name__ == "__main__":
    # deterministic parameter setup (bf16 MXU operands)
    w_np = _fused_dft_basis()                                  # [1024, 1024] cos|sin
    fb_np = _slaney_mel_filterbank()[:N_F, :]                  # [512, 128] (Nyquist row dropped)

    w_basis = jnp.asarray(w_np, dtype=jnp.bfloat16)
    mel_fb = jnp.asarray(fb_np, dtype=jnp.bfloat16)

    # small example: batch=2, 1280 samples (= 80 ms @ 16 kHz) -> T = 8 frames
    key = jax.random.PRNGKey(0)
    wav = jax.random.normal(key, (2, 1280), dtype=jnp.float32)

    logmel = log_mel_spectrogram(wav, w_basis, mel_fb)
    logmel = jax.block_until_ready(logmel)
    assert logmel.shape == (2, 128, 8), logmel.shape
    assert logmel.dtype == jnp.float32
    assert bool(jnp.all(jnp.isfinite(logmel)))
    print("KERNEL_OK")
</pallas_src>

<mosaic_0001>
module attributes {stable_mosaic.version = 11 : i64} {
  func.func @logmel_kernel(%arg0: i32, %arg1: i32, %arg2: memref<1x16x1024xbf16, #tpu.memory_space<vmem>>, %arg3: memref<1024x1024xbf16, #tpu.memory_space<vmem>>, %arg4: memref<512x128xbf16, #tpu.memory_space<vmem>>, %arg5: memref<1x128x16xf32, #tpu.memory_space<vmem>>) attributes {dimension_semantics = [#tpu.dimension_semantics<parallel>, #tpu.dimension_semantics<parallel>], iteration_bounds = array<i64: 2, 1>, scalar_prefetch = 0 : i64, scratch_operands = 0 : i64, tpu.core_type = #tpu.core_type<tc>, window_params = [{transform_indices = @transform_0, window_bounds = array<i64: 1, 16, 1024>}, {pipeline_mode = #tpu.pipeline_mode<synchronous>, transform_indices = @transform_1, window_bounds = array<i64: 1024, 1024>}, {pipeline_mode = #tpu.pipeline_mode<synchronous>, transform_indices = @transform_2, window_bounds = array<i64: 512, 128>}, {transform_indices = @transform_3, window_bounds = array<i64: 1, 128, 16>}]} {
    %c0 = arith.constant 0 : index
    %c0_0 = arith.constant 0 : index
    %c0_1 = arith.constant 0 : index
    %0 = vector.load %arg2[%c0, %c0_0, %c0_1] : memref<1x16x1024xbf16, #tpu.memory_space<vmem>>, vector<1x16x1024xbf16>
    %1 = vector.shape_cast %0 : vector<1x16x1024xbf16> to vector<16x1024xbf16>
    %c0_2 = arith.constant 0 : index
    %c0_3 = arith.constant 0 : index
    %2 = vector.load %arg3[%c0_2, %c0_3] : memref<1024x1024xbf16, #tpu.memory_space<vmem>>, vector<1024x1024xbf16>
    %cst = arith.constant dense<0.000000e+00> : vector<16x1024xf32>
    %3 = tpu.matmul %1, %2, %cst {dimension_numbers = #tpu.dot_dimension_numbers<[1], [0], [0], [1], [0, 0, 1, 1], [], []>} : vector<16x1024xbf16>, vector<1024x1024xbf16>, vector<16x1024xf32> -> vector<16x1024xf32>
    %4 = vector.extract_strided_slice %3 {offsets = [0, 0], sizes = [16, 512], strides = [1, 1]} : vector<16x1024xf32> to vector<16x512xf32>
    %5 = vector.extract_strided_slice %3 {offsets = [0, 512], sizes = [16, 512], strides = [1, 1]} : vector<16x1024xf32> to vector<16x512xf32>
    %6 = arith.mulf %4, %4 : vector<16x512xf32>
    %7 = arith.mulf %5, %5 : vector<16x512xf32>
    %8 = arith.addf %6, %7 : vector<16x512xf32>
    %9 = math.sqrt %8 : vector<16x512xf32>
    %10 = arith.truncf %9 : vector<16x512xf32> to vector<16x512xbf16>
    %c0_4 = arith.constant 0 : index
    %c0_5 = arith.constant 0 : index
    %11 = vector.load %arg4[%c0_4, %c0_5] : memref<512x128xbf16, #tpu.memory_space<vmem>>, vector<512x128xbf16>
    %cst_6 = arith.constant dense<0.000000e+00> : vector<16x128xf32>
    %12 = tpu.matmul %10, %11, %cst_6 {dimension_numbers = #tpu.dot_dimension_numbers<[1], [0], [0], [1], [0, 0, 1, 1], [], []>} : vector<16x512xbf16>, vector<512x128xbf16>, vector<16x128xf32> -> vector<16x128xf32>
    %cst_7 = arith.constant 9.99999974E-6 : f32
    %13 = vector.broadcast %cst_7 : f32 to vector<16x128xf32>
    %14 = arith.maximumf %12, %13 : vector<16x128xf32>
    %15 = math.log %14 : vector<16x128xf32>
    %16 = tpu.transpose %15, [1, 0] : vector<16x128xf32> -> vector<128x16xf32>
    %c0_8 = arith.constant 0 : index
    %c0_9 = arith.constant 0 : index
    %c0_10 = arith.constant 0 : index
    %17 = vector.load %arg5[%c0_8, %c0_9, %c0_10] : memref<1x128x16xf32, #tpu.memory_space<vmem>>, vector<1x128x16xf32>
    %18 = vector.shape_cast %17 : vector<1x128x16xf32> to vector<128x16xf32>
    %19 = vector.shape_cast %16 : vector<128x16xf32> to vector<1x128x16xf32>
    tpu.vector_store %arg5[%c0_8, %c0_9, %c0_10], %19 {strides = array<i32>} : memref<1x128x16xf32, #tpu.memory_space<vmem>>, vector<1x128x16xf32>,
    return
  }
  func.func @transform_0(%arg0: i32, %arg1: i32) -> (i32, i32, i32) {
    %c0_i32 = arith.constant 0 : i32
    %c0_i32_0 = arith.constant 0 : i32
    return %arg0, %arg1, %c0_i32 : i32, i32, i32
  }
  func.func @transform_1(%arg0: i32, %arg1: i32) -> (i32, i32) {
    %c0_i32 = arith.constant 0 : i32
    %c0_i32_0 = arith.constant 0 : i32
    %c0_i32_1 = arith.constant 0 : i32
    return %c0_i32, %c0_i32_0 : i32, i32
  }
  func.func @transform_2(%arg0: i32, %arg1: i32) -> (i32, i32) {
    %c0_i32 = arith.constant 0 : i32
    %c0_i32_0 = arith.constant 0 : i32
    %c0_i32_1 = arith.constant 0 : i32
    return %c0_i32, %c0_i32_0 : i32, i32
  }
  func.func @transform_3(%arg0: i32, %arg1: i32) -> (i32, i32, i32) {
    %c0_i32 = arith.constant 0 : i32
    %c0_i32_0 = arith.constant 0 : i32
    return %arg0, %c0_i32, %arg1 : i32, i32, i32
  }
}

</mosaic_0001>

<bundles_post_ra>
// kernel: tpu_custom_call.1
= control target key start
LH: loop header
LB: loop body
LE: loop exit
PB: predicated region body
PF: predicated region fallthrough
CT: control target
= control target key end

     0   :  { %8 = vsyncpa [#allocation3], 0  ;;  %s5902_s0 = inlined_call_operand.hbm [shape: bf16[2,16,1024], index: 0, kind: input, shape index: {}]   ;;  %s5903_s1 = inlined_call_operand.hbm [shape: bf16[1024,1024], index: 1, kind: input, shape index: {}]   ;;  %s5904_s2 = inlined_call_operand.hbm [shape: bf16[512,128], index: 2, kind: input, shape index: {}]   ;;  %s5905_s3 = inlined_call_operand.vmem [shape: f32[2,128,16], index: 3, kind: output, shape index: {}]  }
   0x1   :  { %10 = vsyncpa [#allocation3 + $0x1], 0 }
   0x2   :  { %11 = vsyncpa [#allocation5], 0  ;;  %s5554_s12 = smov 0   ;;  %s5556_s13 = smov 0  }
   0x3   :  { %s5558_s14 = smov 0   ;;  %s5560_s15 = smov 0  }
   0x4   :  { %s5562_s16 = smov 0   ;;  %s5564_s17 = smov 0  }
   0x5 LB: > { %s4643_s18 = sadd.s32 4294967295, %s5525_s17   ;;  %p51_p0 = scmp.ne.s32.totalorder %s5509_s13, %s5505_s12  ;;  %s5525_s17 = sphi %s5564_s17, %s17_s17   ;;  %s5521_s16 = sphi %s5562_s16, %s5915_s16   ;;  %s5517_s15 = sphi %s5560_s15, %s5914_s15   ;;  %s5513_s14 = sphi %s5558_s14, %s5913_s14   ;;  %s5509_s13 = sphi %s5556_s13, %s5912_s13   ;;  %s5505_s12 = sphi %s5554_s12, %s5911_s12  }
   0x6   : > { %p5584_p1 = scmp.eq.s32.totalorder %s4643_s18, 0  ;;  %p4645_p2 = scmp.ge.s32.totalorder %s5525_s17, 1 }
   0x7   : > { %p132_p3 = scmp.lt.s32.totalorder %s5525_s17, 3  ;;  %s5527_s22 = smov [#allocation4]  }
   0x8   : > { %p5592_p4 = por %p5584_p1, %p51_p0  ;;  %s144_s23 = sshll.u32 %s5527_s22, 4  ;;  %s145_s23 = int_to_ptr.vmem [resolvable:$true] %s144_s23 }
   0x9   : > { %p5596_p5 = pnand %p4645_p2, %p132_p3  ;;  %s5528_s25 = smov [#allocation6]  }
   0xa   : > { %s157_s26 = sshll.u32 %s5528_s25, 4  ;;  %s5402_s27 = scalar_lea.vmem %s145_s23, 65536  ;;  %s158_s26 = int_to_ptr.vmem [resolvable:$true] %s157_s26 }
   0xb   : > { %p5268_p6 = pneg %p5596_p5  ;;  %p5403_p9 = scmp.ne.s32.totalorder %s145_s23, %s5402_s27 }
   0xc   : > { %p5410_p12 = scmp.lt.s32.totalorder %s145_s23, %s145_s23  ;;  %p5411_p13 = scmp.lt.s32.totalorder %s5402_s27, %s5402_s27 }
   0xd   : > { %p5604_p7 = pnand %p5268_p6, %p5584_p1 }
   0xe   : > { %p5412_p0 = por %p5411_p13, %p5410_p12 }
   0xf   : > { %p5393_p8 = pneg %p5604_p7 }
  0x11   : > { %p5405_p10 = pnand %p5403_p9, %p5393_p8 }
  0x13   : > { %p5406_p11 = pneg %p5405_p10 }
  0x15   : > { %p5413_p2 = pnand %p5412_p0, %p5406_p11 }
  0x17   : > { %5416 = shalt.err (!%p5413_p2)
}
  0x18   : > { %s5529_s28 = smov 512   ;;  %s5530_s29 = smov 32  }
  0x19   : > { %5271 = dma.hbm_to_vmem [thread:$0]  (!%p5604_p7), %s5903_s1, 65536, %s145_s23, [#allocation5], %s5529_s28, %s5529_s28, %s5530_s29  }
  0x1a   : > { %s5428_s5 = scalar_lea.vmem %s158_s26, 4096  ;;  %p5436_p10 = scmp.lt.s32.totalorder %s158_s26, %s158_s26 }
  0x1b   : > { %p5429_p3 = scmp.ne.s32.totalorder %s158_s26, %s5428_s5  ;;  %p5437_p11 = scmp.lt.s32.totalorder %s5428_s5, %s5428_s5 }
  0x1d   : > { %p5431_p6 = pnand %p5429_p3, %p5393_p8  ;;  %p5438_p12 = por %p5437_p11, %p5436_p10 }
  0x1f   : > { %p5432_p9 = pneg %p5431_p6 }
  0x21   : > { %p5439_p13 = pnand %p5438_p12, %p5432_p9 }
  0x23   : > { %5442 = shalt.err (!%p5439_p13)
}
  0x24   : > { %s5531_s6 = smov 64   ;;  %s5532_s7 = smov 4  }
  0x25   : > { %5274 = dma.hbm_to_vmem [thread:$0]  (!%p5604_p7), %s5904_s2, 4096, %s158_s26, [#allocation5], %s5531_s6, %s5531_s6, %s5532_s7  }
  0x26   : > { %s29_s10 = sadd.s32 1, %s5521_s16  ;;  %s38_s11 = sadd.s32 1, %s5513_s14 }
  0x27   : > { %p31_p8 = scmp.ge.s32.totalorder %s29_s10, 2  ;;  %p45_p0 = scmp.ne.s32.totalorder %s5513_s14, %s5509_s13 }
  0x28   : > { %p46_p2 = scmp.eq.s32.totalorder %s5525_s17, 0  ;;  %p5281_p3 = scmp.lt.s32.totalorder %s5525_s17, 2 }
  0x29   : > { %s5917_s10 = smov (%p31_p8, %s29_s10), 0  ;;  %s171_s12 = sand.u32 1, %s5513_s14  }
  0x2a   : > { %p47_p6 = por %p46_p2, %p45_p0  ;;  %s33_s18 = ssub.s32 %s5521_s16, %s5917_s10 }
  0x2b   : > { %p36_p9 = scmp.eq.s32.totalorder %s33_s18, 0  ;;  %s4649_s22 = sshll.u32 %s171_s12, 6 }
  0x2c   : > { %s5212_s23 = sshll.u32 %s5521_s16, 10  ;;  %s175_s30 = scalar_lea.vmem [#allocation2], %s4649_s22 }
  0x2d   : > { %s5642_s24 = scalar_select %p36_p9, %s5513_s14, %s38_s11  }
  0x2e   : > { %s184_s27 = scalar_lea.hbm %s5902_s0, %s5212_s23  ;;  %s185_s4 = sshll.u32 %s175_s30, 4  ;;  %s186_s4 = int_to_ptr.vmem [resolvable:$true] %s185_s4 }
  0x2f   : > { %p5649_p7 = pnand %p5281_p3, %p47_p6  ;;  %s172_s6 = scalar_lea.sflag [#allocation3], %s171_s12 }
  0x30   : > { %s5456_s7 = scalar_lea.vmem %s186_s4, 1024  ;;  %s5533_s8 = smov [#allocation2]  }
  0x31   : > { %p5445_p10 = pneg %p5649_p7  ;;  %p5457_p11 = scmp.ne.s32.totalorder %s186_s4, %s5456_s7 }
  0x32   : > { %s5461_s9 = sshll.u32 %s5533_s8, 4  ;;  %s5462_s9 = int_to_ptr.vmem [resolvable:$false] %s5461_s9 }
  0x33   : > { %p5459_p12 = pnand %p5457_p11, %p5445_p10  ;;  %s5463_s11 = scalar_lea.vmem %s5462_s9, 2048 }
  0x34   : > { %p5464_p8 = scmp.lt.s32.totalorder %s186_s4, %s5462_s9  ;;  %p5465_p0 = scmp.lt.s32.totalorder %s5463_s11, %s5456_s7 }
  0x35   : > { %p5460_p13 = pneg %p5459_p12 }
  0x36   : > { %p5466_p2 = por %p5465_p0, %p5464_p8 }
  0x38   : > { %p5467_p9 = pnand %p5466_p2, %p5460_p13 }
  0x3a   : > { %5470 = shalt.err (!%p5467_p9)
}
  0x3b   : > { %5278 = dma.hbm_to_vmem [thread:$0]  (!%p5649_p7), %s184_s27, 1024, %s186_s4, %s172_s6, %s5529_s28, %s5529_s28, %s5530_s29  }
  0x3c   : > { %197 = sbr.rel (%p5596_p5) target bundleno = 1217 (0x4c1), region = 32  ;;  %s199_s12 = sand.u32 (!%p5596_p5), 1, %s5509_s13  }
  0x3d   : > { %s4653_s18 = sshll.u32 (!%p5596_p5), %s199_s12, 6  ;;  %s200_s22 = scalar_lea.sflag (!%p5596_p5), [#allocation3], %s199_s12 }
  0x3e   : > { %s5663_s23 = scalar_lea.vmem (!%p5596_p5), [#allocation2], %s4653_s18 }
  0x41   : > { %5496 = dma.done.wait (%p5592_p4), %s200_s22, 1024  }
  0x42   : > { %5498 = vsyncadd (%p5592_p4), %s200_s22, 4294966272 }
  0x43   : > { %5500 = dma.done.wait (%p5584_p1), [#allocation5], 69632  }
  0x44   : > { %5502 = vsyncadd (%p5584_p1), [#allocation5], 4294897664  ;;  %v311_v0 = vld [vmem:[#allocation4 + $0x1c0] sm:$0xff]  ;;  %v5684_v59 = vld [vmem:[%s5663_s23 + $0x8] sm:$0xff]  ;;  %p238_p1 = scmp.lt.s32.totalorder %s5517_s15, 1 }
  0x45   : > { %v315_v1 = vld [vmem:[#allocation4 + $0x1e0] sm:$0xff]  ;;  %v5687_v60 = vld [vmem:[%s5663_s23 + $0x28] sm:$0xff] }
  0x46   : > { %v439_v2 = vld [vmem:[#allocation4 + $0x5c0] sm:$0xff]  ;;  %v4723_v3 = vcombine.high %v311_v0, %v315_v1  ;;  %v4722_v5 = vcombine.low %v311_v0, %v315_v1  ;;  %v5691_v63 = vcombine.high %v5684_v59, %v5687_v60  ;;  %s5919_s15 = smov (!%p238_p1, %s5517_s15), 1 }
  0x47   : > { %v443_v4 = vld [vmem:[#allocation4 + $0x5e0] sm:$0xff]  ;;  %s5213_s19 = sshll.u32 %s5919_s15, 7 }
  0x48   : > { %v303_v6 = vld [vmem:[#allocation4 + $0x180] sm:$0xff]  ;;  %v4851_v8 = vcombine.high %v439_v2, %v443_v4  ;;  %v4850_v9 = vcombine.low %v439_v2, %v443_v4  ;;  %3367 = vmatprep.subr.bf16.mxu0 %v4723_v3  ;;  %3442 = vmatprep.mubr.bf16.mxu1 %v5691_v63  ;;  %s5850_s28 = scalar_lea.vmem %s5905_s3, %s5213_s19 }
  0x49   : > { %v307_v7 = vld [vmem:[#allocation4 + $0x1a0] sm:$0xff]  ;;  %3368 = vmatpush1.bf16.msra.mxu0 %v4722_v5 }
  0x4a   : > { %v4715_v10 = vcombine.high %v303_v6, %v307_v7  ;;  %v431_v11 = vld [vmem:[#allocation4 + $0x580] sm:$0xff]  ;;  %3410 = vmatprep.subr.bf16.mxu1 %v4851_v8  ;;  %v4714_v18 = vcombine.low %v303_v6, %v307_v7 }
  0x4b   : > { %v435_v12 = vld [vmem:[#allocation4 + $0x5a0] sm:$0xff]  ;;  %3411 = vmatpush1.bf16.msra.mxu1 %v4850_v9 }
  0x4c   : > { %v295_v13 = vld [vmem:[#allocation4 + $0x140] sm:$0xff]  ;;  %v4843_v14 = vcombine.high %v431_v11, %v435_v12  ;;  %3369 = vmatprep.subr.bf16.mxu0 %v4715_v10  ;;  %v4842_v19 = vcombine.low %v431_v11, %v435_v12 }
  0x4d   : > { %v299_v15 = vld [vmem:[#allocation4 + $0x160] sm:$0xff]  ;;  %3370 = vmatpush1.bf16.msra.mxu0 %v4714_v18 }
  0x4e   : > { %v423_v16 = vld [vmem:[#allocation4 + $0x540] sm:$0xff]  ;;  %v4707_v20 = vcombine.high %v295_v13, %v299_v15  ;;  %3412 = vmatprep.subr.bf16.mxu1 %v4843_v14  ;;  %v4706_v26 = vcombine.low %v295_v13, %v299_v15 }
  0x4f   : > { %v427_v17 = vld [vmem:[#allocation4 + $0x560] sm:$0xff]  ;;  %3413 = vmatpush1.bf16.msra.mxu1 %v4842_v19 }
  0x50   : > { %v4835_v21 = vcombine.high %v423_v16, %v427_v17  ;;  %v287_v22 = vld [vmem:[#allocation4 + $0x100] sm:$0xff]  ;;  %3371 = vmatprep.subr.bf16.mxu0 %v4707_v20  ;;  %v4834_v27 = vcombine.low %v423_v16, %v427_v17 }
  0x51   : > { %v291_v23 = vld [vmem:[#allocation4 + $0x120] sm:$0xff]  ;;  %3372 = vmatpush1.bf16.msra.mxu0 %v4706_v26 }
  0x52   : > { %v415_v24 = vld [vmem:[#allocation4 + $0x500] sm:$0xff]  ;;  %v4699_v28 = vcombine.high %v287_v22, %v291_v23  ;;  %3414 = vmatprep.subr.bf16.mxu1 %v4835_v21  ;;  %v4698_v34 = vcombine.low %v287_v22, %v291_v23 }
  0x53   : > { %v419_v25 = vld [vmem:[#allocation4 + $0x520] sm:$0xff]  ;;  %3415 = vmatpush1.bf16.msra.mxu1 %v4834_v27 }
  0x54   : > { %v4827_v29 = vcombine.high %v415_v24, %v419_v25  ;;  %v279_v30 = vld [vmem:[#allocation4 + $0xc0] sm:$0xff]  ;;  %3373 = vmatprep.subr.bf16.mxu0 %v4699_v28  ;;  %v4826_v35 = vcombine.low %v415_v24, %v419_v25 }
  0x55   : > { %v283_v31 = vld [vmem:[#allocation4 + $0xe0] sm:$0xff]  ;;  %3374 = vmatpush1.bf16.msra.mxu0 %v4698_v34 }
  0x56   : > { %v407_v32 = vld [vmem:[#allocation4 + $0x4c0] sm:$0xff]  ;;  %v4691_v36 = vcombine.high %v279_v30, %v283_v31  ;;  %3416 = vmatprep.subr.bf16.mxu1 %v4827_v29  ;;  %v4690_v42 = vcombine.low %v279_v30, %v283_v31 }
  0x57   : > { %v411_v33 = vld [vmem:[#allocation4 + $0x4e0] sm:$0xff]  ;;  %3417 = vmatpush1.bf16.msra.mxu1 %v4826_v35 }
  0x58   : > { %v4819_v37 = vcombine.high %v407_v32, %v411_v33  ;;  %v271_v38 = vld [vmem:[#allocation4 + $0x80] sm:$0xff]  ;;  %3375 = vmatprep.subr.bf16.mxu0 %v4691_v36  ;;  %v4818_v43 = vcombine.low %v407_v32, %v411_v33 }
  0x59   : > { %v275_v39 = vld [vmem:[#allocation4 + $0xa0] sm:$0xff]  ;;  %3376 = vmatpush1.bf16.msra.mxu0 %v4690_v42 }
  0x5a   : > { %v399_v40 = vld [vmem:[#allocation4 + $0x480] sm:$0xff]  ;;  %v4683_v44 = vcombine.high %v271_v38, %v275_v39  ;;  %3418 = vmatprep.subr.bf16.mxu1 %v4819_v37  ;;  %v4682_v50 = vcombine.low %v271_v38, %v275_v39 }
  0x5b   : > { %v403_v41 = vld [vmem:[#allocation4 + $0x4a0] sm:$0xff]  ;;  %3419 = vmatpush1.bf16.msra.mxu1 %v4818_v43 }
  0x5c   : > { %v4811_v45 = vcombine.high %v399_v40, %v403_v41  ;;  %v263_v46 = vld [vmem:[#allocation4 + $0x40] sm:$0xff]  ;;  %3377 = vmatprep.subr.bf16.mxu0 %v4683_v44  ;;  %v4810_v51 = vcombine.low %v399_v40, %v403_v41 }
  0x5d   : > { %v267_v47 = vld [vmem:[#allocation4 + $0x60] sm:$0xff]  ;;  %3378 = vmatpush1.bf16.msra.mxu0 %v4682_v50 }
  0x5e   : > { %v391_v48 = vld [vmem:[#allocation4 + $0x440] sm:$0xff]  ;;  %v4675_v52 = vcombine.high %v263_v46, %v267_v47  ;;  %3420 = vmatprep.subr.bf16.mxu1 %v4811_v45  ;;  %v4674_v0 = vcombine.low %v263_v46, %v267_v47 }
  0x5f   : > { %v395_v49 = vld [vmem:[#allocation4 + $0x460] sm:$0xff]  ;;  %3421 = vmatpush1.bf16.msra.mxu1 %v4810_v51 }
  0x60   : > { %v255_v53 = vld [vmem:[#allocation4] sm:$0xff]  ;;  %v4803_v56 = vcombine.high %v391_v48, %v395_v49  ;;  %3379 = vmatprep.subr.bf16.mxu0 %v4675_v52  ;;  %v4802_v1 = vcombine.low %v391_v48, %v395_v49 }
  0x61   : > { %v5674_v54 = vld [vmem:[%s5663_s23] sm:$0xff]  ;;  %3380 = vmatpush1.bf16.msra.mxu0 %v4674_v0 }
  0x62   : > { %v5677_v55 = vld [vmem:[%s5663_s23 + $0x20] sm:$0xff]  ;;  %3422 = vmatprep.subr.bf16.mxu1 %v4803_v56 }
  0x63   : > { %v259_v57 = vld [vmem:[#allocation4 + $0x20] sm:$0xff]  ;;  %v5681_v58 = vcombine.high %v5674_v54, %v5677_v55  ;;  %3423 = vmatpush1.bf16.msra.mxu1 %v4802_v1 }
  0x64   : > { %v383_v61 = vld [vmem:[#allocation4 + $0x400] sm:$0xff]  ;;  %v4667_v2 = vcombine.high %v255_v53, %v259_v57  ;;  %v4666_v8 = vcombine.low %v255_v53, %v259_v57 }
  0x65   : > { %v387_v62 = vld [vmem:[#allocation4 + $0x420] sm:$0xff]  ;;  %3399 = vmatprep.mubr.bf16.mxu0 %v5681_v58 }
  0x66   : > { %v4795_v3 = vcombine.high %v383_v61, %v387_v62  ;;  %v375_v4 = vld [vmem:[#allocation4 + $0x3c0] sm:$0xff]  ;;  %3381 = vmatprep.subr.bf16.mxu0 %v4667_v2  ;;  %v4794_v9 = vcombine.low %v383_v61, %v387_v62 }
  0x67   : > { %v379_v5 = vld [vmem:[#allocation4 + $0x3e0] sm:$0xff]  ;;  %3382 = vmatpush1.bf16.msra.mxu0 %v4666_v8 }
  0x68   : > { %v503_v6 = vld [vmem:[#allocation4 + $0x7c0] sm:$0xff]  ;;  %v4787_v10 = vcombine.high %v375_v4, %v379_v5  ;;  %3424 = vmatprep.subr.bf16.mxu1 %v4795_v3  ;;  %v4786_v16 = vcombine.low %v375_v4, %v379_v5 }
  0x69   : > { %v507_v7 = vld [vmem:[#allocation4 + $0x7e0] sm:$0xff]  ;;  %3425 = vmatpush1.bf16.msra.mxu1 %v4794_v9 }
  0x6a   : > { %v4915_v11 = vcombine.high %v503_v6, %v507_v7  ;;  %v367_v12 = vld [vmem:[#allocation4 + $0x380] sm:$0xff]  ;;  %3383 = vmatprep.subr.bf16.mxu0 %v4787_v10  ;;  %v4914_v17 = vcombine.low %v503_v6, %v507_v7 }
  0x6b   : > { %v371_v13 = vld [vmem:[#allocation4 + $0x3a0] sm:$0xff]  ;;  %3384 = vmatpush2.bf16.msra.mxu0 %v4786_v16 }
  0x6c   : > { %v495_v14 = vld [vmem:[#allocation4 + $0x780] sm:$0xff]  ;;  %v4779_v18 = vcombine.high %v367_v12, %v371_v13  ;;  %3426 = vmatprep.subr.bf16.mxu1 %v4915_v11  ;;  %v4778_v24 = vcombine.low %v367_v12, %v371_v13 }
  0x6d   : > { %v499_v15 = vld [vmem:[#allocation4 + $0x7a0] sm:$0xff]  ;;  %3427 = vmatpush2.bf16.msra.mxu1 %v4914_v17 }
  0x6e   : > { %v4907_v19 = vcombine.high %v495_v14, %v499_v15  ;;  %v359_v20 = vld [vmem:[#allocation4 + $0x340] sm:$0xff]  ;;  %3385 = vmatprep.subr.bf16.mxu0 %v4779_v18  ;;  %v4906_v25 = vcombine.low %v495_v14, %v499_v15 }
  0x6f   : > { %v363_v21 = vld [vmem:[#allocation4 + $0x360] sm:$0xff]  ;;  %3386 = vmatpush2.bf16.msra.mxu0 %v4778_v24  ;;  %v5703_v24 = vld [vmem:[%s5663_s23 + $0x30] sm:$0xff] }
  0x70   : > { %v487_v22 = vld [vmem:[#allocation4 + $0x740] sm:$0xff]  ;;  %v4771_v26 = vcombine.high %v359_v20, %v363_v21  ;;  %3428 = vmatprep.subr.bf16.mxu1 %v4907_v19  ;;  %v4770_v32 = vcombine.low %v359_v20, %v363_v21  ;;  %v5697_v21 = vcombine.low %v5674_v54, %v5677_v55 }
  0x71   : > { %v491_v23 = vld [vmem:[#allocation4 + $0x760] sm:$0xff]  ;;  %3429 = vmatpush2.bf16.msra.mxu1 %v4906_v25  ;;  %v5707_v25 = vcombine.low %v5684_v59, %v5687_v60 }
  0x72   : > { %v4899_v27 = vcombine.high %v487_v22, %v491_v23  ;;  %v351_v28 = vld [vmem:[#allocation4 + $0x300] sm:$0xff]  ;;  %3387 = vmatprep.subr.bf16.mxu0 %v4771_v26  ;;  %v4898_v33 = vcombine.low %v487_v22, %v491_v23  ;;  %v5700_v23 = vld [vmem:[%s5663_s23 + $0x10] sm:$0xff] }
  0x73   : > { %v355_v29 = vld [vmem:[#allocation4 + $0x320] sm:$0xff]  ;;  %3388 = vmatpush2.bf16.msra.mxu0 %v4770_v32  ;;  %v5717_v32 = vcombine.high %v5700_v23, %v5703_v24 }
  0x74   : > { %v479_v30 = vld [vmem:[#allocation4 + $0x700] sm:$0xff]  ;;  %v4763_v34 = vcombine.high %v351_v28, %v355_v29  ;;  %3430 = vmatprep.subr.bf16.mxu1 %v4899_v27  ;;  %v4762_v40 = vcombine.low %v351_v28, %v355_v29  ;;  %v5710_v27 = vld [vmem:[%s5663_s23 + $0x18] sm:$0xff] }
  0x75   : > { %v483_v31 = vld [vmem:[#allocation4 + $0x720] sm:$0xff]  ;;  %3431 = vmatpush2.bf16.msra.mxu1 %v4898_v33  ;;  %v5713_v28 = vld [vmem:[%s5663_s23 + $0x38] sm:$0xff] }
  0x76   : > { %v4891_v35 = vcombine.high %v479_v30, %v483_v31  ;;  %v343_v36 = vld [vmem:[#allocation4 + $0x2c0] sm:$0xff]  ;;  %3389 = vmatprep.subr.bf16.mxu0 %v4763_v34  ;;  %v4890_v41 = vcombine.low %v479_v30, %v483_v31  ;;  %v5722_v33 = vcombine.high %v5710_v27, %v5713_v28 }
  0x77   : > { %v347_v37 = vld [vmem:[#allocation4 + $0x2e0] sm:$0xff]  ;;  %3390 = vmatpush2.bf16.msra.mxu0 %v4762_v40 }
  0x78   : > { %v471_v38 = vld [vmem:[#allocation4 + $0x6c0] sm:$0xff]  ;;  %v4755_v42 = vcombine.high %v343_v36, %v347_v37  ;;  %3432 = vmatprep.subr.bf16.mxu1 %v4891_v35  ;;  %v4754_v48 = vcombine.low %v343_v36, %v347_v37 }
  0x79   : > { %v475_v39 = vld [vmem:[#allocation4 + $0x6e0] sm:$0xff]  ;;  %3433 = vmatpush2.bf16.msra.mxu1 %v4890_v41 }
  0x7a   : > { %v4883_v43 = vcombine.high %v471_v38, %v475_v39  ;;  %v335_v44 = vld [vmem:[#allocation4 + $0x280] sm:$0xff]  ;;  %3391 = vmatprep.subr.bf16.mxu0 %v4755_v42  ;;  %v4882_v49 = vcombine.low %v471_v38, %v475_v39 }
  0x7b   : > { %v339_v45 = vld [vmem:[#allocation4 + $0x2a0] sm:$0xff]  ;;  %3392 = vmatpush2.bf16.msra.mxu0 %v4754_v48 }
  0x7c   : > { %v463_v46 = vld [vmem:[#allocation4 + $0x680] sm:$0xff]  ;;  %v4747_v50 = vcombine.high %v335_v44, %v339_v45  ;;  %3434 = vmatprep.subr.bf16.mxu1 %v4883_v43  ;;  %v4746_v61 = vcombine.low %v335_v44, %v339_v45 }
  0x7d   : > { %v467_v47 = vld [vmem:[#allocation4 + $0x6a0] sm:$0xff]  ;;  %3435 = vmatpush2.bf16.msra.mxu1 %v4882_v49 }
  0x7e   : > { %v4875_v51 = vcombine.high %v463_v46, %v467_v47  ;;  %v327_v52 = vld [vmem:[#allocation4 + $0x240] sm:$0xff]  ;;  %3393 = vmatprep.subr.bf16.mxu0 %v4747_v50  ;;  %v4874_v62 = vcombine.low %v463_v46, %v467_v47 }
  0x7f   : > { %v331_v53 = vld [vmem:[#allocation4 + $0x260] sm:$0xff]  ;;  %3394 = vmatpush2.bf16.msra.mxu0 %v4746_v61 }
  0x80   : > { %v455_v56 = vld [vmem:[#allocation4 + $0x640] sm:$0xff]  ;;  %v4739_v0 = vcombine.high %v327_v52, %v331_v53  ;;  %3436 = vmatprep.subr.bf16.mxu1 %v4875_v51  ;;  %v4738_v6 = vcombine.low %v327_v52, %v331_v53 }
  0x81   : > { %v459_v57 = vld [vmem:[#allocation4 + $0x660] sm:$0xff]  ;;  %3437 = vmatpush2.bf16.msra.mxu1 %v4874_v62 }
  0x82   : > { %v4867_v1 = vcombine.high %v455_v56, %v459_v57  ;;  %v319_v2 = vld [vmem:[#allocation4 + $0x200] sm:$0xff]  ;;  %3395 = vmatprep.subr.bf16.mxu0 %v4739_v0  ;;  %v4866_v7 = vcombine.low %v455_v56, %v459_v57 }
  0x83   : > { %v323_v3 = vld [vmem:[#allocation4 + $0x220] sm:$0xff]  ;;  %3396 = vmatpush2.bf16.msra.mxu0 %v4738_v6 }
  0x84   : > { %v447_v4 = vld [vmem:[#allocation4 + $0x600] sm:$0xff]  ;;  %v4731_v8 = vcombine.high %v319_v2, %v323_v3  ;;  %3438 = vmatprep.subr.bf16.mxu1 %v4867_v1  ;;  %v4730_v14 = vcombine.low %v319_v2, %v323_v3 }
  0x85   : > { %v451_v5 = vld [vmem:[#allocation4 + $0x620] sm:$0xff]  ;;  %3439 = vmatpush2.bf16.msra.mxu1 %v4866_v7 }
  0x86   : > { %v4859_v9 = vcombine.high %v447_v4, %v451_v5  ;;  %v567_v10 = vld [vmem:[#allocation4 + $0x9c0] sm:$0xff]  ;;  %3397 = vmatprep.subr.bf16.mxu0 %v4731_v8  ;;  %v4858_v15 = vcombine.low %v447_v4, %v451_v5 }
  0x87   : > { %v571_v11 = vld [vmem:[#allocation4 + $0x9e0] sm:$0xff]  ;;  %3398 = vmatpush2.bf16.msra.mxu0 %v4730_v14 }
  0x88   : > { %v695_v12 = vld [vmem:[#allocation4 + $0xdc0] sm:$0xff]  ;;  %v4979_v16 = vcombine.high %v567_v10, %v571_v11  ;;  %3440 = vmatprep.subr.bf16.mxu1 %v4859_v9  ;;  %v4978_v26 = vcombine.low %v567_v10, %v571_v11 }
  0x89   : > { %v699_v13 = vld [vmem:[#allocation4 + $0xde0] sm:$0xff]  ;;  %3441 = vmatpush2.bf16.msra.mxu1 %v4858_v15 }
  0x8a   : > { %v5107_v17 = vcombine.high %v695_v12, %v699_v13  ;;  %v559_v18 = vld [vmem:[#allocation4 + $0x980] sm:$0xff]  ;;  %3453 = vmatprep.subr.bf16.mxu0 %v4979_v16  ;;  %v5106_v29 = vcombine.low %v695_v12, %v699_v13  ;;  %3400 = vmatmul.mubr.bf16.vlgmr.msra.gmra.mxu0 %v5697_v21 }
  0x8b   : > { %v563_v19 = vld [vmem:[#allocation4 + $0x9a0] sm:$0xff]  ;;  %3454 = vmatpush1.bf16.msra.mxu0 %v4978_v26  ;;  %3485 = vmatprep.mubr.bf16.mxu0 %v5717_v32 }
  0x8c   : > { %v687_v20 = vld [vmem:[#allocation4 + $0xd80] sm:$0xff]  ;;  %v4971_v54 = vcombine.high %v559_v18, %v563_v19  ;;  %3496 = vmatprep.subr.bf16.mxu1 %v5107_v17  ;;  %3443 = vmatmul.mubr.bf16.vlgmr.msra.gmra.mxu1 %v5707_v25  ;;  %v4970_v34 = vcombine.low %v559_v18, %v563_v19 }
  0x8d   : > { %v691_v22 = vld [vmem:[#allocation4 + $0xda0] sm:$0xff]  ;;  %3497 = vmatpush1.bf16.msra.mxu1 %v5106_v29  ;;  %3528 = vmatprep.mubr.bf16.mxu1 %v5722_v33 }
  0x8e   : > { %v5099_v55 = vcombine.high %v687_v20, %v691_v22  ;;  %v551_v30 = vld [vmem:[#allocation4 + $0x940] sm:$0xff]  ;;  %3455 = vmatprep.subr.bf16.mxu0 %v4971_v54  ;;  %v5098_v35 = vcombine.low %v687_v20, %v691_v22 }
  0x8f   : > { %v555_v31 = vld [vmem:[#allocation4 + $0x960] sm:$0xff]  ;;  %3456 = vmatpush1.bf16.msra.mxu0 %v4970_v34 }
  0x90   : > { %v679_v59 = vld [vmem:[#allocation4 + $0xd40] sm:$0xff]  ;;  %v4963_v36 = vcombine.high %v551_v30, %v555_v31  ;;  %3498 = vmatprep.subr.bf16.mxu1 %v5099_v55  ;;  %v4962_v42 = vcombine.low %v551_v30, %v555_v31 }
  0x91   : > { %v683_v60 = vld [vmem:[#allocation4 + $0xd60] sm:$0xff]  ;;  %3499 = vmatpush1.bf16.msra.mxu1 %v5098_v35 }
  0x92   : > { %v543_v37 = vld [vmem:[#allocation4 + $0x900] sm:$0xff]  ;;  %v5091_v40 = vcombine.high %v679_v59, %v683_v60  ;;  %3457 = vmatprep.subr.bf16.mxu0 %v4963_v36  ;;  %v5090_v43 = vcombine.low %v679_v59, %v683_v60 }
  0x93   : > { %v547_v38 = vld [vmem:[#allocation4 + $0x920] sm:$0xff]  ;;  %3458 = vmatpush1.bf16.msra.mxu0 %v4962_v42 }
  0x94   : > { %v671_v39 = vld [vmem:[#allocation4 + $0xd00] sm:$0xff]  ;;  %v4955_v44 = vcombine.high %v543_v37, %v547_v38  ;;  %3500 = vmatprep.subr.bf16.mxu1 %v5091_v40  ;;  %v4954_v50 = vcombine.low %v543_v37, %v547_v38 }
  0x95   : > { %v675_v41 = vld [vmem:[#allocation4 + $0xd20] sm:$0xff]  ;;  %3501 = vmatpush1.bf16.msra.mxu1 %v5090_v43 }
  0x96   : > { %v535_v45 = vld [vmem:[#allocation4 + $0x8c0] sm:$0xff]  ;;  %v5083_v48 = vcombine.high %v671_v39, %v675_v41  ;;  %3459 = vmatprep.subr.bf16.mxu0 %v4955_v44  ;;  %v5082_v51 = vcombine.low %v671_v39, %v675_v41 }
  0x97   : > { %v539_v46 = vld [vmem:[#allocation4 + $0x8e0] sm:$0xff]  ;;  %3460 = vmatpush1.bf16.msra.mxu0 %v4954_v50 }
  0x98   : > { %v663_v47 = vld [vmem:[#allocation4 + $0xcc0] sm:$0xff]  ;;  %v4947_v52 = vcombine.high %v535_v45, %v539_v46  ;;  %3502 = vmatprep.subr.bf16.mxu1 %v5083_v48  ;;  %v4946_v0 = vcombine.low %v535_v45, %v539_v46 }
  0x99   : > { %v667_v49 = vld [vmem:[#allocation4 + $0xce0] sm:$0xff]  ;;  %3503 = vmatpush1.bf16.msra.mxu1 %v5082_v51 }
  0x9a   : > { %v527_v53 = vld [vmem:[#allocation4 + $0x880] sm:$0xff]  ;;  %v5075_v61 = vcombine.high %v663_v47, %v667_v49  ;;  %3461 = vmatprep.subr.bf16.mxu0 %v4947_v52  ;;  %v5074_v1 = vcombine.low %v663_v47, %v667_v49 }
  0x9b   : > { %v531_v56 = vld [vmem:[#allocation4 + $0x8a0] sm:$0xff]  ;;  %3462 = vmatpush1.bf16.msra.mxu0 %v4946_v0 }
  0x9c   : > { %v655_v57 = vld [vmem:[#allocation4 + $0xc80] sm:$0xff]  ;;  %v4939_v2 = vcombine.high %v527_v53, %v531_v56  ;;  %3504 = vmatprep.subr.bf16.mxu1 %v5075_v61  ;;  %v4938_v8 = vcombine.low %v527_v53, %v531_v56 }
  0x9d   : > { %v659_v62 = vld [vmem:[#allocation4 + $0xca0] sm:$0xff]  ;;  %3505 = vmatpush1.bf16.msra.mxu1 %v5074_v1 }
  0x9e   : > { %v519_v3 = vld [vmem:[#allocation4 + $0x840] sm:$0xff]  ;;  %v5067_v6 = vcombine.high %v655_v57, %v659_v62  ;;  %3463 = vmatprep.subr.bf16.mxu0 %v4939_v2  ;;  %v5066_v9 = vcombine.low %v655_v57, %v659_v62 }
  0x9f   : > { %v523_v4 = vld [vmem:[#allocation4 + $0x860] sm:$0xff]  ;;  %3464 = vmatpush1.bf16.msra.mxu0 %v4938_v8 }
  0xa0   : > { %v647_v5 = vld [vmem:[#allocation4 + $0xc40] sm:$0xff]  ;;  %v4931_v10 = vcombine.high %v519_v3, %v523_v4  ;;  %3506 = vmatprep.subr.bf16.mxu1 %v5067_v6  ;;  %v4930_v16 = vcombine.low %v519_v3, %v523_v4 }
  0xa1   : > { %v651_v7 = vld [vmem:[#allocation4 + $0xc60] sm:$0xff]  ;;  %3507 = vmatpush1.bf16.msra.mxu1 %v5066_v9 }
  0xa2   : > { %v511_v11 = vld [vmem:[#allocation4 + $0x800] sm:$0xff]  ;;  %v5059_v14 = vcombine.high %v647_v5, %v651_v7  ;;  %3465 = vmatprep.subr.bf16.mxu0 %v4931_v10  ;;  %v5058_v17 = vcombine.low %v647_v5, %v651_v7 }
  0xa3   : > { %v515_v12 = vld [vmem:[#allocation4 + $0x820] sm:$0xff]  ;;  %3466 = vmatpush1.bf16.msra.mxu0 %v4930_v16 }
  0xa4   : > { %v639_v13 = vld [vmem:[#allocation4 + $0xc00] sm:$0xff]  ;;  %v4923_v18 = vcombine.high %v511_v11, %v515_v12  ;;  %3508 = vmatprep.subr.bf16.mxu1 %v5059_v14  ;;  %v4922_v54 = vcombine.low %v511_v11, %v515_v12 }
  0xa5   : > { %v643_v15 = vld [vmem:[#allocation4 + $0xc20] sm:$0xff]  ;;  %3509 = vmatpush1.bf16.msra.mxu1 %v5058_v17 }
  0xa6   : > { %v631_v19 = vld [vmem:[#allocation4 + $0xbc0] sm:$0xff]  ;;  %v5051_v26 = vcombine.high %v639_v13, %v643_v15  ;;  %3467 = vmatprep.subr.bf16.mxu0 %v4923_v18  ;;  %v5050_v55 = vcombine.low %v639_v13, %v643_v15 }
  0xa7   : > { %v635_v20 = vld [vmem:[#allocation4 + $0xbe0] sm:$0xff]  ;;  %3468 = vmatpush1.bf16.msra.mxu0 %v4922_v54 }
  0xa8   : > { %v759_v22 = vld [vmem:[#allocation4 + $0xfc0] sm:$0xff]  ;;  %v5043_v30 = vcombine.high %v631_v19, %v635_v20  ;;  %3510 = vmatprep.subr.bf16.mxu1 %v5051_v26  ;;  %v5042_v36 = vcombine.low %v631_v19, %v635_v20 }
  0xa9   : > { %v763_v29 = vld [vmem:[#allocation4 + $0xfe0] sm:$0xff]  ;;  %3511 = vmatpush1.bf16.msra.mxu1 %v5050_v55 }
  0xaa   : > { %v623_v31 = vld [vmem:[#allocation4 + $0xb80] sm:$0xff]  ;;  %v5171_v34 = vcombine.high %v759_v22, %v763_v29  ;;  %3469 = vmatprep.subr.bf16.mxu0 %v5043_v30  ;;  %v5170_v37 = vcombine.low %v759_v22, %v763_v29 }
  0xab   : > { %v627_v59 = vld [vmem:[#allocation4 + $0xba0] sm:$0xff]  ;;  %3470 = vmatpush2.bf16.msra.mxu0 %v5042_v36  ;;  %v440_v36 = vld [vmem:[#allocation4 + $0x5c8] sm:$0xff] }
  0xac   : > { %v751_v60 = vld [vmem:[#allocation4 + $0xf80] sm:$0xff]  ;;  %v5035_v38 = vcombine.high %v623_v31, %v627_v59  ;;  %3512 = vmatprep.subr.bf16.mxu1 %v5171_v34  ;;  %v5034_v44 = vcombine.low %v623_v31, %v627_v59  ;;  %v312_v34 = vld [vmem:[#allocation4 + $0x1c8] sm:$0xff] }
  0xad   : > { %v755_v35 = vld [vmem:[#allocation4 + $0xfa0] sm:$0xff]  ;;  %3513 = vmatpush2.bf16.msra.mxu1 %v5170_v37  ;;  %v444_v37 = vld [vmem:[#allocation4 + $0x5e8] sm:$0xff] }
  0xae   : > { %v615_v39 = vld [vmem:[#allocation4 + $0xb40] sm:$0xff]  ;;  %v5163_v42 = vcombine.high %v751_v60, %v755_v35  ;;  %3471 = vmatprep.subr.bf16.mxu0 %v5035_v38  ;;  %v5162_v45 = vcombine.low %v751_v60, %v755_v35  ;;  %v316_v35 = vld [vmem:[#allocation4 + $0x1e8] sm:$0xff] }
  0xaf   : > { %v619_v40 = vld [vmem:[#allocation4 + $0xb60] sm:$0xff]  ;;  %3472 = vmatpush2.bf16.msra.mxu0 %v5034_v44  ;;  %v5729_v44 = vcombine.low %v5700_v23, %v5703_v24  ;;  %v424_v23 = vld [vmem:[#allocation4 + $0x548] sm:$0xff] }
  0xb0   : > { %v743_v41 = vld [vmem:[#allocation4 + $0xf40] sm:$0xff]  ;;  %v5027_v46 = vcombine.high %v615_v39, %v619_v40  ;;  %3514 = vmatprep.subr.bf16.mxu1 %v5163_v42  ;;  %v5026_v52 = vcombine.low %v615_v39, %v619_v40  ;;  %v4725_v40 = vcombine.high %v312_v34, %v316_v35  ;;  %v304_v42 = vld [vmem:[#allocation4 + $0x188] sm:$0xff] }
  0xb1   : > { %v747_v43 = vld [vmem:[#allocation4 + $0xf60] sm:$0xff]  ;;  %3515 = vmatpush2.bf16.msra.mxu1 %v5162_v45  ;;  %v432_v45 = vld [vmem:[#allocation4 + $0x588] sm:$0xff] }
  0xb2   : > { %v5155_v47 = vcombine.high %v743_v41, %v747_v43  ;;  %v607_v48 = vld [vmem:[#allocation4 + $0xb00] sm:$0xff]  ;;  %3473 = vmatprep.subr.bf16.mxu0 %v5027_v46  ;;  %v5154_v53 = vcombine.low %v743_v41, %v747_v43  ;;  %v4853_v41 = vcombine.high %v440_v36, %v444_v37  ;;  %v308_v43 = vld [vmem:[#allocation4 + $0x1a8] sm:$0xff] }
  0xb3   : > { %v611_v49 = vld [vmem:[#allocation4 + $0xb20] sm:$0xff]  ;;  %3474 = vmatpush2.bf16.msra.mxu0 %v5026_v52  ;;  %v436_v46 = vld [vmem:[#allocation4 + $0x5a8] sm:$0xff] }
  0xb4   : > { %v735_v50 = vld [vmem:[#allocation4 + $0xf00] sm:$0xff]  ;;  %v5019_v56 = vcombine.high %v607_v48, %v611_v49  ;;  %3516 = vmatprep.subr.bf16.mxu1 %v5155_v47  ;;  %v5018_v2 = vcombine.low %v607_v48, %v611_v49  ;;  %v5733_v47 = vcombine.low %v5710_v27, %v5713_v28  ;;  %v4724_v48 = vcombine.low %v312_v34, %v316_v35  ;;  %v296_v52 = vld [vmem:[#allocation4 + $0x148] sm:$0xff] }
  0xb5   : > { %v739_v51 = vld [vmem:[#allocation4 + $0xf20] sm:$0xff]  ;;  %3517 = vmatpush2.bf16.msra.mxu1 %v5154_v53  ;;  %v4852_v49 = vcombine.low %v440_v36, %v444_v37  ;;  %v300_v53 = vld [vmem:[#allocation4 + $0x168] sm:$0xff]  ;;  %v4844_v27 = vcombine.low %v432_v45, %v436_v46 }
  0xb6   : > { %v5147_v57 = vcombine.high %v735_v50, %v739_v51  ;;  %v599_v61 = vld [vmem:[#allocation4 + $0xac0] sm:$0xff]  ;;  %3475 = vmatprep.subr.bf16.mxu0 %v5019_v56  ;;  %v5146_v3 = vcombine.low %v735_v50, %v739_v51  ;;  %v4717_v50 = vcombine.high %v304_v42, %v308_v43  ;;  %v4845_v51 = vcombine.high %v432_v45, %v436_v46  ;;  %v428_v24 = vld [vmem:[#allocation4 + $0x568] sm:$0xff] }
  0xb7   : > { %v603_v62 = vld [vmem:[#allocation4 + $0xae0] sm:$0xff]  ;;  %3476 = vmatpush2.bf16.msra.mxu0 %v5018_v2  ;;  %v4716_v56 = vcombine.low %v304_v42, %v308_v43  ;;  %v4709_v28 = vcombine.high %v296_v52, %v300_v53  ;;  %v4708_v2 = vcombine.low %v296_v52, %v300_v53  ;;  %v256_v34 = vld [vmem:[#allocation4 + $0x8] sm:$0xff] }
  0xb8   : > { %v727_v0 = vld [vmem:[#allocation4 + $0xec0] sm:$0xff]  ;;  %v5011_v4 = vcombine.high %v599_v61, %v603_v62  ;;  %3518 = vmatprep.subr.bf16.mxu1 %v5147_v57  ;;  %v5010_v10 = vcombine.low %v599_v61, %v603_v62  ;;  %v4837_v57 = vcombine.high %v424_v23, %v428_v24  ;;  %v288_v61 = vld [vmem:[#allocation4 + $0x108] sm:$0xff] }
  0xb9   : > { %v731_v1 = vld [vmem:[#allocation4 + $0xee0] sm:$0xff]  ;;  %3519 = vmatpush2.bf16.msra.mxu1 %v5146_v3  ;;  %v292_v62 = vld [vmem:[#allocation4 + $0x128] sm:$0xff]  ;;  %v4836_v3 = vcombine.low %v424_v23, %v428_v24 }
  0xba   : > { %v5139_v5 = vcombine.high %v727_v0, %v731_v1  ;;  %v591_v6 = vld [vmem:[#allocation4 + $0xa80] sm:$0xff]  ;;  %3477 = vmatprep.subr.bf16.mxu0 %v5011_v4  ;;  %v5138_v11 = vcombine.low %v727_v0, %v731_v1  ;;  %v416_v0 = vld [vmem:[#allocation4 + $0x508] sm:$0xff]  ;;  %v4701_v4 = vcombine.high %v288_v61, %v292_v62 }
  0xbb   : > { %v595_v7 = vld [vmem:[#allocation4 + $0xaa0] sm:$0xff]  ;;  %3478 = vmatpush2.bf16.msra.mxu0 %v5010_v10  ;;  %v420_v1 = vld [vmem:[#allocation4 + $0x528] sm:$0xff]  ;;  %v4700_v10 = vcombine.low %v288_v61, %v292_v62 }
  0xbc   : > { %v719_v8 = vld [vmem:[#allocation4 + $0xe80] sm:$0xff]  ;;  %v5003_v12 = vcombine.high %v591_v6, %v595_v7  ;;  %3520 = vmatprep.subr.bf16.mxu1 %v5139_v5  ;;  %v5002_v18 = vcombine.low %v591_v6, %v595_v7  ;;  %v4829_v5 = vcombine.high %v416_v0, %v420_v1  ;;  %v280_v6 = vld [vmem:[#allocation4 + $0xc8] sm:$0xff] }
  0xbd   : > { %v723_v9 = vld [vmem:[#allocation4 + $0xea0] sm:$0xff]  ;;  %3521 = vmatpush2.bf16.msra.mxu1 %v5138_v11  ;;  %v284_v7 = vld [vmem:[#allocation4 + $0xe8] sm:$0xff]  ;;  %v4828_v11 = vcombine.low %v416_v0, %v420_v1 }
  0xbe   : > { %v5131_v13 = vcombine.high %v719_v8, %v723_v9  ;;  %v583_v14 = vld [vmem:[#allocation4 + $0xa40] sm:$0xff]  ;;  %3479 = vmatprep.subr.bf16.mxu0 %v5003_v12  ;;  %v5130_v19 = vcombine.low %v719_v8, %v723_v9  ;;  %v408_v8 = vld [vmem:[#allocation4 + $0x4c8] sm:$0xff]  ;;  %v4693_v12 = vcombine.high %v280_v6, %v284_v7 }
  0xbf   : > { %v587_v15 = vld [vmem:[#allocation4 + $0xa60] sm:$0xff]  ;;  %3480 = vmatpush2.bf16.msra.mxu0 %v5002_v18  ;;  %v412_v9 = vld [vmem:[#allocation4 + $0x4e8] sm:$0xff]  ;;  %v4692_v18 = vcombine.low %v280_v6, %v284_v7 }
  0xc0   : > { %v711_v16 = vld [vmem:[#allocation4 + $0xe40] sm:$0xff]  ;;  %v4995_v20 = vcombine.high %v583_v14, %v587_v15  ;;  %3522 = vmatprep.subr.bf16.mxu1 %v5131_v13  ;;  %v4994_v30 = vcombine.low %v583_v14, %v587_v15  ;;  %v4821_v13 = vcombine.high %v408_v8, %v412_v9  ;;  %v272_v14 = vld [vmem:[#allocation4 + $0x88] sm:$0xff] }
  0xc1   : > { %v715_v17 = vld [vmem:[#allocation4 + $0xe60] sm:$0xff]  ;;  %3523 = vmatpush2.bf16.msra.mxu1 %v5130_v19  ;;  %v276_v15 = vld [vmem:[#allocation4 + $0xa8] sm:$0xff]  ;;  %v4820_v19 = vcombine.low %v408_v8, %v412_v9 }
  0xc2   : > { %v5123_v22 = vcombine.high %v711_v16, %v715_v17  ;;  %v575_v26 = vld [vmem:[#allocation4 + $0xa00] sm:$0xff]  ;;  %3481 = vmatprep.subr.bf16.mxu0 %v4995_v20  ;;  %v5122_v31 = vcombine.low %v711_v16, %v715_v17  ;;  %v400_v16 = vld [vmem:[#allocation4 + $0x488] sm:$0xff]  ;;  %v4685_v20 = vcombine.high %v272_v14, %v276_v15 }
  0xc3   : > { %v579_v29 = vld [vmem:[#allocation4 + $0xa20] sm:$0xff]  ;;  %3482 = vmatpush2.bf16.msra.mxu0 %v4994_v30  ;;  %v404_v17 = vld [vmem:[#allocation4 + $0x4a8] sm:$0xff]  ;;  %v4684_v30 = vcombine.low %v272_v14, %v276_v15 }
  0xc4   : > { %v703_v54 = vld [vmem:[#allocation4 + $0xe00] sm:$0xff]  ;;  %v4987_v59 = vcombine.high %v575_v26, %v579_v29  ;;  %3524 = vmatprep.subr.bf16.mxu1 %v5123_v22  ;;  %v4986_v38 = vcombine.low %v575_v26, %v579_v29  ;;  %v4813_v22 = vcombine.high %v400_v16, %v404_v17  ;;  %v264_v26 = vld [vmem:[#allocation4 + $0x48] sm:$0xff] }
  0xc5   : > { %v707_v55 = vld [vmem:[#allocation4 + $0xe20] sm:$0xff]  ;;  %3525 = vmatpush2.bf16.msra.mxu1 %v5122_v31  ;;  %v268_v29 = vld [vmem:[#allocation4 + $0x68] sm:$0xff]  ;;  %v4812_v31 = vcombine.low %v400_v16, %v404_v17 }
  0xc6   : > { %v5115_v60 = vcombine.high %v703_v54, %v707_v55  ;;  %3483 = vmatprep.subr.bf16.mxu0 %v4987_v59  ;;  %v5114_v39 = vcombine.low %v703_v54, %v707_v55  ;;  %v392_v54 = vld [vmem:[#allocation4 + $0x448] sm:$0xff]  ;;  %v4677_v59 = vcombine.high %v264_v26, %v268_v29 }
  0xc7   : > { %3484 = vmatpush2.bf16.msra.mxu0 %v4986_v38  ;;  %v396_v55 = vld [vmem:[#allocation4 + $0x468] sm:$0xff]  ;;  %v4676_v38 = vcombine.low %v264_v26, %v268_v29 }
  0xc8   : > { %3526 = vmatprep.subr.bf16.mxu1 %v5115_v60  ;;  %3539 = vmatprep.subr.bf16.mxu0 %v4725_v40  ;;  %v4805_v60 = vcombine.high %v392_v54, %v396_v55  ;;  %v260_v35 = vld [vmem:[#allocation4 + $0x28] sm:$0xff] }
  0xc9   : > { %3527 = vmatpush2.bf16.msra.mxu1 %v5114_v39  ;;  %v384_v36 = vld [vmem:[#allocation4 + $0x408] sm:$0xff]  ;;  %v4804_v39 = vcombine.low %v392_v54, %v396_v55  ;;  %v4669_v40 = vcombine.high %v256_v34, %v260_v35 }
  0xca   : > { %3582 = vmatprep.subr.bf16.mxu1 %v4853_v41  ;;  %3486 = vmatmul.mubr.bf16.vlgmr.msra.gmra.mxu0 %v5729_v44  ;;  %v388_v37 = vld [vmem:[#allocation4 + $0x428] sm:$0xff] }
  0xcb   : > { %3540 = vmatpush1.bf16.msra.mxu0 %v4724_v48  ;;  %3571 = vmatprep.mubr.bf16.mxu0 %v5681_v58  ;;  %v4797_v41 = vcombine.high %v384_v36, %v388_v37  ;;  %v376_v42 = vld [vmem:[#allocation4 + $0x3c8] sm:$0xff]  ;;  %v4668_v48 = vcombine.low %v256_v34, %v260_v35 }
  0xcc   : > { %3529 = vmatmul.mubr.bf16.vlgmr.msra.gmra.mxu1 %v5733_v47  ;;  %3541 = vmatprep.subr.bf16.mxu0 %v4717_v50  ;;  %v380_v43 = vld [vmem:[#allocation4 + $0x3e8] sm:$0xff] }
  0xcd   : > { %3583 = vmatpush1.bf16.msra.mxu1 %v4852_v49  ;;  %3614 = vmatprep.mubr.bf16.mxu1 %v5691_v63  ;;  %v504_v45 = vld [vmem:[#allocation4 + $0x7c8] sm:$0xff]  ;;  %v4796_v49 = vcombine.low %v384_v36, %v388_v37  ;;  %v4789_v50 = vcombine.high %v376_v42, %v380_v43 }
  0xce   : > { %3584 = vmatprep.subr.bf16.mxu1 %v4845_v51  ;;  %v508_v46 = vld [vmem:[#allocation4 + $0x7e8] sm:$0xff] }
  0xcf   : > { %3542 = vmatpush1.bf16.msra.mxu0 %v4716_v56  ;;  %v4917_v51 = vcombine.high %v504_v45, %v508_v46  ;;  %v368_v52 = vld [vmem:[#allocation4 + $0x388] sm:$0xff]  ;;  %v4788_v56 = vcombine.low %v376_v42, %v380_v43 }
  0xd0   : > { %3543 = vmatprep.subr.bf16.mxu0 %v4709_v28  ;;  %v372_v53 = vld [vmem:[#allocation4 + $0x3a8] sm:$0xff] }
  0xd1   : > { %3585 = vmatpush1.bf16.msra.mxu1 %v4844_v27  ;;  %v496_v23 = vld [vmem:[#allocation4 + $0x788] sm:$0xff]  ;;  %v4916_v27 = vcombine.low %v504_v45, %v508_v46  ;;  %v4781_v28 = vcombine.high %v368_v52, %v372_v53 }
  0xd2   : > { %3586 = vmatprep.subr.bf16.mxu1 %v4837_v57  ;;  %v500_v24 = vld [vmem:[#allocation4 + $0x7a8] sm:$0xff] }
  0xd3   : > { %3544 = vmatpush1.bf16.msra.mxu0 %v4708_v2  ;;  %v4909_v57 = vcombine.high %v496_v23, %v500_v24  ;;  %v360_v61 = vld [vmem:[#allocation4 + $0x348] sm:$0xff]  ;;  %v4780_v2 = vcombine.low %v368_v52, %v372_v53 }
  0xd4   : > { %3545 = vmatprep.subr.bf16.mxu0 %v4701_v4  ;;  %v364_v62 = vld [vmem:[#allocation4 + $0x368] sm:$0xff] }
  0xd5   : > { %3587 = vmatpush1.bf16.msra.mxu1 %v4836_v3  ;;  %v488_v0 = vld [vmem:[#allocation4 + $0x748] sm:$0xff]  ;;  %v4908_v3 = vcombine.low %v496_v23, %v500_v24  ;;  %v4773_v4 = vcombine.high %v360_v61, %v364_v62 }
  0xd6   : > { %3588 = vmatprep.subr.bf16.mxu1 %v4829_v5  ;;  %v492_v1 = vld [vmem:[#allocation4 + $0x768] sm:$0xff] }
  0xd7   : > { %3546 = vmatpush1.bf16.msra.mxu0 %v4700_v10  ;;  %v4901_v5 = vcombine.high %v488_v0, %v492_v1  ;;  %v352_v6 = vld [vmem:[#allocation4 + $0x308] sm:$0xff]  ;;  %v4772_v10 = vcombine.low %v360_v61, %v364_v62 }
  0xd8   : > { %3547 = vmatprep.subr.bf16.mxu0 %v4693_v12  ;;  %v356_v7 = vld [vmem:[#allocation4 + $0x328] sm:$0xff] }
  0xd9   : > { %3589 = vmatpush1.bf16.msra.mxu1 %v4828_v11  ;;  %v480_v8 = vld [vmem:[#allocation4 + $0x708] sm:$0xff]  ;;  %v4900_v11 = vcombine.low %v488_v0, %v492_v1  ;;  %v4765_v12 = vcombine.high %v352_v6, %v356_v7 }
  0xda   : > { %3590 = vmatprep.subr.bf16.mxu1 %v4821_v13  ;;  %v484_v9 = vld [vmem:[#allocation4 + $0x728] sm:$0xff] }
  0xdb   : > { %3548 = vmatpush1.bf16.msra.mxu0 %v4692_v18  ;;  %v4893_v13 = vcombine.high %v480_v8, %v484_v9  ;;  %v344_v14 = vld [vmem:[#allocation4 + $0x2c8] sm:$0xff]  ;;  %v4764_v18 = vcombine.low %v352_v6, %v356_v7 }
  0xdc   : > { %3549 = vmatprep.subr.bf16.mxu0 %v4685_v20  ;;  %v348_v15 = vld [vmem:[#allocation4 + $0x2e8] sm:$0xff] }
  0xdd   : > { %3591 = vmatpush1.bf16.msra.mxu1 %v4820_v19  ;;  %v472_v16 = vld [vmem:[#allocation4 + $0x6c8] sm:$0xff]  ;;  %v4892_v19 = vcombine.low %v480_v8, %v484_v9  ;;  %v4757_v20 = vcombine.high %v344_v14, %v348_v15 }
  0xde   : > { %3592 = vmatprep.subr.bf16.mxu1 %v4813_v22  ;;  %v476_v17 = vld [vmem:[#allocation4 + $0x6e8] sm:$0xff] }
  0xdf   : > { %3550 = vmatpush1.bf16.msra.mxu0 %v4684_v30  ;;  %v4885_v22 = vcombine.high %v472_v16, %v476_v17  ;;  %v336_v26 = vld [vmem:[#allocation4 + $0x288] sm:$0xff]  ;;  %v4756_v30 = vcombine.low %v344_v14, %v348_v15 }
  0xe0   : > { %3551 = vmatprep.subr.bf16.mxu0 %v4677_v59  ;;  %v340_v29 = vld [vmem:[#allocation4 + $0x2a8] sm:$0xff] }
  0xe1   : > { %3593 = vmatpush1.bf16.msra.mxu1 %v4812_v31  ;;  %v464_v54 = vld [vmem:[#allocation4 + $0x688] sm:$0xff]  ;;  %v4884_v31 = vcombine.low %v472_v16, %v476_v17  ;;  %v4749_v59 = vcombine.high %v336_v26, %v340_v29 }
  0xe2   : > { %3594 = vmatprep.subr.bf16.mxu1 %v4805_v60  ;;  %v468_v55 = vld [vmem:[#allocation4 + $0x6a8] sm:$0xff] }
  0xe3   : > { %3552 = vmatpush1.bf16.msra.mxu0 %v4676_v38  ;;  %v4877_v60 = vcombine.high %v464_v54, %v468_v55  ;;  %v328_v34 = vld [vmem:[#allocation4 + $0x248] sm:$0xff]  ;;  %v4748_v38 = vcombine.low %v336_v26, %v340_v29 }
  0xe4   : > { %3553 = vmatprep.subr.bf16.mxu0 %v4669_v40  ;;  %v332_v35 = vld [vmem:[#allocation4 + $0x268] sm:$0xff] }
  0xe5   : > { %3595 = vmatpush1.bf16.msra.mxu1 %v4804_v39  ;;  %v456_v36 = vld [vmem:[#allocation4 + $0x648] sm:$0xff]  ;;  %v4876_v39 = vcombine.low %v464_v54, %v468_v55  ;;  %v4741_v40 = vcombine.high %v328_v34, %v332_v35 }
  0xe6   : > { %3596 = vmatprep.subr.bf16.mxu1 %v4797_v41  ;;  %v460_v37 = vld [vmem:[#allocation4 + $0x668] sm:$0xff] }
  0xe7   : > { %3554 = vmatpush1.bf16.msra.mxu0 %v4668_v48  ;;  %v4869_v41 = vcombine.high %v456_v36, %v460_v37  ;;  %v320_v42 = vld [vmem:[#allocation4 + $0x208] sm:$0xff]  ;;  %v4740_v48 = vcombine.low %v328_v34, %v332_v35 }
  0xe8   : > { %3555 = vmatprep.subr.bf16.mxu0 %v4789_v50  ;;  %v324_v43 = vld [vmem:[#allocation4 + $0x228] sm:$0xff] }
  0xe9   : > { %3597 = vmatpush1.bf16.msra.mxu1 %v4796_v49  ;;  %v448_v45 = vld [vmem:[#allocation4 + $0x608] sm:$0xff]  ;;  %v4868_v49 = vcombine.low %v456_v36, %v460_v37  ;;  %v4733_v50 = vcombine.high %v320_v42, %v324_v43 }
  0xea   : > { %3598 = vmatprep.subr.bf16.mxu1 %v4917_v51  ;;  %v452_v46 = vld [vmem:[#allocation4 + $0x628] sm:$0xff] }
  0xeb   : > { %3556 = vmatpush2.bf16.msra.mxu0 %v4788_v56  ;;  %v4861_v51 = vcombine.high %v448_v45, %v452_v46  ;;  %v568_v52 = vld [vmem:[#allocation4 + $0x9c8] sm:$0xff]  ;;  %v4732_v56 = vcombine.low %v320_v42, %v324_v43 }
  0xec   : > { %3557 = vmatprep.subr.bf16.mxu0 %v4781_v28  ;;  %v572_v53 = vld [vmem:[#allocation4 + $0x9e8] sm:$0xff] }
  0xed   : > { %3599 = vmatpush2.bf16.msra.mxu1 %v4916_v27  ;;  %v696_v23 = vld [vmem:[#allocation4 + $0xdc8] sm:$0xff]  ;;  %v4860_v27 = vcombine.low %v448_v45, %v452_v46  ;;  %v4981_v28 = vcombine.high %v568_v52, %v572_v53 }
  0xee   : > { %3600 = vmatprep.subr.bf16.mxu1 %v4909_v57  ;;  %v700_v24 = vld [vmem:[#allocation4 + $0xde8] sm:$0xff] }
  0xef   : > { %3558 = vmatpush2.bf16.msra.mxu0 %v4780_v2  ;;  %v5109_v57 = vcombine.high %v696_v23, %v700_v24  ;;  %v560_v61 = vld [vmem:[#allocation4 + $0x988] sm:$0xff]  ;;  %v4980_v2 = vcombine.low %v568_v52, %v572_v53 }
  0xf0   : > { %3559 = vmatprep.subr.bf16.mxu0 %v4773_v4  ;;  %v564_v62 = vld [vmem:[#allocation4 + $0x9a8] sm:$0xff] }
  0xf1   : > { %3601 = vmatpush2.bf16.msra.mxu1 %v4908_v3  ;;  %v688_v0 = vld [vmem:[#allocation4 + $0xd88] sm:$0xff]  ;;  %v5108_v3 = vcombine.low %v696_v23, %v700_v24  ;;  %v4973_v4 = vcombine.high %v560_v61, %v564_v62 }
  0xf2   : > { %3602 = vmatprep.subr.bf16.mxu1 %v4901_v5  ;;  %v692_v1 = vld [vmem:[#allocation4 + $0xda8] sm:$0xff] }
  0xf3   : > { %3560 = vmatpush2.bf16.msra.mxu0 %v4772_v10  ;;  %v5101_v5 = vcombine.high %v688_v0, %v692_v1  ;;  %v552_v6 = vld [vmem:[#allocation4 + $0x948] sm:$0xff]  ;;  %v4972_v10 = vcombine.low %v560_v61, %v564_v62 }
  0xf4   : > { %3561 = vmatprep.subr.bf16.mxu0 %v4765_v12  ;;  %v556_v7 = vld [vmem:[#allocation4 + $0x968] sm:$0xff] }
  0xf5   : > { %3603 = vmatpush2.bf16.msra.mxu1 %v4900_v11  ;;  %v680_v8 = vld [vmem:[#allocation4 + $0xd48] sm:$0xff]  ;;  %v5100_v11 = vcombine.low %v688_v0, %v692_v1  ;;  %v4965_v12 = vcombine.high %v552_v6, %v556_v7 }
  0xf6   : > { %3604 = vmatprep.subr.bf16.mxu1 %v4893_v13  ;;  %v684_v9 = vld [vmem:[#allocation4 + $0xd68] sm:$0xff] }
  0xf7   : > { %3562 = vmatpush2.bf16.msra.mxu0 %v4764_v18  ;;  %v5093_v13 = vcombine.high %v680_v8, %v684_v9  ;;  %v544_v14 = vld [vmem:[#allocation4 + $0x908] sm:$0xff]  ;;  %v4964_v18 = vcombine.low %v552_v6, %v556_v7 }
  0xf8   : > { %3563 = vmatprep.subr.bf16.mxu0 %v4757_v20  ;;  %v548_v15 = vld [vmem:[#allocation4 + $0x928] sm:$0xff] }
  0xf9   : > { %3605 = vmatpush2.bf16.msra.mxu1 %v4892_v19  ;;  %v672_v16 = vld [vmem:[#allocation4 + $0xd08] sm:$0xff]  ;;  %v5092_v19 = vcombine.low %v680_v8, %v684_v9  ;;  %v4957_v20 = vcombine.high %v544_v14, %v548_v15 }
  0xfa   : > { %3606 = vmatprep.subr.bf16.mxu1 %v4885_v22  ;;  %v676_v17 = vld [vmem:[#allocation4 + $0xd28] sm:$0xff] }
  0xfb   : > { %3564 = vmatpush2.bf16.msra.mxu0 %v4756_v30  ;;  %v5085_v22 = vcombine.high %v672_v16, %v676_v17  ;;  %v536_v26 = vld [vmem:[#allocation4 + $0x8c8] sm:$0xff]  ;;  %v4956_v30 = vcombine.low %v544_v14, %v548_v15 }
  0xfc   : > { %3565 = vmatprep.subr.bf16.mxu0 %v4749_v59  ;;  %v540_v29 = vld [vmem:[#allocation4 + $0x8e8] sm:$0xff] }
  0xfd   : > { %3607 = vmatpush2.bf16.msra.mxu1 %v4884_v31  ;;  %v664_v54 = vld [vmem:[#allocation4 + $0xcc8] sm:$0xff]  ;;  %v5084_v31 = vcombine.low %v672_v16, %v676_v17  ;;  %v4949_v59 = vcombine.high %v536_v26, %v540_v29 }
  0xfe   : > { %3608 = vmatprep.subr.bf16.mxu1 %v4877_v60  ;;  %v668_v55 = vld [vmem:[#allocation4 + $0xce8] sm:$0xff] }
  0xff   : > { %3566 = vmatpush2.bf16.msra.mxu0 %v4748_v38  ;;  %v5077_v60 = vcombine.high %v664_v54, %v668_v55  ;;  %v528_v34 = vld [vmem:[#allocation4 + $0x888] sm:$0xff]  ;;  %v4948_v38 = vcombine.low %v536_v26, %v540_v29 }
 0x100   : > { %3567 = vmatprep.subr.bf16.mxu0 %v4741_v40  ;;  %v532_v35 = vld [vmem:[#allocation4 + $0x8a8] sm:$0xff] }
 0x101   : > { %3609 = vmatpush2.bf16.msra.mxu1 %v4876_v39  ;;  %v656_v36 = vld [vmem:[#allocation4 + $0xc88] sm:$0xff]  ;;  %v5076_v39 = vcombine.low %v664_v54, %v668_v55  ;;  %v4941_v40 = vcombine.high %v528_v34, %v532_v35 }
 0x102   : > { %3610 = vmatprep.subr.bf16.mxu1 %v4869_v41  ;;  %v660_v37 = vld [vmem:[#allocation4 + $0xca8] sm:$0xff] }
 0x103   : > { %3568 = vmatpush2.bf16.msra.mxu0 %v4740_v48  ;;  %v5069_v41 = vcombine.high %v656_v36, %v660_v37  ;;  %v520_v42 = vld [vmem:[#allocation4 + $0x848] sm:$0xff]  ;;  %v4940_v48 = vcombine.low %v528_v34, %v532_v35 }
 0x104   : > { %3569 = vmatprep.subr.bf16.mxu0 %v4733_v50  ;;  %v524_v43 = vld [vmem:[#allocation4 + $0x868] sm:$0xff] }
 0x105   : > { %3611 = vmatpush2.bf16.msra.mxu1 %v4868_v49  ;;  %v648_v45 = vld [vmem:[#allocation4 + $0xc48] sm:$0xff]  ;;  %v5068_v49 = vcombine.low %v656_v36, %v660_v37  ;;  %v4933_v50 = vcombine.high %v520_v42, %v524_v43 }
 0x106   : > { %3612 = vmatprep.subr.bf16.mxu1 %v4861_v51  ;;  %v652_v46 = vld [vmem:[#allocation4 + $0xc68] sm:$0xff] }
 0x107   : > { %3570 = vmatpush2.bf16.msra.mxu0 %v4732_v56  ;;  %v5061_v51 = vcombine.high %v648_v45, %v652_v46  ;;  %v512_v52 = vld [vmem:[#allocation4 + $0x808] sm:$0xff]  ;;  %v4932_v56 = vcombine.low %v520_v42, %v524_v43 }
 0x108   : > { %3625 = vmatprep.subr.bf16.mxu0 %v4981_v28  ;;  %v516_v53 = vld [vmem:[#allocation4 + $0x828] sm:$0xff] }
 0x109   : > { %3613 = vmatpush2.bf16.msra.mxu1 %v4860_v27  ;;  %v640_v23 = vld [vmem:[#allocation4 + $0xc08] sm:$0xff]  ;;  %v5060_v27 = vcombine.low %v648_v45, %v652_v46  ;;  %v4925_v28 = vcombine.high %v512_v52, %v516_v53 }
 0x10a   : > { %3668 = vmatprep.subr.bf16.mxu1 %v5109_v57  ;;  %3572 = vmatmul.mubr.bf16.vlgmr.msra.gmra.mxu0 %v5697_v21  ;;  %v644_v24 = vld [vmem:[#allocation4 + $0xc28] sm:$0xff] }
 0x10b   : > { %3626 = vmatpush1.bf16.msra.mxu0 %v4980_v2  ;;  %3657 = vmatprep.mubr.bf16.mxu0 %v5717_v32  ;;  %v5053_v57 = vcombine.high %v640_v23, %v644_v24  ;;  %v632_v61 = vld [vmem:[#allocation4 + $0xbc8] sm:$0xff]  ;;  %v4924_v2 = vcombine.low %v512_v52, %v516_v53 }
 0x10c   : > { %3615 = vmatmul.mubr.bf16.vlgmr.msra.gmra.mxu1 %v5707_v25  ;;  %3627 = vmatprep.subr.bf16.mxu0 %v4973_v4  ;;  %v636_v62 = vld [vmem:[#allocation4 + $0xbe8] sm:$0xff] }
 0x10d   : > { %3669 = vmatpush1.bf16.msra.mxu1 %v5108_v3  ;;  %3700 = vmatprep.mubr.bf16.mxu1 %v5722_v33  ;;  %v760_v0 = vld [vmem:[#allocation4 + $0xfc8] sm:$0xff]  ;;  %v5052_v3 = vcombine.low %v640_v23, %v644_v24  ;;  %v5045_v4 = vcombine.high %v632_v61, %v636_v62 }
 0x10e   : > { %3670 = vmatprep.subr.bf16.mxu1 %v5101_v5  ;;  %v764_v1 = vld [vmem:[#allocation4 + $0xfe8] sm:$0xff] }
 0x10f   : > { %3628 = vmatpush1.bf16.msra.mxu0 %v4972_v10  ;;  %v5173_v5 = vcombine.high %v760_v0, %v764_v1  ;;  %v624_v6 = vld [vmem:[#allocation4 + $0xb88] sm:$0xff]  ;;  %v5044_v10 = vcombine.low %v632_v61, %v636_v62 }
 0x110   : > { %3629 = vmatprep.subr.bf16.mxu0 %v4965_v12  ;;  %v628_v7 = vld [vmem:[#allocation4 + $0xba8] sm:$0xff] }
 0x111   : > { %3671 = vmatpush1.bf16.msra.mxu1 %v5100_v11  ;;  %v752_v8 = vld [vmem:[#allocation4 + $0xf88] sm:$0xff]  ;;  %v5172_v11 = vcombine.low %v760_v0, %v764_v1  ;;  %v5037_v12 = vcombine.high %v624_v6, %v628_v7 }
 0x112   : > { %3672 = vmatprep.subr.bf16.mxu1 %v5093_v13  ;;  %v756_v9 = vld [vmem:[#allocation4 + $0xfa8] sm:$0xff] }
 0x113   : > { %3630 = vmatpush1.bf16.msra.mxu0 %v4964_v18  ;;  %v5165_v13 = vcombine.high %v752_v8, %v756_v9  ;;  %v616_v14 = vld [vmem:[#allocation4 + $0xb48] sm:$0xff]  ;;  %v5036_v18 = vcombine.low %v624_v6, %v628_v7  ;;  %v313_v6 = vld [vmem:[#allocation4 + $0x1d0] sm:$0xff] }
 0x114   : > { %3631 = vmatprep.subr.bf16.mxu0 %v4957_v20  ;;  %v620_v15 = vld [vmem:[#allocation4 + $0xb68] sm:$0xff]  ;;  %v317_v7 = vld [vmem:[#allocation4 + $0x1f0] sm:$0xff] }
 0x115   : > { %3673 = vmatpush1.bf16.msra.mxu1 %v5092_v19  ;;  %v744_v16 = vld [vmem:[#allocation4 + $0xf48] sm:$0xff]  ;;  %v5164_v19 = vcombine.low %v752_v8, %v756_v9  ;;  %v5029_v20 = vcombine.high %v616_v14, %v620_v15  ;;  %v441_v8 = vld [vmem:[#allocation4 + $0x5d0] sm:$0xff] }
 0x116   : > { %3674 = vmatprep.subr.bf16.mxu1 %v5085_v22  ;;  %v748_v17 = vld [vmem:[#allocation4 + $0xf68] sm:$0xff]  ;;  %v445_v9 = vld [vmem:[#allocation4 + $0x5f0] sm:$0xff] }
 0x117   : > { %3632 = vmatpush1.bf16.msra.mxu0 %v4956_v30  ;;  %v5157_v22 = vcombine.high %v744_v16, %v748_v17  ;;  %v608_v26 = vld [vmem:[#allocation4 + $0xb08] sm:$0xff]  ;;  %v5028_v30 = vcombine.low %v616_v14, %v620_v15  ;;  %v305_v14 = vld [vmem:[#allocation4 + $0x190] sm:$0xff] }
 0x118   : > { %3633 = vmatprep.subr.bf16.mxu0 %v4949_v59  ;;  %v612_v29 = vld [vmem:[#allocation4 + $0xb28] sm:$0xff]  ;;  %v309_v15 = vld [vmem:[#allocation4 + $0x1b0] sm:$0xff] }
 0x119   : > { %3675 = vmatpush1.bf16.msra.mxu1 %v5084_v31  ;;  %v736_v54 = vld [vmem:[#allocation4 + $0xf08] sm:$0xff]  ;;  %v5156_v31 = vcombine.low %v744_v16, %v748_v17  ;;  %v5021_v59 = vcombine.high %v608_v26, %v612_v29  ;;  %v433_v16 = vld [vmem:[#allocation4 + $0x590] sm:$0xff] }
 0x11a   : > { %3676 = vmatprep.subr.bf16.mxu1 %v5077_v60  ;;  %v740_v55 = vld [vmem:[#allocation4 + $0xf28] sm:$0xff]  ;;  %v437_v17 = vld [vmem:[#allocation4 + $0x5b0] sm:$0xff] }
 0x11b   : > { %3634 = vmatpush1.bf16.msra.mxu0 %v4948_v38  ;;  %v5149_v60 = vcombine.high %v736_v54, %v740_v55  ;;  %v600_v34 = vld [vmem:[#allocation4 + $0xac8] sm:$0xff]  ;;  %v5020_v38 = vcombine.low %v608_v26, %v612_v29  ;;  %v297_v26 = vld [vmem:[#allocation4 + $0x150] sm:$0xff] }
 0x11c   : > { %3635 = vmatprep.subr.bf16.mxu0 %v4941_v40  ;;  %v604_v35 = vld [vmem:[#allocation4 + $0xae8] sm:$0xff]  ;;  %v301_v29 = vld [vmem:[#allocation4 + $0x170] sm:$0xff] }
 0x11d   : > { %3677 = vmatpush1.bf16.msra.mxu1 %v5076_v39  ;;  %v728_v36 = vld [vmem:[#allocation4 + $0xec8] sm:$0xff]  ;;  %v5148_v39 = vcombine.low %v736_v54, %v740_v55  ;;  %v5013_v40 = vcombine.high %v600_v34, %v604_v35  ;;  %v425_v54 = vld [vmem:[#allocation4 + $0x550] sm:$0xff] }
 0x11e   : > { %3678 = vmatprep.subr.bf16.mxu1 %v5069_v41  ;;  %v732_v37 = vld [vmem:[#allocation4 + $0xee8] sm:$0xff]  ;;  %v429_v55 = vld [vmem:[#allocation4 + $0x570] sm:$0xff] }
 0x11f   : > { %3636 = vmatpush1.bf16.msra.mxu0 %v4940_v48  ;;  %v5141_v41 = vcombine.high %v728_v36, %v732_v37  ;;  %v592_v42 = vld [vmem:[#allocation4 + $0xa88] sm:$0xff]  ;;  %v5012_v48 = vcombine.low %v600_v34, %v604_v35  ;;  %v289_v34 = vld [vmem:[#allocation4 + $0x110] sm:$0xff] }
 0x120   : > { %3637 = vmatprep.subr.bf16.mxu0 %v4933_v50  ;;  %v596_v43 = vld [vmem:[#allocation4 + $0xaa8] sm:$0xff]  ;;  %v293_v35 = vld [vmem:[#allocation4 + $0x130] sm:$0xff] }
 0x121   : > { %3679 = vmatpush1.bf16.msra.mxu1 %v5068_v49  ;;  %v720_v45 = vld [vmem:[#allocation4 + $0xe88] sm:$0xff]  ;;  %v5140_v49 = vcombine.low %v728_v36, %v732_v37  ;;  %v5005_v50 = vcombine.high %v592_v42, %v596_v43  ;;  %v417_v36 = vld [vmem:[#allocation4 + $0x510] sm:$0xff] }
 0x122   : > { %3680 = vmatprep.subr.bf16.mxu1 %v5061_v51  ;;  %v724_v46 = vld [vmem:[#allocation4 + $0xea8] sm:$0xff]  ;;  %v421_v37 = vld [vmem:[#allocation4 + $0x530] sm:$0xff] }
 0x123   : > { %3638 = vmatpush1.bf16.msra.mxu0 %v4932_v56  ;;  %v5133_v51 = vcombine.high %v720_v45, %v724_v46  ;;  %v584_v52 = vld [vmem:[#allocation4 + $0xa48] sm:$0xff]  ;;  %v5004_v56 = vcombine.low %v592_v42, %v596_v43  ;;  %v281_v42 = vld [vmem:[#allocation4 + $0xd0] sm:$0xff] }
 0x124   : > { %3639 = vmatprep.subr.bf16.mxu0 %v4925_v28  ;;  %v588_v53 = vld [vmem:[#allocation4 + $0xa68] sm:$0xff]  ;;  %v285_v43 = vld [vmem:[#allocation4 + $0xf0] sm:$0xff] }
 0x125   : > { %3681 = vmatpush1.bf16.msra.mxu1 %v5060_v27  ;;  %v712_v23 = vld [vmem:[#allocation4 + $0xe48] sm:$0xff]  ;;  %v5132_v27 = vcombine.low %v720_v45, %v724_v46  ;;  %v4997_v28 = vcombine.high %v584_v52, %v588_v53  ;;  %v409_v45 = vld [vmem:[#allocation4 + $0x4d0] sm:$0xff] }
 0x126   : > { %3682 = vmatprep.subr.bf16.mxu1 %v5053_v57  ;;  %v716_v24 = vld [vmem:[#allocation4 + $0xe68] sm:$0xff]  ;;  %v413_v46 = vld [vmem:[#allocation4 + $0x4f0] sm:$0xff] }
 0x127   : > { %3640 = vmatpush1.bf16.msra.mxu0 %v4924_v2  ;;  %v5125_v57 = vcombine.high %v712_v23, %v716_v24  ;;  %v576_v61 = vld [vmem:[#allocation4 + $0xa08] sm:$0xff]  ;;  %v4996_v2 = vcombine.low %v584_v52, %v588_v53  ;;  %v273_v52 = vld [vmem:[#allocation4 + $0x90] sm:$0xff] }
 0x128   : > { %3641 = vmatprep.subr.bf16.mxu0 %v5045_v4  ;;  %v580_v62 = vld [vmem:[#allocation4 + $0xa28] sm:$0xff]  ;;  %v277_v53 = vld [vmem:[#allocation4 + $0xb0] sm:$0xff] }
 0x129   : > { %3683 = vmatpush1.bf16.msra.mxu1 %v5052_v3  ;;  %v704_v0 = vld [vmem:[#allocation4 + $0xe08] sm:$0xff]  ;;  %v5124_v3 = vcombine.low %v712_v23, %v716_v24  ;;  %v4989_v4 = vcombine.high %v576_v61, %v580_v62  ;;  %v401_v23 = vld [vmem:[#allocation4 + $0x490] sm:$0xff] }
 0x12a   : > { %3684 = vmatprep.subr.bf16.mxu1 %v5173_v5  ;;  %v708_v1 = vld [vmem:[#allocation4 + $0xe28] sm:$0xff]  ;;  %v405_v24 = vld [vmem:[#allocation4 + $0x4b0] sm:$0xff] }
 0x12b   : > { %3642 = vmatpush2.bf16.msra.mxu0 %v5044_v10  ;;  %v5117_v5 = vcombine.high %v704_v0, %v708_v1  ;;  %v4988_v10 = vcombine.low %v576_v61, %v580_v62  ;;  %v265_v61 = vld [vmem:[#allocation4 + $0x50] sm:$0xff] }
 0x12c   : > { %3643 = vmatprep.subr.bf16.mxu0 %v5037_v12  ;;  %v4727_v12 = vcombine.high %v313_v6, %v317_v7  ;;  %v269_v62 = vld [vmem:[#allocation4 + $0x70] sm:$0xff] }
 0x12d   : > { %3685 = vmatpush2.bf16.msra.mxu1 %v5172_v11  ;;  %v5116_v11 = vcombine.low %v704_v0, %v708_v1  ;;  %v393_v0 = vld [vmem:[#allocation4 + $0x450] sm:$0xff] }
 0x12e   : > { %3686 = vmatprep.subr.bf16.mxu1 %v5165_v13  ;;  %v4855_v13 = vcombine.high %v441_v8, %v445_v9  ;;  %v397_v1 = vld [vmem:[#allocation4 + $0x470] sm:$0xff] }
 0x12f   : > { %3644 = vmatpush2.bf16.msra.mxu0 %v5036_v18  ;;  %v4726_v18 = vcombine.low %v313_v6, %v317_v7  ;;  %v257_v6 = vld [vmem:[#allocation4 + $0x10] sm:$0xff] }
 0x130   : > { %3645 = vmatprep.subr.bf16.mxu0 %v5029_v20  ;;  %v4719_v20 = vcombine.high %v305_v14, %v309_v15  ;;  %v261_v7 = vld [vmem:[#allocation4 + $0x30] sm:$0xff] }
 0x131   : > { %3687 = vmatpush2.bf16.msra.mxu1 %v5164_v19  ;;  %v4854_v19 = vcombine.low %v441_v8, %v445_v9  ;;  %v385_v8 = vld [vmem:[#allocation4 + $0x410] sm:$0xff] }
 0x132   : > { %3688 = vmatprep.subr.bf16.mxu1 %v5157_v22  ;;  %v4847_v22 = vcombine.high %v433_v16, %v437_v17  ;;  %v389_v9 = vld [vmem:[#allocation4 + $0x430] sm:$0xff] }
 0x133   : > { %3646 = vmatpush2.bf16.msra.mxu0 %v5028_v30  ;;  %v4718_v30 = vcombine.low %v305_v14, %v309_v15  ;;  %v377_v14 = vld [vmem:[#allocation4 + $0x3d0] sm:$0xff] }
 0x134   : > { %3647 = vmatprep.subr.bf16.mxu0 %v5021_v59  ;;  %v4711_v59 = vcombine.high %v297_v26, %v301_v29  ;;  %v381_v15 = vld [vmem:[#allocation4 + $0x3f0] sm:$0xff] }
 0x135   : > { %3689 = vmatpush2.bf16.msra.mxu1 %v5156_v31  ;;  %v4846_v31 = vcombine.low %v433_v16, %v437_v17  ;;  %v505_v16 = vld [vmem:[#allocation4 + $0x7d0] sm:$0xff] }
 0x136   : > { %3690 = vmatprep.subr.bf16.mxu1 %v5149_v60  ;;  %v4839_v60 = vcombine.high %v425_v54, %v429_v55  ;;  %v509_v17 = vld [vmem:[#allocation4 + $0x7f0] sm:$0xff] }
 0x137   : > { %3648 = vmatpush2.bf16.msra.mxu0 %v5020_v38  ;;  %v4710_v38 = vcombine.low %v297_v26, %v301_v29  ;;  %v369_v26 = vld [vmem:[#allocation4 + $0x390] sm:$0xff] }
 0x138   : > { %3649 = vmatprep.subr.bf16.mxu0 %v5013_v40  ;;  %v4703_v40 = vcombine.high %v289_v34, %v293_v35  ;;  %v373_v29 = vld [vmem:[#allocation4 + $0x3b0] sm:$0xff] }
 0x139   : > { %3691 = vmatpush2.bf16.msra.mxu1 %v5148_v39  ;;  %v4838_v39 = vcombine.low %v425_v54, %v429_v55  ;;  %v497_v54 = vld [vmem:[#allocation4 + $0x790] sm:$0xff] }
 0x13a   : > { %3692 = vmatprep.subr.bf16.mxu1 %v5141_v41  ;;  %v4831_v41 = vcombine.high %v417_v36, %v421_v37  ;;  %v501_v55 = vld [vmem:[#allocation4 + $0x7b0] sm:$0xff] }
 0x13b   : > { %3650 = vmatpush2.bf16.msra.mxu0 %v5012_v48  ;;  %v4702_v48 = vcombine.low %v289_v34, %v293_v35  ;;  %v361_v34 = vld [vmem:[#allocation4 + $0x350] sm:$0xff] }
 0x13c   : > { %3651 = vmatprep.subr.bf16.mxu0 %v5005_v50  ;;  %v4695_v50 = vcombine.high %v281_v42, %v285_v43  ;;  %v365_v35 = vld [vmem:[#allocation4 + $0x370] sm:$0xff] }
 0x13d   : > { %3693 = vmatpush2.bf16.msra.mxu1 %v5140_v49  ;;  %v4830_v49 = vcombine.low %v417_v36, %v421_v37  ;;  %v489_v36 = vld [vmem:[#allocation4 + $0x750] sm:$0xff] }
 0x13e   : > { %3694 = vmatprep.subr.bf16.mxu1 %v5133_v51  ;;  %v4823_v51 = vcombine.high %v409_v45, %v413_v46  ;;  %v493_v37 = vld [vmem:[#allocation4 + $0x770] sm:$0xff] }
 0x13f   : > { %3652 = vmatpush2.bf16.msra.mxu0 %v5004_v56  ;;  %v4694_v56 = vcombine.low %v281_v42, %v285_v43  ;;  %v353_v42 = vld [vmem:[#allocation4 + $0x310] sm:$0xff] }
 0x140   : > { %3653 = vmatprep.subr.bf16.mxu0 %v4997_v28  ;;  %v4687_v28 = vcombine.high %v273_v52, %v277_v53  ;;  %v357_v43 = vld [vmem:[#allocation4 + $0x330] sm:$0xff] }
 0x141   : > { %3695 = vmatpush2.bf16.msra.mxu1 %v5132_v27  ;;  %v4822_v27 = vcombine.low %v409_v45, %v413_v46  ;;  %v481_v45 = vld [vmem:[#allocation4 + $0x710] sm:$0xff] }
 0x142   : > { %3696 = vmatprep.subr.bf16.mxu1 %v5125_v57  ;;  %v4815_v57 = vcombine.high %v401_v23, %v405_v24  ;;  %v485_v46 = vld [vmem:[#allocation4 + $0x730] sm:$0xff] }
 0x143   : > { %3654 = vmatpush2.bf16.msra.mxu0 %v4996_v2  ;;  %v4686_v2 = vcombine.low %v273_v52, %v277_v53  ;;  %v345_v52 = vld [vmem:[#allocation4 + $0x2d0] sm:$0xff] }
 0x144   : > { %3655 = vmatprep.subr.bf16.mxu0 %v4989_v4  ;;  %v4679_v4 = vcombine.high %v265_v61, %v269_v62  ;;  %v349_v53 = vld [vmem:[#allocation4 + $0x2f0] sm:$0xff] }
 0x145   : > { %3697 = vmatpush2.bf16.msra.mxu1 %v5124_v3  ;;  %v4814_v3 = vcombine.low %v401_v23, %v405_v24  ;;  %v473_v23 = vld [vmem:[#allocation4 + $0x6d0] sm:$0xff] }
 0x146   : > { %3698 = vmatprep.subr.bf16.mxu1 %v5117_v5  ;;  %v4807_v5 = vcombine.high %v393_v0, %v397_v1  ;;  %v477_v24 = vld [vmem:[#allocation4 + $0x6f0] sm:$0xff] }
 0x147   : > { %3656 = vmatpush2.bf16.msra.mxu0 %v4988_v10  ;;  %v4678_v10 = vcombine.low %v265_v61, %v269_v62  ;;  %v337_v61 = vld [vmem:[#allocation4 + $0x290] sm:$0xff] }
 0x148   : > { %3711 = vmatprep.subr.bf16.mxu0 %v4727_v12  ;;  %v4671_v12 = vcombine.high %v257_v6, %v261_v7  ;;  %v341_v62 = vld [vmem:[#allocation4 + $0x2b0] sm:$0xff] }
 0x149   : > { %3699 = vmatpush2.bf16.msra.mxu1 %v5116_v11  ;;  %v4806_v11 = vcombine.low %v393_v0, %v397_v1  ;;  %v465_v0 = vld [vmem:[#allocation4 + $0x690] sm:$0xff] }
 0x14a   : > { %3754 = vmatprep.subr.bf16.mxu1 %v4855_v13  ;;  %3658 = vmatmul.mubr.bf16.vlgmr.msra.gmra.mxu0 %v5729_v44  ;;  %v4799_v13 = vcombine.high %v385_v8, %v389_v9  ;;  %v469_v1 = vld [vmem:[#allocation4 + $0x6b0] sm:$0xff] }
 0x14b   : > { %3712 = vmatpush1.bf16.msra.mxu0 %v4726_v18  ;;  %3743 = vmatprep.mubr.bf16.mxu0 %v5681_v58  ;;  %v4670_v18 = vcombine.low %v257_v6, %v261_v7  ;;  %v329_v6 = vld [vmem:[#allocation4 + $0x250] sm:$0xff] }
 0x14c   : > { %3701 = vmatmul.mubr.bf16.vlgmr.msra.gmra.mxu1 %v5733_v47  ;;  %3713 = vmatprep.subr.bf16.mxu0 %v4719_v20  ;;  %v4791_v20 = vcombine.high %v377_v14, %v381_v15  ;;  %v333_v7 = vld [vmem:[#allocation4 + $0x270] sm:$0xff] }
 0x14d   : > { %3755 = vmatpush1.bf16.msra.mxu1 %v4854_v19  ;;  %3786 = vmatprep.mubr.bf16.mxu1 %v5691_v63  ;;  %v4798_v19 = vcombine.low %v385_v8, %v389_v9  ;;  %v457_v8 = vld [vmem:[#allocation4 + $0x650] sm:$0xff] }
 0x14e   : > { %3756 = vmatprep.subr.bf16.mxu1 %v4847_v22  ;;  %v4919_v22 = vcombine.high %v505_v16, %v509_v17  ;;  %v461_v9 = vld [vmem:[#allocation4 + $0x670] sm:$0xff] }
 0x14f   : > { %3714 = vmatpush1.bf16.msra.mxu0 %v4718_v30  ;;  %v4790_v30 = vcombine.low %v377_v14, %v381_v15  ;;  %v321_v14 = vld [vmem:[#allocation4 + $0x210] sm:$0xff] }
 0x150   : > { %3715 = vmatprep.subr.bf16.mxu0 %v4711_v59  ;;  %v4783_v59 = vcombine.high %v369_v26, %v373_v29  ;;  %v325_v15 = vld [vmem:[#allocation4 + $0x230] sm:$0xff] }
 0x151   : > { %3757 = vmatpush1.bf16.msra.mxu1 %v4846_v31  ;;  %v4918_v31 = vcombine.low %v505_v16, %v509_v17  ;;  %v449_v16 = vld [vmem:[#allocation4 + $0x610] sm:$0xff] }
 0x152   : > { %3758 = vmatprep.subr.bf16.mxu1 %v4839_v60  ;;  %v4911_v60 = vcombine.high %v497_v54, %v501_v55  ;;  %v453_v17 = vld [vmem:[#allocation4 + $0x630] sm:$0xff] }
 0x153   : > { %3716 = vmatpush1.bf16.msra.mxu0 %v4710_v38  ;;  %v4782_v38 = vcombine.low %v369_v26, %v373_v29  ;;  %v569_v26 = vld [vmem:[#allocation4 + $0x9d0] sm:$0xff] }
 0x154   : > { %3717 = vmatprep.subr.bf16.mxu0 %v4703_v40  ;;  %v4775_v40 = vcombine.high %v361_v34, %v365_v35  ;;  %v573_v29 = vld [vmem:[#allocation4 + $0x9f0] sm:$0xff] }
 0x155   : > { %3759 = vmatpush1.bf16.msra.mxu1 %v4838_v39  ;;  %v4910_v39 = vcombine.low %v497_v54, %v501_v55  ;;  %v697_v54 = vld [vmem:[#allocation4 + $0xdd0] sm:$0xff] }
 0x156   : > { %3760 = vmatprep.subr.bf16.mxu1 %v4831_v41  ;;  %v4903_v41 = vcombine.high %v489_v36, %v493_v37  ;;  %v701_v55 = vld [vmem:[#allocation4 + $0xdf0] sm:$0xff] }
 0x157   : > { %3718 = vmatpush1.bf16.msra.mxu0 %v4702_v48  ;;  %v4774_v48 = vcombine.low %v361_v34, %v365_v35  ;;  %v561_v34 = vld [vmem:[#allocation4 + $0x990] sm:$0xff] }
 0x158   : > { %3719 = vmatprep.subr.bf16.mxu0 %v4695_v50  ;;  %v4767_v50 = vcombine.high %v353_v42, %v357_v43  ;;  %v565_v35 = vld [vmem:[#allocation4 + $0x9b0] sm:$0xff] }
 0x159   : > { %3761 = vmatpush1.bf16.msra.mxu1 %v4830_v49  ;;  %v4902_v49 = vcombine.low %v489_v36, %v493_v37  ;;  %v689_v36 = vld [vmem:[#allocation4 + $0xd90] sm:$0xff] }
 0x15a   : > { %3762 = vmatprep.subr.bf16.mxu1 %v4823_v51  ;;  %v4895_v51 = vcombine.high %v481_v45, %v485_v46  ;;  %v693_v37 = vld [vmem:[#allocation4 + $0xdb0] sm:$0xff] }
 0x15b   : > { %3720 = vmatpush1.bf16.msra.mxu0 %v4694_v56  ;;  %v4766_v56 = vcombine.low %v353_v42, %v357_v43  ;;  %v553_v42 = vld [vmem:[#allocation4 + $0x950] sm:$0xff] }
 0x15c   : > { %3721 = vmatprep.subr.bf16.mxu0 %v4687_v28  ;;  %v4759_v28 = vcombine.high %v345_v52, %v349_v53  ;;  %v557_v43 = vld [vmem:[#allocation4 + $0x970] sm:$0xff] }
 0x15d   : > { %3763 = vmatpush1.bf16.msra.mxu1 %v4822_v27  ;;  %v4894_v27 = vcombine.low %v481_v45, %v485_v46  ;;  %v681_v45 = vld [vmem:[#allocation4 + $0xd50] sm:$0xff] }
 0x15e   : > { %3764 = vmatprep.subr.bf16.mxu1 %v4815_v57  ;;  %v4887_v57 = vcombine.high %v473_v23, %v477_v24  ;;  %v685_v46 = vld [vmem:[#allocation4 + $0xd70] sm:$0xff] }
 0x15f   : > { %3722 = vmatpush1.bf16.msra.mxu0 %v4686_v2  ;;  %v4758_v2 = vcombine.low %v345_v52, %v349_v53  ;;  %v545_v52 = vld [vmem:[#allocation4 + $0x910] sm:$0xff] }
 0x160   : > { %3723 = vmatprep.subr.bf16.mxu0 %v4679_v4  ;;  %v4751_v4 = vcombine.high %v337_v61, %v341_v62  ;;  %v549_v53 = vld [vmem:[#allocation4 + $0x930] sm:$0xff] }
 0x161   : > { %3765 = vmatpush1.bf16.msra.mxu1 %v4814_v3  ;;  %v4886_v3 = vcombine.low %v473_v23, %v477_v24  ;;  %v673_v23 = vld [vmem:[#allocation4 + $0xd10] sm:$0xff] }
 0x162   : > { %3766 = vmatprep.subr.bf16.mxu1 %v4807_v5  ;;  %v4879_v5 = vcombine.high %v465_v0, %v469_v1  ;;  %v677_v24 = vld [vmem:[#allocation4 + $0xd30] sm:$0xff] }
 0x163   : > { %3724 = vmatpush1.bf16.msra.mxu0 %v4678_v10  ;;  %v4750_v10 = vcombine.low %v337_v61, %v341_v62  ;;  %v537_v61 = vld [vmem:[#allocation4 + $0x8d0] sm:$0xff] }
 0x164   : > { %3725 = vmatprep.subr.bf16.mxu0 %v4671_v12  ;;  %v4743_v12 = vcombine.high %v329_v6, %v333_v7  ;;  %v541_v62 = vld [vmem:[#allocation4 + $0x8f0] sm:$0xff] }
 0x165   : > { %3767 = vmatpush1.bf16.msra.mxu1 %v4806_v11  ;;  %v4878_v11 = vcombine.low %v465_v0, %v469_v1  ;;  %v665_v0 = vld [vmem:[#allocation4 + $0xcd0] sm:$0xff] }
 0x166   : > { %3768 = vmatprep.subr.bf16.mxu1 %v4799_v13  ;;  %v4871_v13 = vcombine.high %v457_v8, %v461_v9  ;;  %v669_v1 = vld [vmem:[#allocation4 + $0xcf0] sm:$0xff] }
 0x167   : > { %3726 = vmatpush1.bf16.msra.mxu0 %v4670_v18  ;;  %v4742_v18 = vcombine.low %v329_v6, %v333_v7  ;;  %v529_v6 = vld [vmem:[#allocation4 + $0x890] sm:$0xff] }
 0x168   : > { %3727 = vmatprep.subr.bf16.mxu0 %v4791_v20  ;;  %v4735_v20 = vcombine.high %v321_v14, %v325_v15  ;;  %v533_v7 = vld [vmem:[#allocation4 + $0x8b0] sm:$0xff] }
 0x169   : > { %3769 = vmatpush1.bf16.msra.mxu1 %v4798_v19  ;;  %v4870_v19 = vcombine.low %v457_v8, %v461_v9  ;;  %v657_v8 = vld [vmem:[#allocation4 + $0xc90] sm:$0xff] }
 0x16a   : > { %3770 = vmatprep.subr.bf16.mxu1 %v4919_v22  ;;  %v4863_v22 = vcombine.high %v449_v16, %v453_v17  ;;  %v661_v9 = vld [vmem:[#allocation4 + $0xcb0] sm:$0xff] }
 0x16b   : > { %3728 = vmatpush2.bf16.msra.mxu0 %v4790_v30  ;;  %v4734_v30 = vcombine.low %v321_v14, %v325_v15  ;;  %v521_v14 = vld [vmem:[#allocation4 + $0x850] sm:$0xff] }
 0x16c   : > { %3729 = vmatprep.subr.bf16.mxu0 %v4783_v59  ;;  %v4983_v59 = vcombine.high %v569_v26, %v573_v29  ;;  %v525_v15 = vld [vmem:[#allocation4 + $0x870] sm:$0xff] }
 0x16d   : > { %3771 = vmatpush2.bf16.msra.mxu1 %v4918_v31  ;;  %v4862_v31 = vcombine.low %v449_v16, %v453_v17  ;;  %v649_v16 = vld [vmem:[#allocation4 + $0xc50] sm:$0xff] }
 0x16e   : > { %3772 = vmatprep.subr.bf16.mxu1 %v4911_v60  ;;  %v5111_v60 = vcombine.high %v697_v54, %v701_v55  ;;  %v653_v17 = vld [vmem:[#allocation4 + $0xc70] sm:$0xff] }
 0x16f   : > { %3730 = vmatpush2.bf16.msra.mxu0 %v4782_v38  ;;  %v4982_v38 = vcombine.low %v569_v26, %v573_v29  ;;  %v513_v26 = vld [vmem:[#allocation4 + $0x810] sm:$0xff] }
 0x170   : > { %3731 = vmatprep.subr.bf16.mxu0 %v4775_v40  ;;  %v4975_v40 = vcombine.high %v561_v34, %v565_v35  ;;  %v517_v29 = vld [vmem:[#allocation4 + $0x830] sm:$0xff] }
 0x171   : > { %3773 = vmatpush2.bf16.msra.mxu1 %v4910_v39  ;;  %v5110_v39 = vcombine.low %v697_v54, %v701_v55  ;;  %v641_v54 = vld [vmem:[#allocation4 + $0xc10] sm:$0xff] }
 0x172   : > { %3774 = vmatprep.subr.bf16.mxu1 %v4903_v41  ;;  %v5103_v41 = vcombine.high %v689_v36, %v693_v37  ;;  %v645_v55 = vld [vmem:[#allocation4 + $0xc30] sm:$0xff] }
 0x173   : > { %3732 = vmatpush2.bf16.msra.mxu0 %v4774_v48  ;;  %v4974_v48 = vcombine.low %v561_v34, %v565_v35  ;;  %v633_v34 = vld [vmem:[#allocation4 + $0xbd0] sm:$0xff] }
 0x174   : > { %3733 = vmatprep.subr.bf16.mxu0 %v4767_v50  ;;  %v4967_v50 = vcombine.high %v553_v42, %v557_v43  ;;  %v637_v35 = vld [vmem:[#allocation4 + $0xbf0] sm:$0xff] }
 0x175   : > { %3775 = vmatpush2.bf16.msra.mxu1 %v4902_v49  ;;  %v5102_v49 = vcombine.low %v689_v36, %v693_v37  ;;  %v761_v36 = vld [vmem:[#allocation4 + $0xfd0] sm:$0xff] }
 0x176   : > { %3776 = vmatprep.subr.bf16.mxu1 %v4895_v51  ;;  %v5095_v51 = vcombine.high %v681_v45, %v685_v46  ;;  %v765_v37 = vld [vmem:[#allocation4 + $0xff0] sm:$0xff] }
 0x177   : > { %3734 = vmatpush2.bf16.msra.mxu0 %v4766_v56  ;;  %v4966_v56 = vcombine.low %v553_v42, %v557_v43  ;;  %v625_v42 = vld [vmem:[#allocation4 + $0xb90] sm:$0xff] }
 0x178   : > { %3735 = vmatprep.subr.bf16.mxu0 %v4759_v28  ;;  %v4959_v28 = vcombine.high %v545_v52, %v549_v53  ;;  %v629_v43 = vld [vmem:[#allocation4 + $0xbb0] sm:$0xff] }
 0x179   : > { %3777 = vmatpush2.bf16.msra.mxu1 %v4894_v27  ;;  %v5094_v27 = vcombine.low %v681_v45, %v685_v46  ;;  %v753_v45 = vld [vmem:[#allocation4 + $0xf90] sm:$0xff] }
 0x17a   : > { %3778 = vmatprep.subr.bf16.mxu1 %v4887_v57  ;;  %v5087_v57 = vcombine.high %v673_v23, %v677_v24  ;;  %v757_v46 = vld [vmem:[#allocation4 + $0xfb0] sm:$0xff] }
 0x17b   : > { %3736 = vmatpush2.bf16.msra.mxu0 %v4758_v2  ;;  %v4958_v2 = vcombine.low %v545_v52, %v549_v53  ;;  %v617_v52 = vld [vmem:[#allocation4 + $0xb50] sm:$0xff] }
 0x17c   : > { %3737 = vmatprep.subr.bf16.mxu0 %v4751_v4  ;;  %v4951_v4 = vcombine.high %v537_v61, %v541_v62  ;;  %v621_v53 = vld [vmem:[#allocation4 + $0xb70] sm:$0xff] }
 0x17d   : > { %3779 = vmatpush2.bf16.msra.mxu1 %v4886_v3  ;;  %v5086_v3 = vcombine.low %v673_v23, %v677_v24  ;;  %v745_v23 = vld [vmem:[#allocation4 + $0xf50] sm:$0xff] }
 0x17e   : > { %3780 = vmatprep.subr.bf16.mxu1 %v4879_v5  ;;  %v5079_v5 = vcombine.high %v665_v0, %v669_v1  ;;  %v749_v24 = vld [vmem:[#allocation4 + $0xf70] sm:$0xff] }
 0x17f   : > { %3738 = vmatpush2.bf16.msra.mxu0 %v4750_v10  ;;  %v4950_v10 = vcombine.low %v537_v61, %v541_v62  ;;  %v609_v61 = vld [vmem:[#allocation4 + $0xb10] sm:$0xff] }
 0x180   : > { %3739 = vmatprep.subr.bf16.mxu0 %v4743_v12  ;;  %v4943_v12 = vcombine.high %v529_v6, %v533_v7  ;;  %v613_v62 = vld [vmem:[#allocation4 + $0xb30] sm:$0xff] }
 0x181   : > { %3781 = vmatpush2.bf16.msra.mxu1 %v4878_v11  ;;  %v5078_v11 = vcombine.low %v665_v0, %v669_v1  ;;  %v5751_v0 = vpop.f32.mrf.mxu0  ;;  %v737_v1 = vld [vmem:[#allocation4 + $0xf10] sm:$0xff] }
 0x182   : > { %3782 = vmatprep.subr.bf16.mxu1 %v4871_v13  ;;  %v5071_v13 = vcombine.high %v657_v8, %v661_v9 }
 0x183   : > { %3740 = vmatpush2.bf16.msra.mxu0 %v4742_v18  ;;  %v4942_v18 = vcombine.low %v529_v6, %v533_v7  ;;  %v5023_v6 = vcombine.high %v609_v61, %v613_v62 }
 0x184   : > { %3741 = vmatprep.subr.bf16.mxu0 %v4735_v20  ;;  %v4935_v20 = vcombine.high %v521_v14, %v525_v15 }
 0x185   : > { %3783 = vmatpush2.bf16.msra.mxu1 %v4870_v19  ;;  %v5070_v19 = vcombine.low %v657_v8, %v661_v9  ;;  %v601_v8 = vld [vmem:[#allocation4 + $0xad0] sm:$0xff] }
 0x186   : > { %3784 = vmatprep.subr.bf16.mxu1 %v4863_v22  ;;  %v5063_v22 = vcombine.high %v649_v16, %v653_v17  ;;  %v605_v9 = vld [vmem:[#allocation4 + $0xaf0] sm:$0xff] }
 0x187   : > { %3742 = vmatpush2.bf16.msra.mxu0 %v4734_v30  ;;  %v4934_v30 = vcombine.low %v521_v14, %v525_v15  ;;  %v5022_v14 = vcombine.low %v609_v61, %v613_v62 }
 0x188   : > { %3797 = vmatprep.subr.bf16.mxu0 %v4983_v59  ;;  %v4927_v59 = vcombine.high %v513_v26, %v517_v29 }
 0x189   : > { %3785 = vmatpush2.bf16.msra.mxu1 %v4862_v31  ;;  %v5062_v31 = vcombine.low %v649_v16, %v653_v17  ;;  %v5015_v16 = vcombine.high %v601_v8, %v605_v9 }
 0x18a   : > { %3840 = vmatprep.subr.bf16.mxu1 %v5111_v60  ;;  %3744 = vmatmul.mubr.bf16.vlgmr.msra.gmra.mxu0 %v5697_v21  ;;  %v5055_v60 = vcombine.high %v641_v54, %v645_v55 }
 0x18b   : > { %3798 = vmatpush1.bf16.msra.mxu0 %v4982_v38  ;;  %3829 = vmatprep.mubr.bf16.mxu0 %v5717_v32  ;;  %v4926_v38 = vcombine.low %v513_v26, %v517_v29  ;;  %v725_v26 = vld [vmem:[#allocation4 + $0xeb0] sm:$0xff] }
 0x18c   : > { %3787 = vmatmul.mubr.bf16.vlgmr.msra.gmra.mxu1 %v5707_v25  ;;  %3799 = vmatprep.subr.bf16.mxu0 %v4975_v40  ;;  %v5047_v40 = vcombine.high %v633_v34, %v637_v35 }
 0x18d   : > { %3841 = vmatpush1.bf16.msra.mxu1 %v5110_v39  ;;  %3872 = vmatprep.mubr.bf16.mxu1 %v5722_v33  ;;  %v5054_v39 = vcombine.low %v641_v54, %v645_v55  ;;  %v5014_v54 = vcombine.low %v601_v8, %v605_v9  ;;  %v434_v8 = vld [vmem:[#allocation4 + $0x598] sm:$0xff] }
 0x18e   : > { %3842 = vmatprep.subr.bf16.mxu1 %v5103_v41  ;;  %v5175_v41 = vcombine.high %v761_v36, %v765_v37  ;;  %v438_v9 = vld [vmem:[#allocation4 + $0x5b8] sm:$0xff] }
 0x18f   : > { %3800 = vmatpush1.bf16.msra.mxu0 %v4974_v48  ;;  %v5046_v48 = vcombine.low %v633_v34, %v637_v35  ;;  %v713_v35 = vld [vmem:[#allocation4 + $0xe50] sm:$0xff] }
 0x190   : > { %3801 = vmatprep.subr.bf16.mxu0 %v4967_v50  ;;  %v5039_v50 = vcombine.high %v625_v42, %v629_v43 }
 0x191   : > { %3843 = vmatpush1.bf16.msra.mxu1 %v5102_v49  ;;  %v5174_v49 = vcombine.low %v761_v36, %v765_v37  ;;  %v717_v36 = vld [vmem:[#allocation4 + $0xe70] sm:$0xff] }
 0x192   : > { %3844 = vmatprep.subr.bf16.mxu1 %v5095_v51  ;;  %v5167_v51 = vcombine.high %v753_v45, %v757_v46 }
 0x193   : > { %3802 = vmatpush1.bf16.msra.mxu0 %v4966_v56  ;;  %v5038_v56 = vcombine.low %v625_v42, %v629_v43  ;;  %v5127_v43 = vcombine.high %v713_v35, %v717_v36 }
 0x194   : > { %3803 = vmatprep.subr.bf16.mxu0 %v4959_v28  ;;  %v5031_v28 = vcombine.high %v617_v52, %v621_v53 }
 0x195   : > { %3845 = vmatpush1.bf16.msra.mxu1 %v5094_v27  ;;  %v5166_v27 = vcombine.low %v753_v45, %v757_v46  ;;  %v577_v45 = vld [vmem:[#allocation4 + $0xa10] sm:$0xff] }
 0x196   : > { %3846 = vmatprep.subr.bf16.mxu1 %v5087_v57  ;;  %v5159_v57 = vcombine.high %v745_v23, %v749_v24  ;;  %v581_v46 = vld [vmem:[#allocation4 + $0xa30] sm:$0xff] }
 0x197   : > { %3804 = vmatpush1.bf16.msra.mxu0 %v4958_v2  ;;  %v741_v2 = vld [vmem:[#allocation4 + $0xf30] sm:$0xff]  ;;  %v4990_v61 = vcombine.low %v577_v45, %v581_v46 }
 0x198   : > { %3805 = vmatprep.subr.bf16.mxu0 %v4951_v4  ;;  %v5030_v4 = vcombine.low %v617_v52, %v621_v53  ;;  %v5151_v7 = vcombine.high %v737_v1, %v741_v2  ;;  %v5150_v15 = vcombine.low %v737_v1, %v741_v2  ;;  %v5126_v52 = vcombine.low %v713_v35, %v717_v36 }
 0x199   : > { %3847 = vmatpush1.bf16.msra.mxu1 %v5086_v3  ;;  %v5753_v3 = vpop.f32.mrf.mxu1  ;;  %v4991_v53 = vcombine.high %v577_v45, %v581_v46  ;;  %v418_v46 = vld [vmem:[#allocation4 + $0x518] sm:$0xff] }
 0x19a   : > { %3848 = vmatprep.subr.bf16.mxu1 %v5079_v5  ;;  %v5158_v5 = vcombine.low %v745_v23, %v749_v24 }
 0x19b   : > { %3806 = vmatpush1.bf16.msra.mxu0 %v4950_v10  ;;  %v5755_v10 = vpop.f32.mrf.mxu0 }
 0x19c   : > { %3807 = vmatprep.subr.bf16.mxu0 %v4943_v12  ;;  %v733_v12 = vld [vmem:[#allocation4 + $0xef0] sm:$0xff] }
 0x19d   : > { %3849 = vmatpush1.bf16.msra.mxu1 %v5078_v11  ;;  %v729_v11 = vld [vmem:[#allocation4 + $0xed0] sm:$0xff] }
 0x19e   : > { %3850 = vmatprep.subr.bf16.mxu1 %v5071_v13  ;;  %v5757_v13 = vpop.f32.mrf.mxu1  ;;  %v5143_v17 = vcombine.high %v729_v11, %v733_v12  ;;  %v5142_v55 = vcombine.low %v729_v11, %v733_v12 }
 0x19f   : > { %3808 = vmatpush1.bf16.msra.mxu0 %v4942_v18  ;;  %v593_v18 = vld [vmem:[#allocation4 + $0xa90] sm:$0xff] }
 0x1a0   : > { %3809 = vmatprep.subr.bf16.mxu0 %v4935_v20  ;;  %v5759_v20 = vpop.f32.mrf.mxu0  ;;  %v5761_v29 = vpop.f32.mrf.mxu1 }
 0x1a1   : > { %3851 = vmatpush1.bf16.msra.mxu1 %v5070_v19  ;;  %v597_v19 = vld [vmem:[#allocation4 + $0xab0] sm:$0xff] }
 0x1a2   : > { %3852 = vmatprep.subr.bf16.mxu1 %v5063_v22  ;;  %v721_v22 = vld [vmem:[#allocation4 + $0xe90] sm:$0xff]  ;;  %v5763_v34 = vpop.f32.mrf.mxu0  ;;  %v5765_v37 = vpop.f32.mrf.mxu1 }
 0x1a3   : > { %3810 = vmatpush1.bf16.msra.mxu0 %v4934_v30  ;;  %v5007_v30 = vcombine.high %v593_v18, %v597_v19 }
 0x1a4   : > { %3811 = vmatprep.subr.bf16.mxu0 %v4927_v59  ;;  %v585_v59 = vld [vmem:[#allocation4 + $0xa50] sm:$0xff]  ;;  %v5769_v42 = vpop.f32.mrf.mxu1 }
 0x1a5   : > { %3853 = vmatpush1.bf16.msra.mxu1 %v5062_v31  ;;  %v5135_v31 = vcombine.high %v721_v22, %v725_v26 }
 0x1a6   : > { %3854 = vmatprep.subr.bf16.mxu1 %v5055_v60  ;;  %v589_v60 = vld [vmem:[#allocation4 + $0xa70] sm:$0xff]  ;;  %v5773_v23 = vpop.f32.mrf.mxu1 }
 0x1a7   : > { %3812 = vmatpush1.bf16.msra.mxu0 %v4926_v38  ;;  %v5006_v38 = vcombine.low %v593_v18, %v597_v19  ;;  %v298_v18 = vld [vmem:[#allocation4 + $0x158] sm:$0xff] }
 0x1a8   : > { %3813 = vmatprep.subr.bf16.mxu0 %v5047_v40  ;;  %v5134_v40 = vcombine.low %v721_v22, %v725_v26  ;;  %v302_v19 = vld [vmem:[#allocation4 + $0x178] sm:$0xff] }
 0x1a9   : > { %3855 = vmatpush1.bf16.msra.mxu1 %v5054_v39  ;;  %v5767_v39 = vpop.f32.mrf.mxu0  ;;  %v426_v26 = vld [vmem:[#allocation4 + $0x558] sm:$0xff]  ;;  %v4713_v35 = vcombine.high %v298_v18, %v302_v19 }
 0x1aa   : > { %3856 = vmatprep.subr.bf16.mxu1 %v5175_v41  ;;  %v4999_v41 = vcombine.high %v585_v59, %v589_v60 }
 0x1ab   : > { %3814 = vmatpush2.bf16.msra.mxu0 %v5046_v48  ;;  %v705_v48 = vld [vmem:[#allocation4 + $0xe10] sm:$0xff] }
 0x1ac   : > { %3815 = vmatprep.subr.bf16.mxu0 %v5039_v50  ;;  %v4998_v50 = vcombine.low %v585_v59, %v589_v60  ;;  %v4848_v60 = vcombine.low %v434_v8, %v438_v9 }
 0x1ad   : > { %3857 = vmatpush2.bf16.msra.mxu1 %v5174_v49  ;;  %v709_v49 = vld [vmem:[#allocation4 + $0xe30] sm:$0xff] }
 0x1ae   : > { %3858 = vmatprep.subr.bf16.mxu1 %v5167_v51  ;;  %v5771_v51 = vpop.f32.mrf.mxu0  ;;  %v5119_v24 = vcombine.high %v705_v48, %v709_v49  ;;  %v5118_v1 = vcombine.low %v705_v48, %v709_v49  ;;  %v422_v48 = vld [vmem:[#allocation4 + $0x538] sm:$0xff] }
 0x1af   : > { %3816 = vmatpush2.bf16.msra.mxu0 %v5038_v56  ;;  %v314_v56 = vld [vmem:[#allocation4 + $0x1d8] sm:$0xff] }
 0x1b0   : > { %3817 = vmatprep.subr.bf16.mxu0 %v5031_v28  ;;  %v442_v28 = vld [vmem:[#allocation4 + $0x5d8] sm:$0xff]  ;;  %v5775_v62 = vpop.f32.mrf.mxu0 }
 0x1b1   : > { %3859 = vmatpush2.bf16.msra.mxu1 %v5166_v27  ;;  %v318_v27 = vld [vmem:[#allocation4 + $0x1f8] sm:$0xff] }
 0x1b2   : > { %3860 = vmatprep.subr.bf16.mxu1 %v5159_v57  ;;  %v446_v57 = vld [vmem:[#allocation4 + $0x5f8] sm:$0xff]  ;;  %v4729_v2 = vcombine.high %v314_v56, %v318_v27  ;;  %v4728_v11 = vcombine.low %v314_v56, %v318_v27  ;;  %v5779_v12 = vpop.f32.mrf.mxu0 }
 0x1b3   : > { %3818 = vmatpush2.bf16.msra.mxu0 %v5030_v4  ;;  %v5777_v4 = vpop.f32.mrf.mxu1 }
 0x1b4   : > { %3819 = vmatprep.subr.bf16.mxu0 %v5023_v6  ;;  %v306_v6 = vld [vmem:[#allocation4 + $0x198] sm:$0xff] }
 0x1b5   : > { %3861 = vmatpush2.bf16.msra.mxu1 %v5158_v5  ;;  %v4857_v5 = vcombine.high %v442_v28, %v446_v57 }
 0x1b6   : > { %3862 = vmatprep.subr.bf16.mxu1 %v5151_v7  ;;  %v310_v7 = vld [vmem:[#allocation4 + $0x1b8] sm:$0xff] }
 0x1b7   : > { %3820 = vmatpush2.bf16.msra.mxu0 %v5022_v14  ;;  %v4856_v14 = vcombine.low %v442_v28, %v446_v57  ;;  %v282_v28 = vld [vmem:[#allocation4 + $0xd8] sm:$0xff] }
 0x1b8   : > { %3821 = vmatprep.subr.bf16.mxu0 %v5015_v16  ;;  %v5781_v16 = vpop.f32.mrf.mxu1  ;;  %v286_v57 = vld [vmem:[#allocation4 + $0xf8] sm:$0xff] }
 0x1b9   : > { %3863 = vmatpush2.bf16.msra.mxu1 %v5150_v15  ;;  %v4721_v15 = vcombine.high %v306_v6, %v310_v7 }
 0x1ba   : > { %3864 = vmatprep.subr.bf16.mxu1 %v5143_v17  ;;  %v4849_v17 = vcombine.high %v434_v8, %v438_v9  ;;  %v274_v8 = vld [vmem:[#allocation4 + $0x98] sm:$0xff] }
 0x1bb   : > { %3822 = vmatpush2.bf16.msra.mxu0 %v5014_v54  ;;  %v430_v54 = vld [vmem:[#allocation4 + $0x578] sm:$0xff] }
 0x1bc   : > { %3823 = vmatprep.subr.bf16.mxu0 %v5007_v30  ;;  %v4720_v30 = vcombine.low %v306_v6, %v310_v7  ;;  %v4697_v6 = vcombine.high %v282_v28, %v286_v57  ;;  %v278_v9 = vld [vmem:[#allocation4 + $0xb8] sm:$0xff] }
 0x1bd   : > { %3865 = vmatpush2.bf16.msra.mxu1 %v5142_v55 }
 0x1be   : > { %3866 = vmatprep.subr.bf16.mxu1 %v5135_v31 }
 0x1bf   : > { %3824 = vmatpush2.bf16.msra.mxu0 %v5006_v38  ;;  %v4841_v38 = vcombine.high %v426_v26, %v430_v54 }
 0x1c0   : > { %3825 = vmatprep.subr.bf16.mxu0 %v4999_v41  ;;  %v294_v41 = vld [vmem:[#allocation4 + $0x138] sm:$0xff] }
 0x1c1   : > { %3867 = vmatpush2.bf16.msra.mxu1 %v5134_v40  ;;  %v290_v40 = vld [vmem:[#allocation4 + $0x118] sm:$0xff] }
 0x1c2   : > { %3868 = vmatprep.subr.bf16.mxu1 %v5127_v43  ;;  %v4705_v56 = vcombine.high %v290_v40, %v294_v41 }
 0x1c3   : > { %3826 = vmatpush2.bf16.msra.mxu0 %v4998_v50  ;;  %v4712_v50 = vcombine.low %v298_v18, %v302_v19  ;;  %v4689_v18 = vcombine.high %v274_v8, %v278_v9 }
 0x1c4   : > { %3827 = vmatprep.subr.bf16.mxu0 %v4991_v53 }
 0x1c5   : > { %3869 = vmatpush2.bf16.msra.mxu1 %v5126_v52 }
 0x1c6   : > { %3870 = vmatprep.subr.bf16.mxu1 %v5119_v24  ;;  %v4840_v24 = vcombine.low %v426_v26, %v430_v54  ;;  %v270_v26 = vld [vmem:[#allocation4 + $0x78] sm:$0xff] }
 0x1c7   : > { %3828 = vmatpush2.bf16.msra.mxu0 %v4990_v61  ;;  %v394_v54 = vld [vmem:[#allocation4 + $0x458] sm:$0xff] }
 0x1c8   : > { %3883 = vmatprep.subr.bf16.mxu0 %v4729_v2  ;;  %v414_v2 = vld [vmem:[#allocation4 + $0x4f8] sm:$0xff] }
 0x1c9   : > { %3871 = vmatpush2.bf16.msra.mxu1 %v5118_v1  ;;  %v410_v1 = vld [vmem:[#allocation4 + $0x4d8] sm:$0xff] }
 0x1ca   : > { %3926 = vmatprep.subr.bf16.mxu1 %v4857_v5  ;;  %v3573_v22 = vpop.f32.mrf.mxu0  ;;  %3830 = vmatmul.mubr.bf16.vlgmr.msra.gmra.mxu0 %v5729_v44  ;;  %v4832_v5 = vcombine.low %v418_v46, %v422_v48  ;;  %v4825_v7 = vcombine.high %v410_v1, %v414_v2 }
 0x1cb   : > { %3884 = vmatpush1.bf16.msra.mxu0 %v4728_v11  ;;  %3915 = vmatprep.mubr.bf16.mxu0 %v5681_v58  ;;  %v4833_v58 = vcombine.high %v418_v46, %v422_v48  ;;  %v402_v11 = vld [vmem:[#allocation4 + $0x498] sm:$0xff] }
 0x1cc   : > { %v3616_v55 = vpop.f32.mrf.mxu1  ;;  %3873 = vmatmul.mubr.bf16.vlgmr.msra.gmra.mxu1 %v5733_v47  ;;  %v3575_v59 = vpop.f32.mrf.mxu0  ;;  %3885 = vmatprep.subr.bf16.mxu0 %v4721_v15  ;;  %v4696_v15 = vcombine.low %v282_v28, %v286_v57 }
 0x1cd   : > { %v5785_v31 = vadd.f32 %v3616_v55, %v3573_v22  ;;  %3927 = vmatpush1.bf16.msra.mxu1 %v4856_v14  ;;  %3958 = vmatprep.mubr.bf16.mxu1 %v5691_v63  ;;  %v4704_v63 = vcombine.low %v290_v40, %v294_v41  ;;  %v406_v14 = vld [vmem:[#allocation4 + $0x4b8] sm:$0xff] }
 0x1ce   : > { %v3618_v36 = vpop.f32.mrf.mxu1  ;;  %3928 = vmatprep.subr.bf16.mxu1 %v4849_v17  ;;  %v3577_v45 = vpop.f32.mrf.mxu0  ;;  %v4824_v17 = vcombine.low %v410_v1, %v414_v2  ;;  %v4817_v19 = vcombine.high %v402_v11, %v406_v14  ;;  %v266_v22 = vld [vmem:[#allocation4 + $0x58] sm:$0xff] }
 0x1cf   : > { %v5788_v43 = vadd.f32 %v3618_v36, %v3575_v59  ;;  %3886 = vmatpush1.bf16.msra.mxu0 %v4720_v30  ;;  %v398_v55 = vld [vmem:[#allocation4 + $0x478] sm:$0xff]  ;;  %v4688_v30 = vcombine.low %v274_v8, %v278_v9  ;;  %v4816_v59 = vcombine.low %v402_v11, %v406_v14 }
 0x1d0   : > { %v3620_v49 = vpop.f32.mrf.mxu1  ;;  %v3579_v53 = vpop.f32.mrf.mxu0  ;;  %3887 = vmatprep.subr.bf16.mxu0 %v4713_v35  ;;  %v4809_v35 = vcombine.high %v394_v54, %v398_v55  ;;  %v258_v36 = vld [vmem:[#allocation4 + $0x18] sm:$0xff]  ;;  %v4808_v46 = vcombine.low %v394_v54, %v398_v55 }
 0x1d1   : > { %v5791_v52 = vadd.f32 %v3620_v49, %v3577_v45  ;;  %3929 = vmatpush1.bf16.msra.mxu1 %v4848_v60  ;;  %v4681_v60 = vcombine.high %v266_v22, %v270_v26  ;;  %v386_v40 = vld [vmem:[#allocation4 + $0x418] sm:$0xff]  ;;  %v4680_v45 = vcombine.low %v266_v22, %v270_v26 }
 0x1d2   : > { %v3622_v27 = vpop.f32.mrf.mxu1  ;;  %3930 = vmatprep.subr.bf16.mxu1 %v4841_v38  ;;  %v262_v38 = vld [vmem:[#allocation4 + $0x38] sm:$0xff] }
 0x1d3   : > { %v5793_v61 = vadd.f32 %v3622_v27, %v3579_v53  ;;  %3888 = vmatpush1.bf16.msra.mxu0 %v4712_v50  ;;  %v390_v41 = vld [vmem:[#allocation4 + $0x438] sm:$0xff]  ;;  %v4673_v48 = vcombine.high %v258_v36, %v262_v38  ;;  %v4672_v27 = vcombine.low %v258_v36, %v262_v38 }
 0x1d4   : > { %3889 = vmatprep.subr.bf16.mxu0 %v4705_v56  ;;  %v4801_v49 = vcombine.high %v386_v40, %v390_v41  ;;  %v378_v50 = vld [vmem:[#allocation4 + $0x3d8] sm:$0xff] }
 0x1d5   : > { %3931 = vmatpush1.bf16.msra.mxu1 %v4840_v24  ;;  %v382_v53 = vld [vmem:[#allocation4 + $0x3f8] sm:$0xff] }
 0x1d6   : > { %3932 = vmatprep.subr.bf16.mxu1 %v4833_v58  ;;  %v506_v24 = vld [vmem:[#allocation4 + $0x7d8] sm:$0xff]  ;;  %v4800_v58 = vcombine.low %v386_v40, %v390_v41  ;;  %v4793_v28 = vcombine.high %v378_v50, %v382_v53 }
 0x1d7   : > { %3890 = vmatpush1.bf16.msra.mxu0 %v4704_v63  ;;  %v510_v56 = vld [vmem:[#allocation4 + $0x7f8] sm:$0xff] }
 0x1d8   : > { %3891 = vmatprep.subr.bf16.mxu0 %v4697_v6  ;;  %v4921_v57 = vcombine.high %v506_v24, %v510_v56  ;;  %v370_v1 = vld [vmem:[#allocation4 + $0x398] sm:$0xff]  ;;  %v4792_v6 = vcombine.low %v378_v50, %v382_v53 }
 0x1d9   : > { %3933 = vmatpush1.bf16.msra.mxu1 %v4832_v5  ;;  %v374_v2 = vld [vmem:[#allocation4 + $0x3b8] sm:$0xff] }
 0x1da   : > { %3934 = vmatprep.subr.bf16.mxu1 %v4825_v7  ;;  %v498_v63 = vld [vmem:[#allocation4 + $0x798] sm:$0xff]  ;;  %v4920_v7 = vcombine.low %v506_v24, %v510_v56  ;;  %v4785_v8 = vcombine.high %v370_v1, %v374_v2 }
 0x1db   : > { %3892 = vmatpush1.bf16.msra.mxu0 %v4696_v15  ;;  %v502_v5 = vld [vmem:[#allocation4 + $0x7b8] sm:$0xff] }
 0x1dc   : > { %3893 = vmatprep.subr.bf16.mxu0 %v4689_v18  ;;  %v4913_v9 = vcombine.high %v498_v63, %v502_v5  ;;  %v362_v11 = vld [vmem:[#allocation4 + $0x358] sm:$0xff]  ;;  %v4784_v18 = vcombine.low %v370_v1, %v374_v2 }
 0x1dd   : > { %3935 = vmatpush1.bf16.msra.mxu1 %v4824_v17  ;;  %v366_v14 = vld [vmem:[#allocation4 + $0x378] sm:$0xff] }
 0x1de   : > { %3936 = vmatprep.subr.bf16.mxu1 %v4817_v19  ;;  %v490_v15 = vld [vmem:[#allocation4 + $0x758] sm:$0xff]  ;;  %v4912_v19 = vcombine.low %v498_v63, %v502_v5  ;;  %v4777_v22 = vcombine.high %v362_v11, %v366_v14 }
 0x1df   : > { %3894 = vmatpush1.bf16.msra.mxu0 %v4688_v30  ;;  %v494_v17 = vld [vmem:[#allocation4 + $0x778] sm:$0xff] }
 0x1e0   : > { %3895 = vmatprep.subr.bf16.mxu0 %v4681_v60  ;;  %v4905_v26 = vcombine.high %v490_v15, %v494_v17  ;;  %v354_v54 = vld [vmem:[#allocation4 + $0x318] sm:$0xff]  ;;  %v4776_v60 = vcombine.low %v362_v11, %v366_v14 }
 0x1e1   : > { %3937 = vmatpush1.bf16.msra.mxu1 %v4816_v59  ;;  %v358_v55 = vld [vmem:[#allocation4 + $0x338] sm:$0xff] }
 0x1e2   : > { %3938 = vmatprep.subr.bf16.mxu1 %v4809_v35  ;;  %v482_v30 = vld [vmem:[#allocation4 + $0x718] sm:$0xff]  ;;  %v4904_v35 = vcombine.low %v490_v15, %v494_v17  ;;  %v4769_v36 = vcombine.high %v354_v54, %v358_v55 }
 0x1e3   : > { %3896 = vmatpush1.bf16.msra.mxu0 %v4680_v45  ;;  %v486_v59 = vld [vmem:[#allocation4 + $0x738] sm:$0xff] }
 0x1e4   : > { %3897 = vmatprep.subr.bf16.mxu0 %v4673_v48  ;;  %v4897_v38 = vcombine.high %v482_v30, %v486_v59  ;;  %v346_v40 = vld [vmem:[#allocation4 + $0x2d8] sm:$0xff]  ;;  %v4768_v48 = vcombine.low %v354_v54, %v358_v55 }
 0x1e5   : > { %3939 = vmatpush1.bf16.msra.mxu1 %v4808_v46  ;;  %v350_v41 = vld [vmem:[#allocation4 + $0x2f8] sm:$0xff] }
 0x1e6   : > { %3940 = vmatprep.subr.bf16.mxu1 %v4801_v49  ;;  %v474_v45 = vld [vmem:[#allocation4 + $0x6d8] sm:$0xff]  ;;  %v4896_v49 = vcombine.low %v482_v30, %v486_v59  ;;  %v4761_v50 = vcombine.high %v346_v40, %v350_v41 }
 0x1e7   : > { %3898 = vmatpush1.bf16.msra.mxu0 %v4672_v27  ;;  %v478_v46 = vld [vmem:[#allocation4 + $0x6f8] sm:$0xff] }
 0x1e8   : > { %3899 = vmatprep.subr.bf16.mxu0 %v4793_v28  ;;  %v4889_v53 = vcombine.high %v474_v45, %v478_v46  ;;  %v338_v24 = vld [vmem:[#allocation4 + $0x298] sm:$0xff]  ;;  %v4760_v28 = vcombine.low %v346_v40, %v350_v41 }
 0x1e9   : > { %3941 = vmatpush1.bf16.msra.mxu1 %v4800_v58  ;;  %v342_v56 = vld [vmem:[#allocation4 + $0x2b8] sm:$0xff] }
 0x1ea   : > { %3942 = vmatprep.subr.bf16.mxu1 %v4921_v57  ;;  %v466_v27 = vld [vmem:[#allocation4 + $0x698] sm:$0xff]  ;;  %v4888_v57 = vcombine.low %v474_v45, %v478_v46  ;;  %v4753_v1 = vcombine.high %v338_v24, %v342_v56 }
 0x1eb   : > { %3900 = vmatpush2.bf16.msra.mxu0 %v4792_v6  ;;  %v470_v58 = vld [vmem:[#allocation4 + $0x6b8] sm:$0xff] }
 0x1ec   : > { %3901 = vmatprep.subr.bf16.mxu0 %v4785_v8  ;;  %v4881_v2 = vcombine.high %v466_v27, %v470_v58  ;;  %v330_v63 = vld [vmem:[#allocation4 + $0x258] sm:$0xff]  ;;  %v4752_v8 = vcombine.low %v338_v24, %v342_v56 }
 0x1ed   : > { %3943 = vmatpush2.bf16.msra.mxu1 %v4920_v7  ;;  %v334_v5 = vld [vmem:[#allocation4 + $0x278] sm:$0xff] }
 0x1ee   : > { %3944 = vmatprep.subr.bf16.mxu1 %v4913_v9  ;;  %v458_v6 = vld [vmem:[#allocation4 + $0x658] sm:$0xff]  ;;  %v4880_v9 = vcombine.low %v466_v27, %v470_v58  ;;  %v4745_v11 = vcombine.high %v330_v63, %v334_v5 }
 0x1ef   : > { %3902 = vmatpush2.bf16.msra.mxu0 %v4784_v18  ;;  %v462_v7 = vld [vmem:[#allocation4 + $0x678] sm:$0xff] }
 0x1f0   : > { %3903 = vmatprep.subr.bf16.mxu0 %v4777_v22  ;;  %v4873_v14 = vcombine.high %v458_v6, %v462_v7  ;;  %v322_v15 = vld [vmem:[#allocation4 + $0x218] sm:$0xff]  ;;  %v4744_v22 = vcombine.low %v330_v63, %v334_v5 }
 0x1f1   : > { %3945 = vmatpush2.bf16.msra.mxu1 %v4912_v19  ;;  %v326_v17 = vld [vmem:[#allocation4 + $0x238] sm:$0xff] }
 0x1f2   : > { %3946 = vmatprep.subr.bf16.mxu1 %v4905_v26  ;;  %v450_v18 = vld [vmem:[#allocation4 + $0x618] sm:$0xff]  ;;  %v4872_v26 = vcombine.low %v458_v6, %v462_v7  ;;  %v4737_v54 = vcombine.high %v322_v15, %v326_v17 }
 0x1f3   : > { %3904 = vmatpush2.bf16.msra.mxu0 %v4776_v60  ;;  %v454_v19 = vld [vmem:[#allocation4 + $0x638] sm:$0xff] }
 0x1f4   : > { %3905 = vmatprep.subr.bf16.mxu0 %v4769_v36  ;;  %v4865_v55 = vcombine.high %v450_v18, %v454_v19  ;;  %v570_v30 = vld [vmem:[#allocation4 + $0x9d8] sm:$0xff]  ;;  %v4736_v36 = vcombine.low %v322_v15, %v326_v17 }
 0x1f5   : > { %3947 = vmatpush2.bf16.msra.mxu1 %v4904_v35  ;;  %v574_v59 = vld [vmem:[#allocation4 + $0x9f8] sm:$0xff] }
 0x1f6   : > { %3948 = vmatprep.subr.bf16.mxu1 %v4897_v38  ;;  %v698_v60 = vld [vmem:[#allocation4 + $0xdd8] sm:$0xff]  ;;  %v4864_v38 = vcombine.low %v450_v18, %v454_v19  ;;  %v4985_v40 = vcombine.high %v570_v30, %v574_v59 }
 0x1f7   : > { %3906 = vmatpush2.bf16.msra.mxu0 %v4768_v48  ;;  %v702_v35 = vld [vmem:[#allocation4 + $0xdf8] sm:$0xff] }
 0x1f8   : > { %3907 = vmatprep.subr.bf16.mxu0 %v4761_v50  ;;  %v5113_v41 = vcombine.high %v698_v60, %v702_v35  ;;  %v562_v45 = vld [vmem:[#allocation4 + $0x998] sm:$0xff]  ;;  %v4984_v50 = vcombine.low %v570_v30, %v574_v59 }
 0x1f9   : > { %3949 = vmatpush2.bf16.msra.mxu1 %v4896_v49  ;;  %v566_v46 = vld [vmem:[#allocation4 + $0x9b8] sm:$0xff] }
 0x1fa   : > { %3950 = vmatprep.subr.bf16.mxu1 %v4889_v53  ;;  %v690_v48 = vld [vmem:[#allocation4 + $0xd98] sm:$0xff]  ;;  %v5112_v53 = vcombine.low %v698_v60, %v702_v35  ;;  %v4977_v24 = vcombine.high %v562_v45, %v566_v46  ;;  %v4976_v5 = vcombine.low %v562_v45, %v566_v46 }
 0x1fb   : > { %3908 = vmatpush2.bf16.msra.mxu0 %v4760_v28  ;;  %v694_v49 = vld [vmem:[#allocation4 + $0xdb8] sm:$0xff] }
 0x1fc   : > { %3909 = vmatprep.subr.bf16.mxu0 %v4753_v1  ;;  %v5105_v56 = vcombine.high %v690_v48, %v694_v49  ;;  %v554_v27 = vld [vmem:[#allocation4 + $0x958] sm:$0xff]  ;;  %v5104_v7 = vcombine.low %v690_v48, %v694_v49 }
 0x1fd   : > { %3951 = vmatpush2.bf16.msra.mxu1 %v4888_v57  ;;  %v558_v58 = vld [vmem:[#allocation4 + $0x978] sm:$0xff] }
 0x1fe   : > { %3952 = vmatprep.subr.bf16.mxu1 %v4881_v2  ;;  %v682_v57 = vld [vmem:[#allocation4 + $0xd58] sm:$0xff] }
 0x1ff   : > { %3910 = vmatpush2.bf16.msra.mxu0 %v4752_v8  ;;  %v686_v1 = vld [vmem:[#allocation4 + $0xd78] sm:$0xff]  ;;  %v4969_v8 = vcombine.high %v554_v27, %v558_v58 }
 0x200   : > { %3911 = vmatprep.subr.bf16.mxu0 %v4745_v11  ;;  %v546_v15 = vld [vmem:[#allocation4 + $0x918] sm:$0xff] }
 0x201   : > { %3953 = vmatpush2.bf16.msra.mxu1 %v4880_v9  ;;  %v550_v17 = vld [vmem:[#allocation4 + $0x938] sm:$0xff] }
 0x202   : > { %3954 = vmatprep.subr.bf16.mxu1 %v4873_v14  ;;  %v678_v18 = vld [vmem:[#allocation4 + $0xd38] sm:$0xff]  ;;  %v4961_v30 = vcombine.high %v546_v15, %v550_v17 }
 0x203   : > { %3912 = vmatpush2.bf16.msra.mxu0 %v4744_v22  ;;  %v538_v35 = vld [vmem:[#allocation4 + $0x8d8] sm:$0xff] }
 0x204   : > { %3913 = vmatprep.subr.bf16.mxu0 %v4737_v54  ;;  %v4968_v54 = vcombine.low %v554_v27, %v558_v58  ;;  %v530_v49 = vld [vmem:[#allocation4 + $0x898] sm:$0xff] }
 0x205   : > { %3955 = vmatpush2.bf16.msra.mxu1 %v4872_v26 }
 0x206   : > { %3956 = vmatprep.subr.bf16.mxu1 %v4865_v55  ;;  %v5096_v55 = vcombine.low %v682_v57, %v686_v1 }
 0x207   : > { %3914 = vmatpush2.bf16.msra.mxu0 %v4736_v36 }
 0x208   : > { %3969 = vmatprep.subr.bf16.mxu0 %v4985_v40  ;;  %v670_v40 = vld [vmem:[#allocation4 + $0xcf8] sm:$0xff] }
 0x209   : > { %3957 = vmatpush2.bf16.msra.mxu1 %v4864_v38  ;;  %v666_v38 = vld [vmem:[#allocation4 + $0xcd8] sm:$0xff] }
 0x20a   : > { %4012 = vmatprep.subr.bf16.mxu1 %v5113_v41  ;;  %v3659_v28 = vpop.f32.mrf.mxu0  ;;  %3916 = vmatmul.mubr.bf16.vlgmr.msra.gmra.mxu0 %v5697_v21  ;;  %v5097_v21 = vcombine.high %v682_v57, %v686_v1  ;;  %v4960_v41 = vcombine.low %v546_v15, %v550_v17  ;;  %v5081_v48 = vcombine.high %v666_v38, %v670_v40  ;;  %v526_v57 = vld [vmem:[#allocation4 + $0x878] sm:$0xff] }
 0x20b   : > { %v3660_v2 = vadd.f32 %v3659_v28, %v5785_v31  ;;  %3970 = vmatpush1.bf16.msra.mxu0 %v4984_v50  ;;  %4001 = vmatprep.mubr.bf16.mxu0 %v5717_v32  ;;  %v534_v50 = vld [vmem:[#allocation4 + $0x8b8] sm:$0xff] }
 0x20c   : > { %v3702_v63 = vpop.f32.mrf.mxu1  ;;  %3959 = vmatmul.mubr.bf16.vlgmr.msra.gmra.mxu1 %v5707_v25  ;;  %v3661_v6 = vpop.f32.mrf.mxu0  ;;  %3971 = vmatprep.subr.bf16.mxu0 %v4977_v24  ;;  %v674_v25 = vld [vmem:[#allocation4 + $0xd18] sm:$0xff]  ;;  %v4945_v27 = vcombine.high %v530_v49, %v534_v50 }
 0x20d   : > { %4013 = vmatpush1.bf16.msra.mxu1 %v5112_v53  ;;  %v5798_v9 = vadd.f32 %v3702_v63, %v3660_v2  ;;  %v3662_v11 = vadd.f32 %v3661_v6, %v5788_v43  ;;  %4044 = vmatprep.mubr.bf16.mxu1 %v5722_v33  ;;  %v5089_v60 = vcombine.high %v674_v25, %v678_v18  ;;  %v542_v33 = vld [vmem:[#allocation4 + $0x8f8] sm:$0xff] }
 0x20e   : > { %v3704_v14 = vpop.f32.mrf.mxu1  ;;  %4014 = vmatprep.subr.bf16.mxu1 %v5105_v56  ;;  %v3663_v31 = vpop.f32.mrf.mxu0  ;;  %v5088_v45 = vcombine.low %v674_v25, %v678_v18  ;;  %v4953_v46 = vcombine.high %v538_v35, %v542_v33  ;;  %v662_v53 = vld [vmem:[#allocation4 + $0xcb8] sm:$0xff]  ;;  %v4952_v24 = vcombine.low %v538_v35, %v542_v33  ;;  %v5080_v56 = vcombine.low %v666_v38, %v670_v40 }
 0x20f   : > { %v5803_v19 = vadd.f32 %v3704_v14, %v3662_v11  ;;  %v3664_v22 = vadd.f32 %v3663_v31, %v5791_v52  ;;  %3972 = vmatpush1.bf16.msra.mxu0 %v4976_v5  ;;  %v522_v28 = vld [vmem:[#allocation4 + $0x858] sm:$0xff]  ;;  %v4944_v63 = vcombine.low %v530_v49, %v534_v50 }
 0x210   : > { %v3706_v26 = vpop.f32.mrf.mxu1  ;;  %v3665_v43 = vpop.f32.mrf.mxu0  ;;  %3973 = vmatprep.subr.bf16.mxu0 %v4969_v8  ;;  %v650_v1 = vld [vmem:[#allocation4 + $0xc58] sm:$0xff]  ;;  %v4937_v6 = vcombine.high %v522_v28, %v526_v57  ;;  %v4936_v15 = vcombine.low %v522_v28, %v526_v57 }
 0x211   : > { %4015 = vmatpush1.bf16.msra.mxu1 %v5104_v7  ;;  %v5806_v59 = vadd.f32 %v3706_v26, %v3664_v22  ;;  %v3666_v32 = vadd.f32 %v3665_v43, %v5793_v61  ;;  %v658_v61 = vld [vmem:[#allocation4 + $0xc98] sm:$0xff] }
 0x212   : > { %4016 = vmatprep.subr.bf16.mxu1 %v5097_v21  ;;  %v3708_v36 = vpop.f32.mrf.mxu1  ;;  %v5073_v58 = vcombine.high %v658_v61, %v662_v53  ;;  %v654_v2 = vld [vmem:[#allocation4 + $0xc78] sm:$0xff]  ;;  %v5072_v5 = vcombine.low %v658_v61, %v662_v53 }
 0x213   : > { %v5809_v52 = vadd.f32 %v3708_v36, %v3666_v32  ;;  %3974 = vmatpush1.bf16.msra.mxu0 %v4968_v54  ;;  %v5065_v7 = vcombine.high %v650_v1, %v654_v2  ;;  %v514_v8 = vld [vmem:[#allocation4 + $0x818] sm:$0xff]  ;;  %v5064_v17 = vcombine.low %v650_v1, %v654_v2 }
 0x214   : > { %3975 = vmatprep.subr.bf16.mxu0 %v4961_v30  ;;  %v518_v11 = vld [vmem:[#allocation4 + $0x838] sm:$0xff] }
 0x215   : > { %4017 = vmatpush1.bf16.msra.mxu1 %v5096_v55  ;;  %v642_v14 = vld [vmem:[#allocation4 + $0xc18] sm:$0xff]  ;;  %v4929_v31 = vcombine.high %v514_v8, %v518_v11  ;;  %v4928_v43 = vcombine.low %v514_v8, %v518_v11 }
 0x216   : > { %4018 = vmatprep.subr.bf16.mxu1 %v5089_v60  ;;  %v646_v21 = vld [vmem:[#allocation4 + $0xc38] sm:$0xff] }
 0x217   : > { %3976 = vmatpush1.bf16.msra.mxu0 %v4960_v41  ;;  %v5057_v25 = vcombine.high %v642_v14, %v646_v21  ;;  %v634_v18 = vld [vmem:[#allocation4 + $0xbd8] sm:$0xff]  ;;  %v5056_v55 = vcombine.low %v642_v14, %v646_v21 }
 0x218   : > { %3977 = vmatprep.subr.bf16.mxu0 %v4953_v46  ;;  %v638_v22 = vld [vmem:[#allocation4 + $0xbf8] sm:$0xff] }
 0x219   : > { %4019 = vmatpush1.bf16.msra.mxu1 %v5088_v45  ;;  %v762_v26 = vld [vmem:[#allocation4 + $0xfd8] sm:$0xff]  ;;  %v5049_v30 = vcombine.high %v634_v18, %v638_v22  ;;  %v5048_v38 = vcombine.low %v634_v18, %v638_v22 }
 0x21a   : > { %4020 = vmatprep.subr.bf16.mxu1 %v5081_v48  ;;  %v766_v54 = vld [vmem:[#allocation4 + $0xff8] sm:$0xff] }
 0x21b   : > { %3978 = vmatpush1.bf16.msra.mxu0 %v4952_v24  ;;  %v5177_v32 = vcombine.high %v762_v26, %v766_v54  ;;  %v626_v60 = vld [vmem:[#allocation4 + $0xb98] sm:$0xff]  ;;  %v5176_v40 = vcombine.low %v762_v26, %v766_v54 }
 0x21c   : > { %3979 = vmatprep.subr.bf16.mxu0 %v4945_v27  ;;  %v630_v35 = vld [vmem:[#allocation4 + $0xbb8] sm:$0xff] }
 0x21d   : > { %4021 = vmatpush1.bf16.msra.mxu1 %v5080_v56  ;;  %v754_v33 = vld [vmem:[#allocation4 + $0xf98] sm:$0xff]  ;;  %v5041_v41 = vcombine.high %v626_v60, %v630_v35  ;;  %v5040_v61 = vcombine.low %v626_v60, %v630_v35 }
 0x21e   : > { %4022 = vmatprep.subr.bf16.mxu1 %v5073_v58  ;;  %v758_v36 = vld [vmem:[#allocation4 + $0xfb8] sm:$0xff] }
 0x21f   : > { %3980 = vmatpush1.bf16.msra.mxu0 %v4944_v63  ;;  %v5169_v45 = vcombine.high %v754_v33, %v758_v36  ;;  %v618_v46 = vld [vmem:[#allocation4 + $0xb58] sm:$0xff]  ;;  %v5168_v53 = vcombine.low %v754_v33, %v758_v36 }
 0x220   : > { %3981 = vmatprep.subr.bf16.mxu0 %v4937_v6  ;;  %v622_v48 = vld [vmem:[#allocation4 + $0xb78] sm:$0xff] }
 0x221   : > { %4023 = vmatpush1.bf16.msra.mxu1 %v5072_v5  ;;  %v746_v49 = vld [vmem:[#allocation4 + $0xf58] sm:$0xff]  ;;  %v5033_v24 = vcombine.high %v618_v46, %v622_v48  ;;  %v5032_v1 = vcombine.low %v618_v46, %v622_v48 }
 0x222   : > { %4024 = vmatprep.subr.bf16.mxu1 %v5065_v7  ;;  %v750_v50 = vld [vmem:[#allocation4 + $0xf78] sm:$0xff] }
 0x223   : > { %3982 = vmatpush1.bf16.msra.mxu0 %v4936_v15  ;;  %v5161_v56 = vcombine.high %v746_v49, %v750_v50  ;;  %v610_v27 = vld [vmem:[#allocation4 + $0xb18] sm:$0xff]  ;;  %v5160_v2 = vcombine.low %v746_v49, %v750_v50 }
 0x224   : > { %3983 = vmatprep.subr.bf16.mxu0 %v4929_v31  ;;  %v614_v58 = vld [vmem:[#allocation4 + $0xb38] sm:$0xff] }
 0x225   : > { %4025 = vmatpush1.bf16.msra.mxu1 %v5064_v17  ;;  %v738_v28 = vld [vmem:[#allocation4 + $0xf18] sm:$0xff]  ;;  %v5025_v63 = vcombine.high %v610_v27, %v614_v58  ;;  %v5024_v14 = vcombine.low %v610_v27, %v614_v58 }
 0x226   : > { %4026 = vmatprep.subr.bf16.mxu1 %v5057_v25  ;;  %v742_v57 = vld [vmem:[#allocation4 + $0xf38] sm:$0xff] }
 0x227   : > { %3984 = vmatpush1.bf16.msra.mxu0 %v4928_v43  ;;  %v5153_v5 = vcombine.high %v738_v28, %v742_v57  ;;  %v602_v6 = vld [vmem:[#allocation4 + $0xad8] sm:$0xff]  ;;  %v5152_v21 = vcombine.low %v738_v28, %v742_v57  ;;  %v5341_v28 = vld [vmem:[#allocation6 + $0x70] sm:$0xff]  }
 0x228   : > { %3985 = vmatprep.subr.bf16.mxu0 %v5049_v30  ;;  %v606_v7 = vld [vmem:[#allocation4 + $0xaf8] sm:$0xff]  ;;  %v5342_v57 = vld [vmem:[#allocation6 + $0x30] sm:$0xff]  }
 0x229   : > { %4027 = vmatpush1.bf16.msra.mxu1 %v5056_v55  ;;  %v730_v8 = vld [vmem:[#allocation4 + $0xed8] sm:$0xff]  ;;  %v5017_v15 = vcombine.high %v602_v6, %v606_v7  ;;  %v5016_v26 = vcombine.low %v602_v6, %v606_v7 }
 0x22a   : > { %4028 = vmatprep.subr.bf16.mxu1 %v5177_v32  ;;  %v734_v11 = vld [vmem:[#allocation4 + $0xef8] sm:$0xff] }
 0x22b   : > { %3986 = vmatpush2.bf16.msra.mxu0 %v5048_v38  ;;  %v5145_v17 = vcombine.high %v730_v8, %v734_v11  ;;  %v594_v31 = vld [vmem:[#allocation4 + $0xa98] sm:$0xff]  ;;  %v5144_v54 = vcombine.low %v730_v8, %v734_v11  ;;  %v5349_v8 = vld [vmem:[#allocation6 + $0x50] sm:$0xff]   ;;  %v5352_v11 = vld [vmem:[#allocation6 + $0x8] sm:$0xff]  }
 0x22c   : > { %3987 = vmatprep.subr.bf16.mxu0 %v5041_v41  ;;  %v598_v25 = vld [vmem:[#allocation4 + $0xab8] sm:$0xff] }
 0x22d   : > { %4029 = vmatpush2.bf16.msra.mxu1 %v5176_v40  ;;  %v722_v18 = vld [vmem:[#allocation4 + $0xe98] sm:$0xff]  ;;  %v5009_v43 = vcombine.high %v594_v31, %v598_v25  ;;  %v5008_v33 = vcombine.low %v594_v31, %v598_v25 }
 0x22e   : > { %4030 = vmatprep.subr.bf16.mxu1 %v5169_v45  ;;  %v726_v22 = vld [vmem:[#allocation4 + $0xeb8] sm:$0xff] }
 0x22f   : > { %3988 = vmatpush2.bf16.msra.mxu0 %v5040_v61  ;;  %v5137_v55 = vcombine.high %v722_v18, %v726_v22  ;;  %v586_v30 = vld [vmem:[#allocation4 + $0xa58] sm:$0xff]  ;;  %v5136_v36 = vcombine.low %v722_v18, %v726_v22  ;;  %v3445_v18 = vadd.f32 %v5753_v3, %v5751_v0 }
 0x230   : > { %3989 = vmatprep.subr.bf16.mxu0 %v5033_v24  ;;  %v590_v32 = vld [vmem:[#allocation4 + $0xa78] sm:$0xff] }
 0x231   : > { %4031 = vmatpush2.bf16.msra.mxu1 %v5168_v53  ;;  %v714_v60 = vld [vmem:[#allocation4 + $0xe58] sm:$0xff]  ;;  %v5001_v38 = vcombine.high %v586_v30, %v590_v32  ;;  %v5000_v49 = vcombine.low %v586_v30, %v590_v32 }
 0x232   : > { %4032 = vmatprep.subr.bf16.mxu1 %v5161_v56  ;;  %v718_v35 = vld [vmem:[#allocation4 + $0xe78] sm:$0xff] }
 0x233   : > { %3990 = vmatpush2.bf16.msra.mxu0 %v5032_v1  ;;  %v5129_v40 = vcombine.high %v714_v60, %v718_v35  ;;  %v578_v41 = vld [vmem:[#allocation4 + $0xa18] sm:$0xff]  ;;  %v5128_v50 = vcombine.low %v714_v60, %v718_v35  ;;  %v5343_v1 = vld [vmem:[#allocation6 + $0x68] sm:$0xff]  }
 0x234   : > { %3991 = vmatprep.subr.bf16.mxu0 %v5025_v63  ;;  %v582_v45 = vld [vmem:[#allocation4 + $0xa38] sm:$0xff]  ;;  %v5345_v63 = vld [vmem:[#allocation6 + $0x60] sm:$0xff]  }
 0x235   : > { %4033 = vmatpush2.bf16.msra.mxu1 %v5160_v2  ;;  %v706_v46 = vld [vmem:[#allocation4 + $0xe18] sm:$0xff]  ;;  %v4993_v61 = vcombine.high %v578_v41, %v582_v45  ;;  %v4992_v24 = vcombine.low %v578_v41, %v582_v45  ;;  %v5344_v2 = vld [vmem:[#allocation6 + $0x28] sm:$0xff]  }
 0x236   : > { %4034 = vmatprep.subr.bf16.mxu1 %v5153_v5  ;;  %v710_v48 = vld [vmem:[#allocation4 + $0xe38] sm:$0xff]  ;;  %v5346_v5 = vld [vmem:[#allocation6 + $0x20] sm:$0xff]  }
 0x237   : > { %3992 = vmatpush2.bf16.msra.mxu0 %v5024_v14  ;;  %v5121_v53 = vcombine.high %v706_v46, %v710_v48  ;;  %v5120_v56 = vcombine.low %v706_v46, %v710_v48  ;;  %v5339_v27 = vld [vmem:[#allocation6 + $0x78] sm:$0xff]   ;;  %v5353_v14 = vld [vmem:[#allocation6 + $0x40] sm:$0xff]  }
 0x238   : > { %3993 = vmatprep.subr.bf16.mxu0 %v5017_v15  ;;  %v5340_v58 = vld [vmem:[#allocation6 + $0x38] sm:$0xff]  }
 0x239   : > { %4035 = vmatpush2.bf16.msra.mxu1 %v5152_v21  ;;  %v5347_v6 = vld [vmem:[#allocation6 + $0x58] sm:$0xff]   ;;  %v5354_v21 = vld [vmem:[#allocation6] sm:$0xff]  }
 0x23a   : > { %4036 = vmatprep.subr.bf16.mxu1 %v5145_v17  ;;  %v5348_v7 = vld [vmem:[#allocation6 + $0x18] sm:$0xff]  }
 0x23b   : > { %3994 = vmatpush2.bf16.msra.mxu0 %v5016_v26  ;;  %v5355_v46 = vld [vmem:[#allocation6 + $0xf8] sm:$0xff]  }
 0x23c   : > { %3995 = vmatprep.subr.bf16.mxu0 %v5009_v43  ;;  %v3488_v43 = vadd.f32 %v5767_v39, %v3445_v18 }
 0x23d   : > { %4037 = vmatpush2.bf16.msra.mxu1 %v5144_v54  ;;  %v3447_v54 = vadd.f32 %v5757_v13, %v5755_v10 }
 0x23e   : > { %4038 = vmatprep.subr.bf16.mxu1 %v5137_v55  ;;  %v3449_v55 = vadd.f32 %v5761_v29, %v5759_v20  ;;  %v3531_v0 = vadd.f32 %v5769_v42, %v3488_v43  ;;  %v5356_v42 = vld [vmem:[#allocation6 + $0xb8] sm:$0xff]  }
 0x23f   : > { %3996 = vmatpush2.bf16.msra.mxu0 %v5008_v33  ;;  %v3490_v30 = vadd.f32 %v5771_v51, %v3447_v54  ;;  %v3451_v33 = vadd.f32 %v5765_v37, %v5763_v34 }
 0x240   : > { %3997 = vmatprep.subr.bf16.mxu0 %v5001_v38  ;;  %v3492_v3 = vadd.f32 %v5775_v62, %v3449_v55  ;;  %v4055_v48 = vmul.f32 %v3531_v0, %v3531_v0 }
 0x241   : > { %4039 = vmatpush2.bf16.msra.mxu1 %v5136_v36  ;;  %v3533_v39 = vadd.f32 %v5773_v23, %v3490_v30  ;;  %v3494_v20 = vadd.f32 %v5779_v12, %v3451_v33  ;;  %v5368_v30 = vld [vmem:[#allocation6 + $0x88] sm:$0xff]  }
 0x242   : > { %4040 = vmatprep.subr.bf16.mxu1 %v5129_v40  ;;  %v3535_v34 = vadd.f32 %v5777_v4, %v3492_v3 }
 0x243   : > { %3998 = vmatpush2.bf16.msra.mxu0 %v5000_v49  ;;  %v4056_v23 = vmul.f32 %v3533_v39, %v3533_v39  ;;  %v3537_v12 = vadd.f32 %v5781_v16, %v3494_v20  ;;  %v5370_v20 = vld [vmem:[#allocation6 + $0x80] sm:$0xff]  }
 0x244   : > { %3999 = vmatprep.subr.bf16.mxu0 %v4993_v61 }
 0x245   : > { %4041 = vmatpush2.bf16.msra.mxu1 %v5128_v50 }
 0x246   : > { %4042 = vmatprep.subr.bf16.mxu1 %v5121_v53 }
 0x247   : > { %4000 = vmatpush2.bf16.msra.mxu0 %v4992_v24 }
 0x248   : > { %5214 = vmatprep.subr.bf16.mxu0 %v5339_v27 }
 0x249   : > { %4043 = vmatpush2.bf16.msra.mxu1 %v5120_v56 }
 0x24a   : > { %4002 = vmatmul.mubr.bf16.vlgmr.msra.gmra.mxu0 %v5729_v44  ;;  %v5350_v44 = vld [vmem:[#allocation6 + $0x10] sm:$0xff]   ;;  %v3745_v15 = vpop.f32.mrf.mxu0  ;;  %5236 = vmatprep.subr.bf16.mxu1 %v5355_v46 }
 0x24b   : > { %5215 = vmatpush3.bf16.msra.mxu0 %v5340_v58 }
 0x24c   : > { %4045 = vmatmul.mubr.bf16.vlgmr.msra.gmra.mxu1 %v5733_v47  ;;  %5216 = vmatprep.subr.bf16.mxu0 %v5341_v28  ;;  %v5351_v47 = vld [vmem:[#allocation6 + $0x48] sm:$0xff]   ;;  %v3788_v17 = vpop.f32.mrf.mxu1  ;;  %v3747_v31 = vpop.f32.mrf.mxu0 }
 0x24d   : > { %v3789_v60 = vadd.f32 %v3788_v17, %v3745_v15  ;;  %5237 = vmatpush3.bf16.msra.mxu1 %v5356_v42  ;;  %v5363_v15 = vld [vmem:[#allocation6 + $0xd8] sm:$0xff]  }
 0x24e   : > { %v3790_v25 = vpop.f32.mrf.mxu1  ;;  %v3749_v22 = vpop.f32.mrf.mxu0  ;;  %v5364_v17 = vld [vmem:[#allocation6 + $0x98] sm:$0xff]  }
 0x24f   : > { %5217 = vmatpush3.bf16.msra.mxu0 %v5342_v57  ;;  %v3791_v38 = vadd.f32 %v3790_v25, %v3747_v31  ;;  %v5357_v57 = vld [vmem:[#allocation6 + $0xf0] sm:$0xff]  }
 0x250   : > { %5218 = vmatprep.subr.bf16.mxu0 %v5343_v1  ;;  %v3792_v26 = vpop.f32.mrf.mxu1  ;;  %v3751_v32 = vpop.f32.mrf.mxu0  ;;  %v5358_v1 = vld [vmem:[#allocation6 + $0xb0] sm:$0xff]   ;;  %5238 = vmatprep.subr.bf16.mxu1 %v5357_v57 }
 0x251   : > { %v3793_v51 = vadd.f32 %v3792_v26, %v3749_v22  ;;  %5239 = vmatpush3.bf16.msra.mxu1 %v5358_v1  ;;  %v5365_v31 = vld [vmem:[#allocation6 + $0xd0] sm:$0xff]   ;;  %v5367_v22 = vld [vmem:[#allocation6 + $0xc8] sm:$0xff]  }
 0x252   : > { %v3794_v35 = vpop.f32.mrf.mxu1  ;;  %v5366_v25 = vld [vmem:[#allocation6 + $0x90] sm:$0xff]  }
 0x253   : > { %5219 = vmatpush3.bf16.msra.mxu0 %v5344_v2  ;;  %v3795_v62 = vadd.f32 %v3794_v35, %v3751_v32  ;;  %v4059_v2 = vmul.f32 %v3535_v34, %v3535_v34 }
 0x254   : > { %5220 = vmatprep.subr.bf16.mxu0 %v5345_v63 }
 0x257   : > { %5221 = vmatpush3.bf16.msra.mxu0 %v5346_v5 }
 0x258   : > { %5222 = vmatprep.subr.bf16.mxu0 %v5347_v6 }
 0x25b   : > { %5223 = vmatpush3.bf16.msra.mxu0 %v5348_v7  ;;  %v4060_v7 = vmul.f32 %v3537_v12, %v3537_v12 }
 0x25c   : > { %5224 = vmatprep.subr.bf16.mxu0 %v5349_v8 }
 0x25f   : > { %5225 = vmatpush3.bf16.msra.mxu0 %v5350_v44  ;;  %v5359_v44 = vld [vmem:[#allocation6 + $0xe8] sm:$0xff]  }
 0x260   : > { %5226 = vmatprep.subr.bf16.mxu0 %v5351_v47  ;;  %v5360_v47 = vld [vmem:[#allocation6 + $0xa8] sm:$0xff]   ;;  %5240 = vmatprep.subr.bf16.mxu1 %v5359_v44  ;;  %v4058_v44 = vmul.f32 %v5803_v19, %v5803_v19 }
 0x261   : > { %5241 = vmatpush3.bf16.msra.mxu1 %v5360_v47 }
 0x263   : > { %5227 = vmatpush3.bf16.msra.mxu0 %v5352_v11 }
 0x264   : > { %5228 = vmatprep.subr.bf16.mxu0 %v5353_v14  ;;  %v5361_v14 = vld [vmem:[#allocation6 + $0xe0] sm:$0xff]  }
 0x265   : > { %5242 = vmatprep.subr.bf16.mxu1 %v5361_v14 }
 0x267   : > { %5229 = vmatpush3.bf16.msra.mxu0 %v5354_v21  ;;  %v5362_v21 = vld [vmem:[#allocation6 + $0xa0] sm:$0xff]  }
 0x268   : > { %5243 = vmatpush3.bf16.msra.mxu1 %v5362_v21 }
 0x269   : > { %5244 = vmatprep.subr.bf16.mxu1 %v5363_v15 }
 0x26c   : > { %5245 = vmatpush3.bf16.msra.mxu1 %v5364_v17  ;;  %v4061_v17 = vmul.f32 %v5806_v59, %v5806_v59 }
 0x26d   : > { %5246 = vmatprep.subr.bf16.mxu1 %v5365_v31 }
 0x270   : > { %5247 = vmatpush3.bf16.msra.mxu1 %v5366_v25 }
 0x271   : > { %5248 = vmatprep.subr.bf16.mxu1 %v5367_v22  ;;  %v4062_v22 = vmul.f32 %v5809_v52, %v5809_v52 }
 0x274   : > { %5249 = vmatpush3.bf16.msra.mxu1 %v5368_v30 }
 0x28a   : > { %v3831_v36 = vpop.f32.mrf.mxu0 }
 0x28b   : > { %v3832_v10 = vadd.f32 %v3831_v36, %v3789_v60  ;;  %v5369_v60 = vld [vmem:[#allocation6 + $0xc0] sm:$0xff]  }
 0x28c   : > { %v3874_v13 = vpop.f32.mrf.mxu1  ;;  %v3833_v29 = vpop.f32.mrf.mxu0  ;;  %5250 = vmatprep.subr.bf16.mxu1 %v5369_v60 }
 0x28d   : > { %v3875_v40 = vadd.f32 %v3874_v13, %v3832_v10  ;;  %v3834_v41 = vadd.f32 %v3833_v29, %v3791_v38  ;;  %5251 = vmatpush3.bf16.msra.mxu1 %v5370_v20 }
 0x28e   : > { %v3876_v45 = vpop.f32.mrf.mxu1  ;;  %v3835_v37 = vpop.f32.mrf.mxu0 }
 0x28f   : > { %v4063_v49 = vmul.f32 %v3875_v40, %v3875_v40  ;;  %v3877_v50 = vadd.f32 %v3876_v45, %v3834_v41  ;;  %v3836_v61 = vadd.f32 %v3835_v37, %v3793_v51 }
 0x290   : > { %v3878_v53 = vpop.f32.mrf.mxu1  ;;  %v3837_v24 = vpop.f32.mrf.mxu0 }
 0x291   : > { %v5829_v56 = vadd.f32 %v4063_v49, %v4055_v48  ;;  %v4064_v27 = vmul.f32 %v3877_v50, %v3877_v50  ;;  %v3879_v58 = vadd.f32 %v3878_v53, %v3836_v61  ;;  %v3838_v28 = vadd.f32 %v3837_v24, %v3795_v62 }
 0x292   : > { %v3880_v4 = vpop.f32.mrf.mxu1 }
 0x293   : > { %v4072_v63 = vadd.f32 %v4064_v27, %v4056_v23  ;;  %v4067_v5 = vmul.f32 %v3879_v58, %v3879_v58  ;;  %v3881_v6 = vadd.f32 %v3880_v4, %v3838_v28  ;;  %5371 = vrsqrt.f32 %v5829_v56 }
 0x294   : > { %vm4081_vm0 = vcmp.eq.f32.partialorder %v5829_v56, inf  ;;  %v4084_v0 = vand.u32 2147483648, %v5829_v56  ;;  %vm4083_vm7 = vcmp.eq.f32.partialorder %v5829_v56, 0.0 }
 0x295   : > { %5373 = vrsqrt.f32 %v4072_v63  ;;  %v4075_v16 = vadd.f32 %v4067_v5, %v4059_v2  ;;  %v4068_v8 = vmul.f32 %v3881_v6, %v3881_v6  ;;  %vm4088_vm1 = vcmp.eq.f32.partialorder %v4072_v63, inf }
 0x296   : > { %v4091_v33 = vand.u32 2147483648, %v4072_v63  ;;  %vm4090_vm5 = vcmp.eq.f32.partialorder %v4072_v63, 0.0  ;;  %v4057_v2 = vmul.f32 %v5798_v9, %v5798_v9 }
 0x297   : > { %5375 = vrsqrt.f32 %v4075_v16  ;;  %v4076_v11 = vadd.f32 %v4068_v8, %v4060_v7  ;;  %vm4109_vm2 = vcmp.eq.f32.partialorder %v4075_v16, inf  ;;  %v4112_v10 = vand.u32 2147483648, %v4075_v16 }
 0x298   : > { %vm4111_vm4 = vcmp.eq.f32.partialorder %v4075_v16, 0.0 }
 0x299   : > { %5377 = vrsqrt.f32 %v4076_v11  ;;  %vm4116_vm3 = vcmp.eq.f32.partialorder %v4076_v11, inf  ;;  %v4119_v13 = vand.u32 2147483648, %v4076_v11  ;;  %vm4118_vm6 = vcmp.eq.f32.partialorder %v4076_v11, 0.0 }
 0x2a0   : > { %v5372_v18 = vpop.eup %5371 }
 0x2a1   : > { %v4080_v55 = vmul.f32 %v5372_v18, %v5829_v56 }
 0x2a2   : > { %v5374_v26 = vpop.eup %5373 }
 0x2a3   : > { %v4087_v54 = vmul.f32 %v5374_v26, %v4072_v63  ;;  %v4082_v39 = vsel %vm4081_vm0, %v5829_v56, %v4080_v55  ;;  %vm4515_vm0 = vcmask 130048  }
 0x2a4   : > { %v5376_v43 = vpop.eup %5375  ;;  %v4085_v46 = vsel %vm4083_vm7, %v4084_v0, %v4082_v39 }
 0x2a5   : > { %v4108_v32 = vmul.f32 %v5376_v43, %v4075_v16  ;;  %v4089_v3 = vsel %vm4088_vm1, %v4072_v63, %v4087_v54 }
 0x2a6   : > { %v5378_v35 = vpop.eup %5377  ;;  %v4092_v40 = vsel %vm4090_vm5, %v4091_v33, %v4089_v3 }
 0x2a7   : > { %v4115_v36 = vmul.f32 %v5378_v35, %v4076_v11  ;;  %v4110_v38 = vsel %vm4109_vm2, %v4075_v16, %v4108_v32 }
 0x2a8   : > { %v4113_v51 = vsel %vm4111_vm4, %v4112_v10, %v4110_v38 }
 0x2a9   : > { %v4117_v29 = vsel %vm4116_vm3, %v4076_v11, %v4115_v36  ;;  %v4135_v48 = vpack.c.bf16 %v4113_v51, %v4085_v46 }
 0x2aa   : > { %v4120_v41 = vsel %vm4118_vm6, %v4119_v13, %v4117_v29 }
 0x2ab   : > { %v4136_v45 = vpack.c.bf16 %v4120_v41, %v4092_v40 }
 0x2ad   : > { %4427 = vmatprep.mubr.bf16.mxu0 %v4136_v45 }
 0x2ae   : > { %4428 = vmatmul.mubr.bf16.vlgmr.msra.gmra.mxu0 %v4135_v48 }
 0x2ca   : > { %v3917_v34 = vpop.f32.mrf.mxu0 }
 0x2cc   : > { %v3960_v37 = vpop.f32.mrf.mxu1  ;;  %v3919_v42 = vpop.f32.mrf.mxu0 }
 0x2cd   : > { %v3961_v53 = vadd.f32 %v3960_v37, %v3917_v34 }
 0x2ce   : > { %v3962_v62 = vpop.f32.mrf.mxu1  ;;  %v3921_v49 = vpop.f32.mrf.mxu0 }
 0x2cf   : > { %v3963_v24 = vadd.f32 %v3962_v62, %v3919_v42 }
 0x2d0   : > { %v3964_v50 = vpop.f32.mrf.mxu1  ;;  %v3923_v61 = vpop.f32.mrf.mxu0 }
 0x2d1   : > { %v3965_v28 = vadd.f32 %v3964_v50, %v3921_v49 }
 0x2d2   : > { %v3966_v23 = vpop.f32.mrf.mxu1 }
 0x2d3   : > { %v3967_v5 = vadd.f32 %v3966_v23, %v3923_v61 }
 0x30a   : > { %v4003_v12 = vpop.f32.mrf.mxu0 }
 0x30b   : > { %v4004_v27 = vadd.f32 %v4003_v12, %v3961_v53 }
 0x30c   : > { %v4046_v58 = vpop.f32.mrf.mxu1  ;;  %v4005_v56 = vpop.f32.mrf.mxu0 }
 0x30d   : > { %v4047_v57 = vadd.f32 %v4046_v58, %v4004_v27  ;;  %v4006_v4 = vadd.f32 %v4005_v56, %v3963_v24 }
 0x30e   : > { %v4048_v1 = vpop.f32.mrf.mxu1  ;;  %v4007_v63 = vpop.f32.mrf.mxu0 }
 0x30f   : > { %v4065_v6 = vmul.f32 %v4047_v57, %v4047_v57  ;;  %v4049_v7 = vadd.f32 %v4048_v1, %v4006_v4  ;;  %v4008_v16 = vadd.f32 %v4007_v63, %v3965_v28 }
 0x310   : > { %v4050_v8 = vpop.f32.mrf.mxu1  ;;  %v4009_v47 = vpop.f32.mrf.mxu0 }
 0x311   : > { %v4073_v11 = vadd.f32 %v4065_v6, %v4057_v2  ;;  %v4066_v14 = vmul.f32 %v4049_v7, %v4049_v7  ;;  %v4051_v21 = vadd.f32 %v4050_v8, %v4008_v16  ;;  %v4010_v15 = vadd.f32 %v4009_v47, %v3967_v5 }
 0x312   : > { %v4052_v31 = vpop.f32.mrf.mxu1 }
 0x313   : > { %5379 = vrsqrt.f32 %v4073_v11  ;;  %v4074_v9 = vadd.f32 %v4066_v14, %v4058_v44  ;;  %v4069_v25 = vmul.f32 %v4051_v21, %v4051_v21  ;;  %v4053_v18 = vadd.f32 %v4052_v31, %v4010_v15 }
 0x314   : > { %vm4095_vm8 = vcmp.eq.f32.partialorder %v4073_v11, inf  ;;  %vm4097_vm9 = vcmp.eq.f32.partialorder %v4073_v11, 0.0  ;;  %v4098_v35 = vand.u32 2147483648, %v4073_v11 }
 0x315   : > { %5381 = vrsqrt.f32 %v4074_v9  ;;  %v4077_v26 = vadd.f32 %v4069_v25, %v4061_v17  ;;  %v4070_v54 = vmul.f32 %v4053_v18, %v4053_v18  ;;  %vm4102_vm10 = vcmp.eq.f32.partialorder %v4074_v9, inf }
 0x316   : > { %v4105_v3 = vand.u32 2147483648, %v4074_v9  ;;  %vm4104_vm14 = vcmp.eq.f32.partialorder %v4074_v9, 0.0 }
 0x317   : > { %5383 = vrsqrt.f32 %v4077_v26  ;;  %v4078_v19 = vadd.f32 %v4070_v54, %v4062_v22  ;;  %vm4123_vm11 = vcmp.eq.f32.partialorder %v4077_v26, inf  ;;  %v4126_v52 = vand.u32 2147483648, %v4077_v26 }
 0x318   : > { %vm4125_vm12 = vcmp.eq.f32.partialorder %v4077_v26, 0.0 }
 0x319   : > { %5385 = vrsqrt.f32 %v4078_v19  ;;  %vm4130_vm13 = vcmp.eq.f32.partialorder %v4078_v19, inf  ;;  %v4133_v13 = vand.u32 2147483648, %v4078_v19  ;;  %vm4132_vm15 = vcmp.eq.f32.partialorder %v4078_v19, 0.0 }
 0x320   : > { %v5380_v43 = vpop.eup %5379 }
 0x321   : > { %v4094_v55 = vmul.f32 %v5380_v43, %v4073_v11 }
 0x322   : > { %v5382_v30 = vpop.eup %5381 }
 0x323   : > { %v4101_v32 = vmul.f32 %v5382_v30, %v4074_v9  ;;  %v4096_v59 = vsel %vm4095_vm8, %v4073_v11, %v4094_v55 }
 0x324   : > { %v5384_v60 = vpop.eup %5383  ;;  %v4099_v39 = vsel %vm4097_vm9, %v4098_v35, %v4096_v59 }
 0x325   : > { %v4122_v33 = vmul.f32 %v5384_v60, %v4077_v26  ;;  %v4103_v36 = vsel %vm4102_vm10, %v4074_v9, %v4101_v32 }
 0x326   : > { %v5386_v0 = vpop.eup %5385  ;;  %v4106_v40 = vsel %vm4104_vm14, %v4105_v3, %v4103_v36 }
 0x327   : > { %v4129_v38 = vmul.f32 %v5386_v0, %v4078_v19  ;;  %v4124_v10 = vsel %vm4123_vm11, %v4077_v26, %v4122_v33 }
 0x328   : > { %v4127_v20 = vsel %vm4125_vm12, %v4126_v52, %v4124_v10 }
 0x329   : > { %v4131_v29 = vsel %vm4130_vm13, %v4078_v19, %v4129_v38  ;;  %v4137_v51 = vpack.c.bf16 %v4127_v20, %v4099_v39 }
 0x32a   : > { %v4134_v41 = vsel %vm4132_vm15, %v4133_v13, %v4131_v29 }
 0x32b   : > { %v4138_v45 = vpack.c.bf16 %v4134_v41, %v4106_v40 }
 0x32d   : > { %4468 = vmatprep.mubr.bf16.mxu1 %v4138_v45 }
 0x32e   : > { %4469 = vmatmul.mubr.bf16.vlgmr.msra.gmra.mxu1 %v4137_v51 }
 0x36e   : > { %v5230_v46 = vpop.f32.mrf.mxu0 }
 0x370   : > { %v5231_v48 = vpop.f32.mrf.mxu0 }
 0x371   : > { %v5232_v62 = vadd.f32 %v5231_v48, %v5230_v46 }
 0x372   : > { %v5233_v34 = vpop.f32.mrf.mxu0 }
 0x374   : > { %v5234_v50 = vpop.f32.mrf.mxu0 }
 0x375   : > { %v5235_v12 = vadd.f32 %v5234_v50, %v5233_v34 }
 0x3ee   : > { %v5252_v37 = vpop.f32.mrf.mxu1 }
 0x3f0   : > { %v5253_v42 = vpop.f32.mrf.mxu1 }
 0x3f1   : > { %v5254_v49 = vadd.f32 %v5253_v42, %v5252_v37 }
 0x3f2   : > { %v5255_v61 = vpop.f32.mrf.mxu1 }
 0x3f3   : > { %v4471_v53 = vadd.f32 %v5254_v49, %v5232_v62 }
 0x3f4   : > { %v5256_v23 = vpop.f32.mrf.mxu1 }
 0x3f5   : > { %v4477_v24 = vmax.f32 %v4471_v53, 1e-05  ;;  %v5257_v27 = vadd.f32 %v5256_v23, %v5255_v61 }
 0x3f7   : > { %v4474_v58 = vadd.f32 %v5257_v27, %v5235_v12  ;;  %5387 = vlog2.f32 %v4477_v24 }
 0x3f9   : > { %v4478_v56 = vmax.f32 %v4474_v58, 1e-05 }
 0x3fb   : > { %5389 = vlog2.f32 %v4478_v56 }
 0x404   : > { %v5388_v28 = vpop.eup %5387 }
 0x405   : > { %v4480_v57 = vmul.f32 0.6931472, %v5388_v28 }
 0x407   : > { %4483 = vxpose.xlu0.b32.start [1/2] (short) %v4480_v57, 128 }
 0x408   : > { %v5390_v4 = vpop.eup %5389 }
 0x409   : > { %v4482_v1 = vmul.f32 0.6931472, %v5390_v4 }
 0x40b   : > { %4484 = vxpose.xlu0.b32.end [2/2] (short) %v4482_v1, 128 }
 0x483   : > { %v4499_v2 = vpop.trf.xlu0 }
 0x484   : > { %4516 = vst.msk [vmem:[%s5850_s28] sm:$0xff] %vm4515_vm0, %v4499_v2 }
 0x487   : > { %v4500_v63 = vpop.trf.xlu0 }
 0x488   : > { %4517 = vst.msk [vmem:[%s5850_s28 + $0x8] sm:$0xff] %vm4515_vm0, %v4500_v63 }
 0x48b   : > { %v4501_v5 = vpop.trf.xlu0 }
 0x48c   : > { %4518 = vst.msk [vmem:[%s5850_s28 + $0x10] sm:$0xff] %vm4515_vm0, %v4501_v5 }
 0x48f   : > { %v4502_v6 = vpop.trf.xlu0 }
 0x490   : > { %4519 = vst.msk [vmem:[%s5850_s28 + $0x18] sm:$0xff] %vm4515_vm0, %v4502_v6 }
 0x493   : > { %v4503_v7 = vpop.trf.xlu0 }
 0x494   : > { %4520 = vst.msk [vmem:[%s5850_s28 + $0x20] sm:$0xff] %vm4515_vm0, %v4503_v7 }
 0x497   : > { %v4504_v16 = vpop.trf.xlu0 }
 0x498   : > { %4521 = vst.msk [vmem:[%s5850_s28 + $0x28] sm:$0xff] %vm4515_vm0, %v4504_v16 }
 0x49b   : > { %v4505_v8 = vpop.trf.xlu0 }
 0x49c   : > { %4522 = vst.msk [vmem:[%s5850_s28 + $0x30] sm:$0xff] %vm4515_vm0, %v4505_v8 }
 0x49f   : > { %v4506_v44 = vpop.trf.xlu0 }
 0x4a0   : > { %4523 = vst.msk [vmem:[%s5850_s28 + $0x38] sm:$0xff] %vm4515_vm0, %v4506_v44 }
 0x4a3   : > { %v4507_v47 = vpop.trf.xlu0 }
 0x4a4   : > { %4524 = vst.msk [vmem:[%s5850_s28 + $0x40] sm:$0xff] %vm4515_vm0, %v4507_v47 }
 0x4a7   : > { %v4508_v11 = vpop.trf.xlu0 }
 0x4a8   : > { %4525 = vst.msk [vmem:[%s5850_s28 + $0x48] sm:$0xff] %vm4515_vm0, %v4508_v11 }
 0x4ab   : > { %v4509_v14 = vpop.trf.xlu0 }
 0x4ac   : > { %4526 = vst.msk [vmem:[%s5850_s28 + $0x50] sm:$0xff] %vm4515_vm0, %v4509_v14 }
 0x4af   : > { %v4510_v21 = vpop.trf.xlu0 }
 0x4b0   : > { %4527 = vst.msk [vmem:[%s5850_s28 + $0x58] sm:$0xff] %vm4515_vm0, %v4510_v21 }
 0x4b3   : > { %v4511_v15 = vpop.trf.xlu0 }
 0x4b4   : > { %4528 = vst.msk [vmem:[%s5850_s28 + $0x60] sm:$0xff] %vm4515_vm0, %v4511_v15 }
 0x4b7   : > { %v4512_v17 = vpop.trf.xlu0 }
 0x4b8   : > { %4529 = vst.msk [vmem:[%s5850_s28 + $0x68] sm:$0xff] %vm4515_vm0, %v4512_v17 }
 0x4bb   : > { %v4513_v31 = vpop.trf.xlu0 }
 0x4bc   : > { %4530 = vst.msk [vmem:[%s5850_s28 + $0x70] sm:$0xff] %vm4515_vm0, %v4513_v31 }
 0x4bf   : > { %v4514_v9 = vpop.trf.xlu0 }
 0x4c0   : > { %4531 = vst.msk [vmem:[%s5850_s28 + $0x78] sm:$0xff] %vm4515_vm0, %v4514_v9 }
 0x4c1 PF: > { %s17_s17 = sadd.s32 1, %s5525_s17   ;;  %s5911_s12 = smov %s5509_s13 }
 0x4c2   : > { %p14_p4 = scmp.ge.s32.totalorder %s17_s17, 4   ;;  %s5912_s13 = smov %s5513_s14 }
 0x4c3   : > { %s5913_s14 = smov %s5642_s24  ;;  %s5914_s15 = smov %s5521_s16 }
 0x4c4   : > { %s5915_s16 = smov %s5917_s10  ;;  %16 = sbr.rel (!%p14_p4) target bundleno = 5 (0x5), region = 80 }
 0x4c9   :  { %4559 = vsyncpa [#allocation3], 1 }
 0x4ca   :  { %4561 = vsyncpa [#allocation3 + $0x1], 1 }
 0x4cb   :  { %4562 = vsyncpa [#allocation5], 1 }

</bundles_post_ra>
